<compile_context>
chip_gen: v7x
topology: tpu7x:2x2x1
jax: 0.10.0
libtpu: 0.0.40
codegen_flags: <defaults>
</compile_context>

<pallas_src>
import functools
import math

import jax
import jax.numpy as jnp
from jax import lax
from jax.experimental import pallas as pl
from jax.experimental.pallas import tpu as pltpu


_MIB = 1 << 20
# Target for the double-buffered per-step working set (v7x-safe: limit stays
# well under its 64 MiB physical VMEM).
_DEFAULT_VMEM_BUDGET = 36 * _MIB


# ----------------------------- helpers --------------------------------------

def _round_up(x, m):
    return ((x + m - 1) // m) * m


def _pad_to(x, rows, cols, dtype):
    x = x.astype(dtype)
    return jnp.pad(x, ((0, rows - x.shape[0]), (0, cols - x.shape[1])))


def _plan(n, d, block_m, block_k, mm_itemsize, vmem_budget_bytes):
    """Padded extents + tiles.  Deterministic in (n, d, blocks, matmul dtype)."""
    n128 = _round_up(max(n, 1), 128)
    dp = _round_up(max(d, 1), 128)

    bm = max(128, block_m - block_m % 128)
    bk = max(128, block_k - block_k % 128)

    # Row tile: as large as requested, but keep >= 2 row tiles so the
    # "parallel" axis can be sharded across both TensorCores on v7x.
    tm = min(bm, n128)
    np_ = _round_up(n128, tm)
    if np_ // tm < 2 and tm >= 256:
        tm = max(128, (tm // 2) - ((tm // 2) % 128))
        np_ = _round_up(n128, tm)

    # Reduction tile: largest 128-multiple <= block_k dividing the padded row
    # count.  np_ is a 128-multiple, so this always terminates at >= 128.
    tk = max(128, min(bk, np_) - (min(bk, np_) % 128))
    while np_ % tk:
        tk -= 128

    def vmem_need(tk_):
        b = 2 * tm * tk_ * mm_itemsize          # adj tiles (double-buffered)
        b += 2 * tk_ * dp * mm_itemsize         # x tiles (k-indexed)
        b += 2 * tm * dp * 4                    # h0 tiles (f32)
        b += 2 * (2 * dp) * dp * mm_itemsize    # weight (variant worst case)
        b += 2 * tm * dp * 4                    # f32 output block
        b += 2 * tm * dp * mm_itemsize          # residual tiles (worst case)
        return b

    # Shrink the reduction tile until the working set fits the VMEM budget
    # (so a config tuned on v6e's 128 MiB also fits v7x's 64 MiB).
    while tk > 128 and vmem_need(tk) > vmem_budget_bytes:
        nt = tk - 128
        while np_ % nt:
            nt -= 128
        tk = nt

    return np_, dp, tm, tk, vmem_need(tk)


# ----------------------------- Pallas kernel --------------------------------

def _graph_conv_kernel(*refs, alpha, theta, variant, residual):
    # grid = (row_tiles, k_tiles); k (adjacency reduction) is the last axis.
    if residual:
        adj_ref, x_ref, h0_ref, w_ref, res_ref, o_ref = refs
    else:
        adj_ref, x_ref, h0_ref, w_ref, o_ref = refs
        res_ref = None

    k = pl.program_id(1)
    nk = pl.num_programs(1)

    @pl.when(k == 0)
    def _():
        o_ref[...] = jnp.zeros_like(o_ref)

    # hi accumulation directly in the f32 output block (its block index is
    # constant over k, so it stays VMEM-resident -> no separate scratch).
    o_ref[...] += jnp.dot(adj_ref[...], x_ref[...],
                          preferred_element_type=jnp.float32)

    @pl.when(k == nk - 1)
    def _():
        hi = o_ref[...]
        h0 = h0_ref[...].astype(jnp.float32)
        r = (1.0 - alpha) * hi + alpha * h0
        mm_dtype = w_ref.dtype
        if variant:
            # cat([hi, h0], 1) @ W  ==  hi @ W[:dp] + h0 @ W[dp:]
            dh = w_ref.shape[0] // 2
            sw = (jnp.dot(hi.astype(mm_dtype), w_ref[:dh, :],
                          preferred_element_type=jnp.float32)
                  + jnp.dot(h0.astype(mm_dtype), w_ref[dh:, :],
                            preferred_element_type=jnp.float32))
        else:
            sw = jnp.dot(r.astype(mm_dtype), w_ref[...],
                         preferred_element_type=jnp.float32)
        out = theta * sw + (1.0 - theta) * r
        if residual:
            out = out + res_ref[...].astype(jnp.float32)
        o_ref[...] = out.astype(o_ref.dtype)


# ----------------------------- wrappers --------------------------------------

def prepare_graph(adj, h0, *, matmul_dtype=jnp.bfloat16,
                  block_m=512, block_k=2048,
                  vmem_budget_bytes=_DEFAULT_VMEM_BUDGET):
    """Cast/pad adjacency and h0 ONCE for a whole GCNII stack.

    adj / h0 are reused by every layer; re-padding them per layer roughly
    doubles the adjacency HBM traffic.  Pass the returned arrays (with the
    same matmul_dtype / block sizes) to graph_convolution and the per-layer
    pad/cast is skipped.
    """
    n = adj.shape[0]
    d = h0.shape[1]
    mm_size = jnp.dtype(matmul_dtype).itemsize
    np_, dp, _, _, _ = _plan(n, d, block_m, block_k, mm_size, vmem_budget_bytes)
    adj_p = _pad_to(adj, np_, np_, matmul_dtype)
    h0_p = _pad_to(h0, np_, dp, jnp.float32)
    return adj_p, h0_p


def graph_convolution(x, adj, h0, weight, lamda, alpha, layer,
                      *, variant=False, residual=False,
                      matmul_dtype=jnp.bfloat16,
                      block_m=512, block_k=2048,
                      vmem_budget_bytes=_DEFAULT_VMEM_BUDGET):
    """Forward of the PyTorch GraphConvolution module on TPU via Pallas."""
    n, din = x.shape
    dout = weight.shape[1]
    if din != dout:
        # the reference arithmetic (theta*mm + (1-theta)*r) requires in == out,
        # as in the GCNII usage GraphConvolution(nhidden, nhidden)
        raise ValueError("GraphConvolution requires in_features == out_features")
    expected_w_rows = 2 * din if variant else din
    if weight.shape[0] != expected_w_rows:
        raise ValueError("weight has wrong first dim for variant=%s" % variant)

    theta = math.log(lamda / layer + 1.0)
    mm_size = jnp.dtype(matmul_dtype).itemsize
    np_, dp, tm, tk, need = _plan(n, din, block_m, block_k, mm_size,
                                  vmem_budget_bytes)
    f32 = jnp.float32

    # adj / h0 may be pre-padded once per GCNII stack (see prepare_graph).
    if adj.shape == (np_, np_) and adj.dtype == jnp.dtype(matmul_dtype):
        adj_p = adj
    elif adj.shape == (n, n):
        adj_p = _pad_to(adj, np_, np_, matmul_dtype)
    else:
        raise ValueError("adj must be (n, n) or pre-padded (np, np)")

    if h0.shape == (np_, dp) and h0.dtype == f32:
        h0_p = h0
    elif h0.shape == (n, din):
        h0_p = _pad_to(h0, np_, dp, f32)
    else:
        raise ValueError("h0 must be (n, d) or pre-padded (np, dp)")

    x_p = _pad_to(x, np_, dp, matmul_dtype)

    w = weight.astype(matmul_dtype)
    if variant:
        # split/repack so rows [0:dp) multiply hi and rows [dp:2dp) multiply h0
        w_p = jnp.zeros((2 * dp, dp), matmul_dtype)
        w_p = w_p.at[:din, :dout].set(w[:din])
        w_p = w_p.at[dp:dp + din, :dout].set(w[din:])
    else:
        w_p = _pad_to(w, dp, dp, matmul_dtype)

    inputs = [adj_p, x_p, h0_p, w_p]
    in_specs = [
        pl.BlockSpec((tm, tk), lambda i, k: (i, k)),   # adjacency tile
        pl.BlockSpec((tk, dp), lambda i, k: (k, 0)),   # input rows for this K tile
        pl.BlockSpec((tm, dp), lambda i, k: (i, 0)),   # h0 rows for this row tile
        pl.BlockSpec(w_p.shape, lambda i, k: (0, 0)),  # weight: VMEM-resident
    ]
    if residual:
        # reuse the already cast/padded x via a row-tiled view (no extra f32 copy)
        inputs.append(x_p)
        in_specs.append(pl.BlockSpec((tm, dp), lambda i, k: (i, 0)))

    row_tiles = np_ // tm
    flops = 2 * np_ * np_ * dp + 2 * np_ * w_p.shape[0] * dp
    bytes_accessed = (adj_p.size * mm_size
                      + x_p.size * mm_size * row_tiles
                      + h0_p.size * 4
                      + w_p.size * mm_size
                      + np_ * dp * 4
                      + (x_p.size * mm_size if residual else 0))

    # Explicit scoped-VMEM limit: above v5e's 16 MiB default, comfortably under
    # v7x's 64 MiB physical VMEM (working set is capped by vmem_budget_bytes).
    vmem_limit = max(32 * _MIB, min(need + need // 2 + 2 * _MIB, 90 * _MIB))

    out = pl.pallas_call(
        functools.partial(_graph_conv_kernel,
                          alpha=float(alpha), theta=float(theta),
                          variant=bool(variant), residual=bool(residual)),
        out_shape=jax.ShapeDtypeStruct((np_, dp), jnp.float32),
        grid=(row_tiles, np_ // tk),
        in_specs=in_specs,
        out_specs=pl.BlockSpec((tm, dp), lambda i, k: (i, 0)),
        compiler_params=pltpu.CompilerParams(
            dimension_semantics=("parallel", "arbitrary"),
            vmem_limit_bytes=int(vmem_limit)),
        cost_estimate=pl.CostEstimate(flops=int(flops), transcendentals=0,
                                      bytes_accessed=int(bytes_accessed)),
    )(*inputs)

    return out[:n, :dout]


# ----------------------------- pure-JAX reference ----------------------------

def graph_convolution_ref(x, adj, h0, weight, lamda, alpha, layer,
                          *, variant=False, residual=False):
    theta = math.log(lamda / layer + 1.0)
    hp = lax.Precision.HIGHEST
    hi = jnp.dot(adj, x, precision=hp)
    if variant:
        support = jnp.concatenate([hi, h0], axis=1)
        r = (1.0 - alpha) * hi + alpha * h0
    else:
        support = (1.0 - alpha) * hi + alpha * h0
        r = support
    output = theta * jnp.dot(support, weight, precision=hp) + (1.0 - theta) * r
    if residual:
        output = output + x
    return output


# --------------------------------- main ---------------------------------------

if __name__ == "__main__":
    key = jax.random.PRNGKey(0)
    n, d = 768, 200          # pads to (1024, 256); grid = (2 row tiles, 1 K tile)
    lamda, alpha, layer = 0.5, 0.1, 1

    kx, ka, kh, kw, kw2 = jax.random.split(key, 5)
    x = jax.random.normal(kx, (n, d), jnp.float32)
    adj_raw = jax.random.uniform(ka, (n, n), jnp.float32)
    adj = adj_raw / jnp.sum(adj_raw, axis=1, keepdims=True)   # row-normalized graph
    h0 = jax.random.normal(kh, (n, d), jnp.float32)
    stdv = 1.0 / math.sqrt(d)
    w = jax.random.uniform(kw, (d, d), jnp.float32, -stdv, stdv)
    w_var = jax.random.uniform(kw2, (2 * d, d), jnp.float32, -stdv, stdv)

    # --- variant=False, residual=False (the GCNII hot path) ---
    ref = graph_convolution_ref(x, adj, h0, w, lamda, alpha, layer)
    out_f32 = graph_convolution(x, adj, h0, w, lamda, alpha, layer,
                                matmul_dtype=jnp.float32)
    out_bf16 = graph_convolution(x, adj, h0, w, lamda, alpha, layer,
                                 matmul_dtype=jnp.bfloat16)

    # --- hoisted (pre-padded) adjacency/h0, as a GCNII stack would use ---
    adj_prep, h0_prep = prepare_graph(adj, h0, matmul_dtype=jnp.float32)
    out_prep = graph_convolution(x, adj_prep, h0_prep, w, lamda, alpha, layer,
                                 matmul_dtype=jnp.float32)

    # --- variant=True, residual=True branch ---
    ref_v = graph_convolution_ref(x, adj, h0, w_var, lamda, alpha, layer,
                                  variant=True, residual=True)
    out_v = graph_convolution(x, adj, h0, w_var, lamda, alpha, layer,
                              variant=True, residual=True,
                              matmul_dtype=jnp.float32)

    jax.block_until_ready((out_f32, out_bf16, out_prep, out_v))

    assert out_f32.shape == (n, d) and out_bf16.shape == (n, d)
    assert out_prep.shape == (n, d) and out_v.shape == (n, d)

    scale = float(jnp.max(jnp.abs(ref))) + 1e-6
    scale_v = float(jnp.max(jnp.abs(ref_v))) + 1e-6
    rel_f32 = float(jnp.max(jnp.abs(out_f32 - ref))) / scale
    rel_prep = float(jnp.max(jnp.abs(out_prep - ref))) / scale
    rel_bf16 = float(jnp.max(jnp.abs(out_bf16 - ref))) / scale
    rel_v = float(jnp.max(jnp.abs(out_v - ref_v))) / scale_v
    assert rel_f32 < 2e-2, f"f32 path mismatch: {rel_f32}"
    assert rel_prep < 2e-2, f"pre-padded adj path mismatch: {rel_prep}"
    assert rel_v < 2e-2, f"variant/residual path mismatch: {rel_v}"
    assert rel_bf16 < 5e-2, f"bf16 path mismatch: {rel_bf16}"

    print("KERNEL_OK")
</pallas_src>

<mosaic_0001>
module attributes {stable_mosaic.version = 11 : i64} {
  func.func @_graph_conv_kernel(%arg0: i32, %arg1: i32, %arg2: memref<512x1024xf32, #tpu.memory_space<vmem>>, %arg3: memref<1024x256xf32, #tpu.memory_space<vmem>>, %arg4: memref<512x256xf32, #tpu.memory_space<vmem>>, %arg5: memref<256x256xf32, #tpu.memory_space<vmem>>, %arg6: memref<512x256xf32, #tpu.memory_space<vmem>>) attributes {dimension_semantics = [#tpu.dimension_semantics<parallel>, #tpu.dimension_semantics<arbitrary>], iteration_bounds = array<i64: 2, 1>, scalar_prefetch = 0 : i64, scratch_operands = 0 : i64, tpu.core_type = #tpu.core_type<tc>, window_params = [{transform_indices = @transform_0, window_bounds = array<i64: 512, 1024>}, {transform_indices = @transform_1, window_bounds = array<i64: 1024, 256>}, {transform_indices = @transform_2, window_bounds = array<i64: 512, 256>}, {pipeline_mode = #tpu.pipeline_mode<synchronous>, transform_indices = @transform_3, window_bounds = array<i64: 256, 256>}, {transform_indices = @transform_4, window_bounds = array<i64: 512, 256>}]} {
    %c0_i32 = arith.constant 0 : i32
    %0 = arith.cmpi eq, %arg1, %c0_i32 : i32
    %1 = arith.extui %0 : i1 to i32
    %c0_i32_0 = arith.constant 0 : i32
    %2 = arith.cmpi ne, %1, %c0_i32_0 : i32
    scf.if %2 {
      %cst_10 = arith.constant 0.000000e+00 : f32
      %12 = vector.broadcast %cst_10 : f32 to vector<512x256xf32>
      %c0_11 = arith.constant 0 : index
      %c0_12 = arith.constant 0 : index
      %13 = vector.load %arg6[%c0_11, %c0_12] : memref<512x256xf32, #tpu.memory_space<vmem>>, vector<512x256xf32>
      tpu.vector_store %arg6[%c0_11, %c0_12], %12 {strides = array<i32>} : memref<512x256xf32, #tpu.memory_space<vmem>>, vector<512x256xf32>,
    } else {
    }
    %c0 = arith.constant 0 : index
    %c0_1 = arith.constant 0 : index
    %3 = vector.load %arg6[%c0, %c0_1] : memref<512x256xf32, #tpu.memory_space<vmem>>, vector<512x256xf32>
    %c0_2 = arith.constant 0 : index
    %c0_3 = arith.constant 0 : index
    %4 = vector.load %arg2[%c0_2, %c0_3] : memref<512x1024xf32, #tpu.memory_space<vmem>>, vector<512x1024xf32>
    %c0_4 = arith.constant 0 : index
    %c0_5 = arith.constant 0 : index
    %5 = vector.load %arg3[%c0_4, %c0_5] : memref<1024x256xf32, #tpu.memory_space<vmem>>, vector<1024x256xf32>
    %cst = arith.constant dense<0.000000e+00> : vector<512x256xf32>
    %6 = tpu.matmul %4, %5, %cst {dimension_numbers = #tpu.dot_dimension_numbers<[1], [0], [0], [1], [0, 0, 1, 1], [], []>} : vector<512x1024xf32>, vector<1024x256xf32>, vector<512x256xf32> -> vector<512x256xf32>
    %7 = arith.addf %3, %6 : vector<512x256xf32>
    %c0_6 = arith.constant 0 : index
    %c0_7 = arith.constant 0 : index
    %8 = vector.load %arg6[%c0_6, %c0_7] : memref<512x256xf32, #tpu.memory_space<vmem>>, vector<512x256xf32>
    tpu.vector_store %arg6[%c0_6, %c0_7], %7 {strides = array<i32>} : memref<512x256xf32, #tpu.memory_space<vmem>>, vector<512x256xf32>,
    %c0_i32_8 = arith.constant 0 : i32
    %9 = arith.cmpi eq, %arg1, %c0_i32_8 : i32
    %10 = arith.extui %9 : i1 to i32
    %c0_i32_9 = arith.constant 0 : i32
    %11 = arith.cmpi ne, %10, %c0_i32_9 : i32
    scf.if %11 {
      %c0_10 = arith.constant 0 : index
      %c0_11 = arith.constant 0 : index
      %12 = vector.load %arg6[%c0_10, %c0_11] : memref<512x256xf32, #tpu.memory_space<vmem>>, vector<512x256xf32>
      %c0_12 = arith.constant 0 : index
      %c0_13 = arith.constant 0 : index
      %13 = vector.load %arg4[%c0_12, %c0_13] : memref<512x256xf32, #tpu.memory_space<vmem>>, vector<512x256xf32>
      %cst_14 = arith.constant 0.899999976 : f32
      %14 = vector.broadcast %cst_14 : f32 to vector<512x256xf32>
      %15 = arith.mulf %14, %12 : vector<512x256xf32>
      %cst_15 = arith.constant 1.000000e-01 : f32
      %16 = vector.broadcast %cst_15 : f32 to vector<512x256xf32>
      %17 = arith.mulf %16, %13 : vector<512x256xf32>
      %18 = arith.addf %15, %17 : vector<512x256xf32>
      %c0_16 = arith.constant 0 : index
      %c0_17 = arith.constant 0 : index
      %19 = vector.load %arg5[%c0_16, %c0_17] : memref<256x256xf32, #tpu.memory_space<vmem>>, vector<256x256xf32>
      %cst_18 = arith.constant dense<0.000000e+00> : vector<512x256xf32>
      %20 = tpu.matmul %18, %19, %cst_18 {dimension_numbers = #tpu.dot_dimension_numbers<[1], [0], [0], [1], [0, 0, 1, 1], [], []>} : vector<512x256xf32>, vector<256x256xf32>, vector<512x256xf32> -> vector<512x256xf32>
      %cst_19 = arith.constant 0.405465096 : f32
      %21 = vector.broadcast %cst_19 : f32 to vector<512x256xf32>
      %22 = arith.mulf %21, %20 : vector<512x256xf32>
      %cst_20 = arith.constant 0.594534874 : f32
      %23 = vector.broadcast %cst_20 : f32 to vector<512x256xf32>
      %24 = arith.mulf %23, %18 : vector<512x256xf32>
      %25 = arith.addf %22, %24 : vector<512x256xf32>
      %c0_21 = arith.constant 0 : index
      %c0_22 = arith.constant 0 : index
      %26 = vector.load %arg6[%c0_21, %c0_22] : memref<512x256xf32, #tpu.memory_space<vmem>>, vector<512x256xf32>
      tpu.vector_store %arg6[%c0_21, %c0_22], %25 {strides = array<i32>} : memref<512x256xf32, #tpu.memory_space<vmem>>, vector<512x256xf32>,
    } else {
    }
    return
  }
  func.func @transform_0(%arg0: i32, %arg1: i32) -> (i32, i32) {
    %c0_i32 = arith.constant 0 : i32
    return %arg0, %arg1 : i32, i32
  }
  func.func @transform_1(%arg0: i32, %arg1: i32) -> (i32, i32) {
    %c0_i32 = arith.constant 0 : i32
    %c0_i32_0 = arith.constant 0 : i32
    return %arg1, %c0_i32 : i32, i32
  }
  func.func @transform_2(%arg0: i32, %arg1: i32) -> (i32, i32) {
    %c0_i32 = arith.constant 0 : i32
    %c0_i32_0 = arith.constant 0 : i32
    return %arg0, %c0_i32 : i32, i32
  }
  func.func @transform_3(%arg0: i32, %arg1: i32) -> (i32, i32) {
    %c0_i32 = arith.constant 0 : i32
    %c0_i32_0 = arith.constant 0 : i32
    %c0_i32_1 = arith.constant 0 : i32
    return %c0_i32, %c0_i32_0 : i32, i32
  }
  func.func @transform_4(%arg0: i32, %arg1: i32) -> (i32, i32) {
    %c0_i32 = arith.constant 0 : i32
    %c0_i32_0 = arith.constant 0 : i32
    return %arg0, %c0_i32 : i32, i32
  }
}

</mosaic_0001>

<bundles_post_ra>
// kernel: tpu_custom_call.1
= control target key start
LH: loop header
LB: loop body
LE: loop exit
PB: predicated region body
PF: predicated region fallthrough
CT: control target
= control target key end

     0   :  { %s8439_s0 = inlined_call_operand.hbm [shape: f32[1024,1024], index: 0, kind: input, shape index: {}]   ;;  %s8440_s1 = inlined_call_operand.hbm [shape: f32[1024,256], index: 1, kind: input, shape index: {}]   ;;  %s8441_s2 = inlined_call_operand.hbm [shape: f32[1024,256], index: 2, kind: input, shape index: {}]   ;;  %s8442_s3 = inlined_call_operand.hbm [shape: f32[256,256], index: 3, kind: input, shape index: {}]   ;;  %s8443_s4 = inlined_call_operand.hbm [shape: f32[1024,256], index: 4, kind: output, shape index: {}]  }
   0x1   :  { %8530 = sst [smem:[#allocation106_spill]] %s8439_s0 }
   0x2   :  { %8531 = sst [smem:[#allocation107_spill]] %s8440_s1 }
   0x3   :  { %9 = vsyncpa [#allocation3], 0 }
   0x4   :  { %11 = vsyncpa [#allocation3 + $0x1], 0 }
   0x5   :  { %12 = vsyncpa [#allocation6], 0 }
   0x6   :  { %13 = vsyncpa [#allocation4], 0 }
   0x7   :  { %15 = vsyncpa [#allocation4 + $0x1], 0  ;;  %s6313_s15 = smov 0   ;;  %s6315_s16 = smov 0  }
   0x8   :  { %s6317_s17 = smov 0   ;;  %s6319_s18 = smov 0  }
   0x9   :  { %s6321_s19 = smov 0   ;;  %s6323_s20 = smov 0  }
   0xa LB: > { %8532 = sst [smem:[#allocation15_spill]] %s6275_s20  ;;  %s6344_s21 = sadd.s32 4294967295, %s6275_s20   ;;  %s6275_s20 = sphi %s6323_s20, %s21_s20   ;;  %s6271_s19 = sphi %s6321_s19, %s8874_s19   ;;  %s6267_s18 = sphi %s6319_s18, %s8873_s18   ;;  %s6263_s17 = sphi %s6317_s17, %s8872_s17   ;;  %s6259_s16 = sphi %s6315_s16, %s8871_s16   ;;  %s6255_s15 = sphi %s6313_s15, %s8870_s15  }
   0xb   : > { %s5203_s22 = sadd.s32 4294967294, %s6275_s20   ;;  %p55_p0 = scmp.ne.s32.totalorder %s6259_s16, %s6255_s15 }
   0xc   : > { %p8444_p1 = scmp.eq.s32.totalorder %s6344_s21, 0  ;;  %p158_p3 = scmp.eq.s32.totalorder %s5203_s22, 1 }
   0xd   : > { %p5204_p5 = scmp.ge.s32.totalorder %s6275_s20, 1  ;;  %p165_p7 = scmp.lt.s32.totalorder %s6275_s20, 3 }
   0xe   : > { %p6353_p4 = por %p8444_p1, %p55_p0  ;;  %p6358_p6 = por %p158_p3, %p55_p0 }
   0xf   : > { %p6363_p8 = pnand %p5204_p5, %p165_p7  ;;  %s6277_s26 = smov [#allocation5]  }
  0x10   : > { %s8533_s23 = scalar_select %p6353_p4, 1, 0 }
  0x11   : > { %s8534_s24 = scalar_select %p6358_p6, 1, 0 }
  0x12   : > { %s8535_s25 = scalar_select %p6363_p8, 1, 0 }
  0x13   : > { %s181_s27 = sshll.u32 %s6277_s26, 4  ;;  %p5984_p9 = pneg %p6363_p8  ;;  %s182_s27 = int_to_ptr.vmem [resolvable:$true] %s181_s27 }
  0x14   : > { %s33_s29 = sadd.s32 1, %s6271_s19  ;;  %s8537_s1 = sld [smem:[#allocation107_spill]] }
  0x15   : > { %p6372_p11 = pnand %p5984_p9, %p8444_p1 }
  0x17   : > { %p8451_p13 = pneg %p6372_p11 }
  0x1a   : > { %s6065_s6 = scalar_lea.hbm %s8537_s1, 32768 }
  0x1b   : > { %p6066_p12 = scmp.ne.s32.totalorder %s8537_s1, %s6065_s6  ;;  %p6072_p5 = scmp.lt.u32.totalorder %s6065_s6, %s8537_s1 }
  0x1d   : > { %p6068_p0 = pnand %p8451_p13, %p6066_p12 }
  0x1f   : > { %p6069_p3 = pneg %p6068_p0 }
  0x21   : > { %p6074_p7 = pnand %p6072_p5, %p6069_p3 }
  0x23   : > { %6077 = shalt.err (!%p6074_p7)
}
  0x24   : > { %s6078_s11 = scalar_lea.vmem %s182_s27, 32768  ;;  %p6086_p2 = scmp.lt.s32.totalorder %s182_s27, %s182_s27 }
  0x25   : > { %p6079_p9 = scmp.ne.s32.totalorder %s182_s27, %s6078_s11  ;;  %p6087_p6 = scmp.lt.s32.totalorder %s6078_s11, %s6078_s11 }
  0x27   : > { %p6081_p10 = pnand %p6079_p9, %p8451_p13  ;;  %p6088_p4 = por %p6087_p6, %p6086_p2 }
  0x29   : > { %p6082_p1 = pneg %p6081_p10 }
  0x2b   : > { %p6089_p8 = pnand %p6088_p4, %p6082_p1 }
  0x2d   : > { %6092 = shalt.err (!%p6089_p8)
}
  0x2e   : > { %s8447_s12 = smov 256   ;;  %s8449_s13 = smov 16  }
  0x2f   : > { %5987 = dma.hbm_to_vmem [thread:$0]  (!%p6372_p11), %s8537_s1, 32768, %s182_s27, [#allocation6], %s8447_s12, %s8447_s12, %s8449_s13  }
  0x30   : > { %p35_p1 = scmp.ge.s32.totalorder %s33_s29, 2  ;;  %s42_s26 = sadd.s32 1, %s6263_s17 }
  0x31   : > { %p49_p2 = scmp.ne.s32.totalorder %s6263_s17, %s6259_s16  ;;  %p50_p4 = scmp.eq.s32.totalorder %s6275_s20, 0 }
  0x32   : > { %s8876_s29 = smov (%p35_p1, %s33_s29), 0  ;;  %p8540_p8 = scmp.eq.s32.totalorder %s6344_s21, 1 }
  0x33   : > { %8538 = sst [smem:[#allocation16_spill]] %s8876_s29  ;;  %p6408_p6 = por %p50_p4, %p49_p2 }
  0x34   : > { %p6414_p10 = por %p8540_p8, %p49_p2  ;;  %s37_s6 = ssub.s32 %s6271_s19, %s8876_s29 }
  0x35   : > { %p6004_p12 = scmp.lt.s32.totalorder %s6275_s20, 2  ;;  %p40_p0 = scmp.eq.s32.totalorder %s37_s6, 0 }
  0x36   : > { %s8541_s5 = scalar_select %p6414_p10, 1, 0 }
  0x37   : > { %s208_s27 = sand.u32 1, %s6275_s20   ;;  %s210_s7 = sand.u32 1, %s6263_s17  }
  0x38   : > { %s6424_s8 = scalar_select %p40_p0, %s6263_s17, %s42_s26  }
  0x39   : > { %s5208_s9 = sshll.u32 %s210_s7, 12  ;;  %s5229_s10 = sshll.u32 %s6271_s19, 16 }
  0x3a   : > { %8542 = sst [smem:[#allocation17_spill]] %s6424_s8  ;;  %s8543_s0 = sld [smem:[#allocation106_spill]] }
  0x3b   : > { %s212_s12 = scalar_lea.vmem [#allocation2], %s5208_s9  ;;  %p6436_p3 = pnand %p6004_p12, %p6408_p6 }
  0x3c   : > { %s222_s13 = sshll.u32 %s212_s12, 4  ;;  %s6442_s26 = scalar_lea.sflag [#allocation3], %s208_s27  ;;  %s6440_s13 = int_to_ptr.vmem [resolvable:$true] %s222_s13 }
  0x3d   : > { %s8544_s6 = scalar_select %p6436_p3, 1, 0 }
  0x3e   : > { %p8456_p7 = pneg %p6436_p3 }
  0x40   : > { %s6432_s22 = scalar_lea.hbm %s8543_s0, %s5229_s10  ;;  %s6098_s9 = scalar_lea.hbm %s8543_s0, 131072 }
  0x41   : > { %s6093_s11 = scalar_lea.hbm %s6432_s22, 65536  ;;  %p6099_p2 = scmp.lt.u32.totalorder %s6432_s22, %s8543_s0 }
  0x42   : > { %p6094_p5 = scmp.ne.s32.totalorder %s6432_s22, %s6093_s11  ;;  %p6100_p4 = scmp.lt.u32.totalorder %s6098_s9, %s6093_s11 }
  0x43   : > { %p6102_p8 = scmp.lt.u32.totalorder %s6093_s11, %s6432_s22 }
  0x44   : > { %p6096_p9 = pnand %p8456_p7, %p6094_p5  ;;  %p6101_p6 = por %p6100_p4, %p6099_p2 }
  0x46   : > { %p6097_p1 = pneg %p6096_p9  ;;  %p6103_p12 = por %p6102_p8, %p6101_p6 }
  0x48   : > { %p6104_p0 = pnand %p6103_p12, %p6097_p1 }
  0x4a   : > { %6107 = shalt.err (!%p6104_p0)
}
  0x4b   : > { %s6108_s27 = scalar_lea.vmem %s6440_s13, 65536  ;;  %s6280_s12 = smov [#allocation2]  }
  0x4c   : > { %p6109_p5 = scmp.ne.s32.totalorder %s6440_s13, %s6108_s27  ;;  %s6113_s30 = sshll.u32 %s6280_s12, 4  ;;  %s6114_s30 = int_to_ptr.vmem [resolvable:$false] %s6113_s30 }
  0x4d   : > { %s6115_s10 = scalar_lea.vmem %s6114_s30, 131072  ;;  %p6116_p10 = scmp.lt.s32.totalorder %s6440_s13, %s6114_s30 }
  0x4e   : > { %p6111_p9 = pnand %p6109_p5, %p8456_p7  ;;  %p6117_p2 = scmp.lt.s32.totalorder %s6115_s10, %s6108_s27 }
  0x50   : > { %p6112_p13 = pneg %p6111_p9  ;;  %p6118_p4 = por %p6117_p2, %p6116_p10 }
  0x52   : > { %p6119_p6 = pnand %p6118_p4, %p6112_p13 }
  0x54   : > { %6122 = shalt.err (!%p6119_p6)
}
  0x55   : > { %s6281_s11 = smov 1024   ;;  %s6282_s9 = smov 64  }
  0x56   : > { %5994 = dma.hbm_to_vmem [thread:$0]  (!%p6436_p3), %s6432_s22, 65536, %s6440_s13, %s6442_s26, %s6281_s11, %s6281_s11, %s6282_s9  }
  0x57   : > { %s5212_s14 = sshll.u32 %s210_s7, 10  ;;  %s6283_s12 = smov [#allocation8]  }
  0x58   : > { %s194_s0 = sshll.u32 %s6283_s12, 4  ;;  %s236_s1 = scalar_lea.vmem [#allocation7], %s5212_s14  ;;  %s195_s0 = int_to_ptr.vmem [resolvable:$true] %s194_s0 }
  0x59   : > { %s244_s30 = sshll.u32 %s236_s1, 4  ;;  %s6123_s29 = scalar_lea.hbm %s8442_s3, 8192  ;;  %s6496_s30 = int_to_ptr.vmem [resolvable:$true] %s244_s30 }
  0x5a   : > { %p6124_p13 = scmp.ne.s32.totalorder %s8442_s3, %s6123_s29  ;;  %p8545_p10 = pneg %p6372_p11 }
  0x5b   : > { %p6130_p12 = scmp.lt.u32.totalorder %s6123_s29, %s8442_s3 }
  0x5c   : > { %p6126_p1 = pnand %p6124_p13, %p8545_p10 }
  0x5e   : > { %p6127_p8 = pneg %p6126_p1 }
  0x60   : > { %p6132_p0 = pnand %p6130_p12, %p6127_p8 }
  0x62   : > { %6135 = shalt.err (!%p6132_p0)
}
  0x63   : > { %s6136_s1 = scalar_lea.vmem %s195_s0, 8192  ;;  %p8546_p9 = pmov %p8545_p10 }
  0x64   : > { %p6137_p5 = scmp.ne.s32.totalorder %s195_s0, %s6136_s1  ;;  %p6144_p6 = scmp.lt.s32.totalorder %s195_s0, %s195_s0 }
  0x65   : > { %p6145_p7 = scmp.lt.s32.totalorder %s6136_s1, %s6136_s1 }
  0x66   : > { %p6139_p2 = pnand %p6137_p5, %p8546_p9 }
  0x67   : > { %p6146_p3 = por %p6145_p7, %p6144_p6 }
  0x68   : > { %p6140_p4 = pneg %p6139_p2 }
  0x6a   : > { %p6147_p10 = pnand %p6146_p3, %p6140_p4 }
  0x6c   : > { %6150 = shalt.err (!%p6147_p10)
}
  0x6d   : > { %s8547_s20 = smov 16   ;;  %s8548_s7 = smov 256  }
  0x6e   : > { %5990 = dma.hbm_to_vmem [thread:$0]  (!%p6372_p11), %s8442_s3, 8192, %s195_s0, [#allocation6], %s8548_s7, %s8548_s7, %s8547_s20  }
  0x6f   : > { %s5231_s11 = sshll.u32 %s6271_s19, 14  ;;  %p8549_p7 = scmp.ne.s32.totalorder %s8544_s6, 0 }
  0x70   : > { %s6501_s12 = scalar_lea.hbm %s8441_s2, %s5231_s11  ;;  %s6156_s10 = scalar_lea.hbm %s8441_s2, 32768 }
  0x71   : > { %s6151_s28 = scalar_lea.hbm %s6501_s12, 16384  ;;  %p8550_p13 = pneg %p8549_p7 }
  0x72   : > { %p6152_p3 = scmp.ne.s32.totalorder %s6501_s12, %s6151_s28  ;;  %p6157_p11 = scmp.lt.u32.totalorder %s6501_s12, %s8441_s2 }
  0x73   : > { %p6158_p12 = scmp.lt.u32.totalorder %s6156_s10, %s6151_s28  ;;  %p6160_p5 = scmp.lt.u32.totalorder %s6151_s28, %s6501_s12 }
  0x74   : > { %p6154_p1 = pnand %p6152_p3, %p8550_p13 }
  0x75   : > { %p6159_p0 = por %p6158_p12, %p6157_p11 }
  0x76   : > { %p6155_p8 = pneg %p6154_p1 }
  0x77   : > { %p6161_p9 = por %p6160_p5, %p6159_p0 }
  0x79   : > { %p6162_p2 = pnand %p6161_p9, %p6155_p8 }
  0x7b   : > { %6165 = shalt.err (!%p6162_p2)
}
  0x7c   : > { %s6166_s1 = scalar_lea.vmem %s6496_s30, 16384  ;;  %p8551_p6 = pmov %p8550_p13 }
  0x7d   : > { %p6167_p4 = scmp.ne.s32.totalorder %s6496_s30, %s6166_s1  ;;  %s6284_s29 = smov [#allocation7]  }
  0x7e   : > { %s6171_s8 = sshll.u32 %s6284_s29, 4  ;;  %s6172_s8 = int_to_ptr.vmem [resolvable:$false] %s6171_s8 }
  0x7f   : > { %p6169_p10 = pnand %p6167_p4, %p8551_p6  ;;  %s6173_s11 = scalar_lea.vmem %s6172_s8, 32768 }
  0x80   : > { %p6174_p13 = scmp.lt.s32.totalorder %s6496_s30, %s6172_s8  ;;  %p6175_p1 = scmp.lt.s32.totalorder %s6173_s11, %s6166_s1 }
  0x81   : > { %p6170_p3 = pneg %p6169_p10 }
  0x82   : > { %p6176_p11 = por %p6175_p1, %p6174_p13 }
  0x84   : > { %p6177_p12 = pnand %p6176_p11, %p6170_p3 }
  0x86   : > { %6180 = shalt.err (!%p6177_p12)
}
  0x87   : > { %5997 = dma.hbm_to_vmem [thread:$0]  (!%p8549_p7), %s6501_s12, 16384, %s6496_s30, %s6442_s26, %s8548_s7, %s8548_s7, %s8547_s20  }
  0x88   : > { %p8552_p8 = scmp.ne.s32.totalorder %s8535_s25, 0 }
  0x8a   : > { %256 = sbr.rel (%p8552_p8) target bundleno = 1314 (0x522), region = 36 }
  0x91   : > { %s258_s9 = sand.u32 1, %s6344_s21   ;;  %s6534_s14 = sand.u32 1, %s6259_s16  }
  0x92   : > { %s5217_s28 = sshll.u32 %s6534_s14, 12  ;;  %s259_s27 = scalar_lea.sflag [#allocation3], %s258_s9 }
  0x93   : > { %s6537_s6 = scalar_lea.vmem [#allocation2], %s5217_s28  ;;  %p8553_p0 = scmp.ne.s32.totalorder %s8533_s23, 0 }
  0x95   : > { %6234 = dma.done.wait (%p8553_p0), %s259_s27, 65536  }
  0x96   : > { %6236 = vsyncadd (%p8553_p0), %s259_s27, 4294901760  ;;  %p8554_p7 = scmp.eq.s32.totalorder %s6344_s21, 0 }
  0x98   : > { %6238 = dma.done.wait (%p8554_p7), [#allocation6], 32768   ;;  %p8555_p5 = pmov %p8554_p7 }
  0x99   : > { %s5219_s25 = sshll.u32 %s6534_s14, 10 }
  0x9a   : > { %6240 = vsyncadd (%p8555_p5), [#allocation6], 4294934528  ;;  %s6550_s26 = scalar_lea.vmem [#allocation7], %s5219_s25 }
  0x9b   : > { %6242 = dma.done.wait (%p8553_p0), %s259_s27, 16384  }
  0x9c   : > { %6244 = vsyncadd (%p8553_p0), %s259_s27, 4294950912  ;;  %p8556_p9 = pmov %p8555_p5 }
  0x9d   : > { %p8557_p2 = pmov %p8555_p5 }
  0x9e   : > { %6246 = dma.done.wait (%p8556_p9), [#allocation6], 8192  }
  0x9f   : > { %6248 = vsyncadd (%p8557_p2), [#allocation6], 4294959104  ;;  %v1151_v0 = vld [vmem:[#allocation5 + $0x208] sm:$0xff]  ;;  %v1153_v1 = vld [vmem:[#allocation5 + $0x218] sm:$0xff]  ;;  %s8039_s21 = scalar_lea.vmem [#allocation9], %s5219_s25  ;;  %s5233_s23 = sshll.u32 %s6267_s18, 14 }
  0xa0   : > { %v1150_v2 = vld [vmem:[#allocation5 + $0x200] sm:$0xff]  ;;  %v6560_v3 = vpack.c.bf16 %v1153_v1, %v1151_v0  ;;  %v1152_v4 = vld [vmem:[#allocation5 + $0x210] sm:$0xff]  ;;  %v1155_v5 = vld [vmem:[#allocation5 + $0x228] sm:$0xff]  ;;  %s5077_s30 = sshll.u32 %s8039_s21, 4  ;;  %s8386_s12 = scalar_lea.hbm %s8443_s4, %s5233_s23  ;;  %s8388_s30 = int_to_ptr.vmem [resolvable:$true] %s5077_s30 }
  0xa1   : > { %v1157_v6 = vld [vmem:[#allocation5 + $0x238] sm:$0xff]  ;;  %v6562_v7 = vpack.c.bf16 %v1152_v4, %v1150_v2  ;;  %v1154_v9 = vld [vmem:[#allocation5 + $0x220] sm:$0xff]  ;;  %v1156_v10 = vld [vmem:[#allocation5 + $0x230] sm:$0xff]  ;;  %s5063_s18 = scalar_lea.sflag [#allocation4], %s6534_s14  ;;  %s6181_s0 = scalar_lea.vmem %s8388_s30, 16384 }
  0xa2   : > { %v6564_v8 = vpack.c.bf16 %v1157_v6, %v1155_v5  ;;  %v1159_v11 = vld [vmem:[#allocation5 + $0x248] sm:$0xff]  ;;  %5299 = vmatprep.subr.bf16.mxu0 %v6560_v3  ;;  %v1161_v12 = vld [vmem:[#allocation5 + $0x258] sm:$0xff]  ;;  %v6568_v13 = vpack.c.bf16 %v1156_v10, %v1154_v9  ;;  %v1158_v15 = vld [vmem:[#allocation5 + $0x240] sm:$0xff]  ;;  %p6182_p4 = scmp.ne.s32.totalorder %s8388_s30, %s6181_s0  ;;  %p8864_p6 = scmp.ne.s32.totalorder %s8541_s5, 0 }
  0xa3   : > { %5301 = vmatpush1.bf16.msra.mxu0 %v6562_v7  ;;  %v6571_v14 = vpack.c.bf16 %v1161_v12, %v1159_v11  ;;  %v1160_v16 = vld [vmem:[#allocation5 + $0x250] sm:$0xff]  ;;  %v1163_v17 = vld [vmem:[#allocation5 + $0x268] sm:$0xff]  ;;  %v1165_v18 = vld [vmem:[#allocation5 + $0x278] sm:$0xff]  ;;  %s6285_s10 = smov [#allocation9]  }
  0xa4   : > { %5303 = vmatprep.subr.bf16.mxu0 %v6564_v8  ;;  %v6574_v19 = vpack.c.bf16 %v1160_v16, %v1158_v15  ;;  %v6577_v20 = vpack.c.bf16 %v1165_v18, %v1163_v17  ;;  %v1162_v21 = vld [vmem:[#allocation5 + $0x260] sm:$0xff]  ;;  %v1164_v22 = vld [vmem:[#allocation5 + $0x270] sm:$0xff]  ;;  %v1167_v23 = vld [vmem:[#allocation5 + $0x288] sm:$0xff]  ;;  %p6183_p10 = pnand %p6182_p4, %p8864_p6  ;;  %s6185_s13 = sshll.u32 %s6285_s10, 4  ;;  %s6186_s13 = int_to_ptr.vmem [resolvable:$false] %s6185_s13 }
  0xa5   : > { %v1169_v24 = vld [vmem:[#allocation5 + $0x298] sm:$0xff]  ;;  %v6580_v25 = vpack.c.bf16 %v1164_v22, %v1162_v21  ;;  %v1166_v27 = vld [vmem:[#allocation5 + $0x280] sm:$0xff]  ;;  %v1168_v28 = vld [vmem:[#allocation5 + $0x290] sm:$0xff]  ;;  %s6187_s22 = scalar_lea.vmem %s6186_s13, 32768  ;;  %p6188_p13 = scmp.lt.s32.totalorder %s8388_s30, %s6186_s13 }
  0xa6   : > { %v6583_v26 = vpack.c.bf16 %v1169_v24, %v1167_v23  ;;  %v1171_v29 = vld [vmem:[#allocation5 + $0x2a8] sm:$0xff]  ;;  %v1173_v30 = vld [vmem:[#allocation5 + $0x2b8] sm:$0xff]  ;;  %v6586_v31 = vpack.c.bf16 %v1168_v28, %v1166_v27  ;;  %v1170_v33 = vld [vmem:[#allocation5 + $0x2a0] sm:$0xff]  ;;  %p6184_p3 = pneg %p6183_p10  ;;  %p6189_p1 = scmp.lt.s32.totalorder %s6187_s22, %s6181_s0 }
  0xa7   : > { %5305 = vmatpush1.bf16.msra.mxu0 %v6568_v13  ;;  %v6589_v32 = vpack.c.bf16 %v1173_v30, %v1171_v29  ;;  %v1172_v34 = vld [vmem:[#allocation5 + $0x2b0] sm:$0xff]  ;;  %v1175_v35 = vld [vmem:[#allocation5 + $0x2c8] sm:$0xff]  ;;  %v1177_v36 = vld [vmem:[#allocation5 + $0x2d8] sm:$0xff] }
  0xa8   : > { %5307 = vmatprep.subr.bf16.mxu0 %v6571_v14  ;;  %v6592_v37 = vpack.c.bf16 %v1172_v34, %v1170_v33  ;;  %v6595_v38 = vpack.c.bf16 %v1177_v36, %v1175_v35  ;;  %v1174_v39 = vld [vmem:[#allocation5 + $0x2c0] sm:$0xff]  ;;  %v1176_v40 = vld [vmem:[#allocation5 + $0x2d0] sm:$0xff]  ;;  %v577_v41 = vld [vmem:[%s6537_s6 + $0x18] sm:$0xff]  ;;  %p6190_p11 = por %p6189_p1, %p6188_p13 }
  0xa9   : > { %v1179_v42 = vld [vmem:[#allocation5 + $0x2e8] sm:$0xff]  ;;  %v1181_v43 = vld [vmem:[#allocation5 + $0x2f8] sm:$0xff]  ;;  %1855 = vmatprep.mubr.f32.mxu0 %v577_v41  ;;  %v6599_v44 = vpack.c.bf16 %v1176_v40, %v1174_v39  ;;  %v1178_v46 = vld [vmem:[#allocation5 + $0x2e0] sm:$0xff] }
  0xaa   : > { %v6602_v45 = vpack.c.bf16 %v1181_v43, %v1179_v42  ;;  %v1180_v47 = vld [vmem:[#allocation5 + $0x2f0] sm:$0xff]  ;;  %v1183_v48 = vld [vmem:[#allocation5 + $0x308] sm:$0xff]  ;;  %v1185_v49 = vld [vmem:[#allocation5 + $0x318] sm:$0xff]  ;;  %p6191_p12 = pnand %p6190_p11, %p6184_p3 }
  0xab   : > { %5309 = vmatpush1.bf16.msra.mxu0 %v6574_v19  ;;  %v6605_v50 = vpack.c.bf16 %v1180_v47, %v1178_v46  ;;  %v6608_v51 = vpack.c.bf16 %v1185_v49, %v1183_v48  ;;  %v1182_v52 = vld [vmem:[#allocation5 + $0x300] sm:$0xff]  ;;  %v1184_v53 = vld [vmem:[#allocation5 + $0x310] sm:$0xff]  ;;  %v1187_v54 = vld [vmem:[#allocation5 + $0x328] sm:$0xff] }
  0xac   : > { %5311 = vmatprep.subr.bf16.mxu0 %v6577_v20  ;;  %v1189_v55 = vld [vmem:[#allocation5 + $0x338] sm:$0xff]  ;;  %v6611_v56 = vpack.c.bf16 %v1184_v53, %v1182_v52  ;;  %v1186_v58 = vld [vmem:[#allocation5 + $0x320] sm:$0xff]  ;;  %v1188_v59 = vld [vmem:[#allocation5 + $0x330] sm:$0xff] }
  0xad   : > { %v6614_v57 = vpack.c.bf16 %v1189_v55, %v1187_v54  ;;  %v1191_v60 = vld [vmem:[#allocation5 + $0x348] sm:$0xff]  ;;  %v1193_v61 = vld [vmem:[#allocation5 + $0x358] sm:$0xff]  ;;  %v1086_v0 = vld [vmem:[#allocation5] sm:$0xff]  ;;  %v6617_v2 = vpack.c.bf16 %v1188_v59, %v1186_v58 }
  0xae   : > { %v1087_v62 = vld [vmem:[#allocation5 + $0x8] sm:$0xff]  ;;  %v1089_v63 = vld [vmem:[#allocation5 + $0x18] sm:$0xff]  ;;  %v1088_v1 = vld [vmem:[#allocation5 + $0x10] sm:$0xff]  ;;  %v6620_v9 = vpack.c.bf16 %v1193_v61, %v1191_v60 }
  0xaf   : > { %5313 = vmatpush1.bf16.msra.mxu0 %v6580_v25  ;;  %v1190_v4 = vld [vmem:[#allocation5 + $0x340] sm:$0xff]  ;;  %v5234_v5 = vpack.c.bf16 %v1089_v63, %v1087_v62  ;;  %v5236_v6 = vpack.c.bf16 %v1088_v1, %v1086_v0  ;;  %v1192_v10 = vld [vmem:[#allocation5 + $0x350] sm:$0xff]  ;;  %v1195_v11 = vld [vmem:[#allocation5 + $0x368] sm:$0xff] }
  0xb0   : > { %5315 = vmatprep.subr.bf16.mxu0 %v6583_v26  ;;  %v1197_v12 = vld [vmem:[#allocation5 + $0x378] sm:$0xff]  ;;  %v1091_v15 = vld [vmem:[#allocation5 + $0x28] sm:$0xff]  ;;  %v1090_v17 = vld [vmem:[#allocation5 + $0x20] sm:$0xff]  ;;  %v6623_v22 = vpack.c.bf16 %v1192_v10, %v1190_v4 }
  0xb1   : > { %5235 = vmatprep.subr.bf16.mxu1 %v5234_v5  ;;  %v1093_v16 = vld [vmem:[#allocation5 + $0x38] sm:$0xff]  ;;  %v1092_v21 = vld [vmem:[#allocation5 + $0x30] sm:$0xff]  ;;  %v1095_v24 = vld [vmem:[#allocation5 + $0x48] sm:$0xff]  ;;  %v6626_v29 = vpack.c.bf16 %v1197_v12, %v1195_v11 }
  0xb2   : > { %5237 = vmatpush1.bf16.msra.mxu1 %v5236_v6  ;;  %v5238_v18 = vpack.c.bf16 %v1093_v16, %v1091_v15  ;;  %v5240_v23 = vpack.c.bf16 %v1092_v21, %v1090_v17  ;;  %v1097_v27 = vld [vmem:[#allocation5 + $0x58] sm:$0xff]  ;;  %v1094_v28 = vld [vmem:[#allocation5 + $0x40] sm:$0xff]  ;;  %v1196_v33 = vld [vmem:[#allocation5 + $0x370] sm:$0xff] }
  0xb3   : > { %5317 = vmatpush1.bf16.msra.mxu0 %v6586_v31  ;;  %v1194_v30 = vld [vmem:[#allocation5 + $0x360] sm:$0xff]  ;;  %v5242_v34 = vpack.c.bf16 %v1097_v27, %v1095_v24  ;;  %v1096_v35 = vld [vmem:[#allocation5 + $0x50] sm:$0xff]  ;;  %v1199_v36 = vld [vmem:[#allocation5 + $0x388] sm:$0xff] }
  0xb4   : > { %5319 = vmatprep.subr.bf16.mxu0 %v6589_v32  ;;  %5239 = vmatprep.subr.bf16.mxu1 %v5238_v18  ;;  %v1201_v39 = vld [vmem:[#allocation5 + $0x398] sm:$0xff]  ;;  %v5244_v40 = vpack.c.bf16 %v1096_v35, %v1094_v28  ;;  %v1099_v41 = vld [vmem:[#allocation5 + $0x68] sm:$0xff]  ;;  %v6629_v43 = vpack.c.bf16 %v1196_v33, %v1194_v30  ;;  %v1198_v46 = vld [vmem:[#allocation5 + $0x380] sm:$0xff] }
  0xb5   : > { %v1101_v42 = vld [vmem:[#allocation5 + $0x78] sm:$0xff]  ;;  %v1098_v48 = vld [vmem:[#allocation5 + $0x60] sm:$0xff]  ;;  %v1100_v49 = vld [vmem:[#allocation5 + $0x70] sm:$0xff]  ;;  %v6632_v52 = vpack.c.bf16 %v1201_v39, %v1199_v36 }
  0xb6   : > { %5241 = vmatpush1.bf16.msra.mxu1 %v5240_v23  ;;  %v5246_v47 = vpack.c.bf16 %v1101_v42, %v1099_v41  ;;  %v1200_v53 = vld [vmem:[#allocation5 + $0x390] sm:$0xff]  ;;  %v1103_v54 = vld [vmem:[#allocation5 + $0x88] sm:$0xff]  ;;  %v1105_v55 = vld [vmem:[#allocation5 + $0x98] sm:$0xff]  ;;  %v5248_v60 = vpack.c.bf16 %v1100_v49, %v1098_v48 }
  0xb7   : > { %5321 = vmatpush1.bf16.msra.mxu0 %v6592_v37  ;;  %5243 = vmatprep.subr.bf16.mxu1 %v5242_v34  ;;  %v1203_v58 = vld [vmem:[#allocation5 + $0x3a8] sm:$0xff]  ;;  %v1205_v59 = vld [vmem:[#allocation5 + $0x3b8] sm:$0xff]  ;;  %v6635_v61 = vpack.c.bf16 %v1200_v53, %v1198_v46  ;;  %v1202_v62 = vld [vmem:[#allocation5 + $0x3a0] sm:$0xff]  ;;  %v5250_v63 = vpack.c.bf16 %v1105_v55, %v1103_v54 }
  0xb8   : > { %5323 = vmatprep.subr.bf16.mxu0 %v6595_v38  ;;  %v1102_v0 = vld [vmem:[#allocation5 + $0x80] sm:$0xff]  ;;  %v1104_v1 = vld [vmem:[#allocation5 + $0x90] sm:$0xff]  ;;  %v6638_v4 = vpack.c.bf16 %v1205_v59, %v1203_v58  ;;  %v1107_v6 = vld [vmem:[#allocation5 + $0xa8] sm:$0xff] }
  0xb9   : > { %v1204_v5 = vld [vmem:[#allocation5 + $0x3b0] sm:$0xff]  ;;  %v1109_v10 = vld [vmem:[#allocation5 + $0xb8] sm:$0xff]  ;;  %v1207_v11 = vld [vmem:[#allocation5 + $0x3c8] sm:$0xff]  ;;  %v5252_v15 = vpack.c.bf16 %v1104_v1, %v1102_v0 }
  0xba   : > { %5245 = vmatpush1.bf16.msra.mxu1 %v5244_v40  ;;  %v1209_v12 = vld [vmem:[#allocation5 + $0x3d8] sm:$0xff]  ;;  %v6641_v16 = vpack.c.bf16 %v1204_v5, %v1202_v62  ;;  %v1206_v17 = vld [vmem:[#allocation5 + $0x3c0] sm:$0xff]  ;;  %v5254_v18 = vpack.c.bf16 %v1109_v10, %v1107_v6  ;;  %v1108_v23 = vld [vmem:[#allocation5 + $0xb0] sm:$0xff] }
  0xbb   : > { %5325 = vmatpush1.bf16.msra.mxu0 %v6599_v44  ;;  %5247 = vmatprep.subr.bf16.mxu1 %v5246_v47  ;;  %v1106_v21 = vld [vmem:[#allocation5 + $0xa0] sm:$0xff]  ;;  %v6644_v24 = vpack.c.bf16 %v1209_v12, %v1207_v11  ;;  %v1208_v27 = vld [vmem:[#allocation5 + $0x3d0] sm:$0xff]  ;;  %v1111_v28 = vld [vmem:[#allocation5 + $0xc8] sm:$0xff] }
  0xbc   : > { %5327 = vmatprep.subr.bf16.mxu0 %v6602_v45  ;;  %v1113_v30 = vld [vmem:[#allocation5 + $0xd8] sm:$0xff]  ;;  %v1211_v33 = vld [vmem:[#allocation5 + $0x3e8] sm:$0xff]  ;;  %v5256_v35 = vpack.c.bf16 %v1108_v23, %v1106_v21  ;;  %v6647_v36 = vpack.c.bf16 %v1208_v27, %v1206_v17  ;;  %v1210_v39 = vld [vmem:[#allocation5 + $0x3e0] sm:$0xff] }
  0xbd   : > { %v1213_v34 = vld [vmem:[#allocation5 + $0x3f8] sm:$0xff]  ;;  %v5258_v40 = vpack.c.bf16 %v1113_v30, %v1111_v28  ;;  %v1110_v41 = vld [vmem:[#allocation5 + $0xc0] sm:$0xff]  ;;  %v1112_v42 = vld [vmem:[#allocation5 + $0xd0] sm:$0xff] }
  0xbe   : > { %5249 = vmatpush1.bf16.msra.mxu1 %v5248_v60  ;;  %v6650_v46 = vpack.c.bf16 %v1213_v34, %v1211_v33  ;;  %v1212_v47 = vld [vmem:[#allocation5 + $0x3f0] sm:$0xff]  ;;  %v1115_v48 = vld [vmem:[#allocation5 + $0xe8] sm:$0xff]  ;;  %v1117_v49 = vld [vmem:[#allocation5 + $0xf8] sm:$0xff]  ;;  %v5260_v55 = vpack.c.bf16 %v1112_v42, %v1110_v41 }
  0xbf   : > { %5329 = vmatpush1.bf16.msra.mxu0 %v6605_v50  ;;  %5251 = vmatprep.subr.bf16.mxu1 %v5250_v63  ;;  %v1215_v53 = vld [vmem:[#allocation5 + $0x408] sm:$0xff]  ;;  %v1217_v54 = vld [vmem:[#allocation5 + $0x418] sm:$0xff]  ;;  %v6653_v58 = vpack.c.bf16 %v1212_v47, %v1210_v39  ;;  %v5262_v59 = vpack.c.bf16 %v1117_v49, %v1115_v48  ;;  %v1114_v60 = vld [vmem:[#allocation5 + $0xe0] sm:$0xff] }
  0xc0   : > { %5331 = vmatprep.subr.bf16.mxu0 %v6608_v51  ;;  %v1116_v62 = vld [vmem:[#allocation5 + $0xf0] sm:$0xff]  ;;  %v5362_v63 = vpack.c.bf16 %v1217_v54, %v1215_v53  ;;  %v1214_v0 = vld [vmem:[#allocation5 + $0x400] sm:$0xff]  ;;  %v1219_v5 = vld [vmem:[#allocation5 + $0x428] sm:$0xff] }
  0xc1   : > { %v1216_v1 = vld [vmem:[#allocation5 + $0x410] sm:$0xff]  ;;  %v1221_v6 = vld [vmem:[#allocation5 + $0x438] sm:$0xff]  ;;  %v1119_v10 = vld [vmem:[#allocation5 + $0x108] sm:$0xff] }
  0xc2   : > { %5253 = vmatpush1.bf16.msra.mxu1 %v5252_v15  ;;  %v1121_v11 = vld [vmem:[#allocation5 + $0x118] sm:$0xff]  ;;  %v576_v12 = vld [vmem:[%s6537_s6 + $0x10] sm:$0xff]  ;;  %v5264_v15 = vpack.c.bf16 %v1116_v62, %v1114_v60  ;;  %v5364_v17 = vpack.c.bf16 %v1216_v1, %v1214_v0  ;;  %v1118_v21 = vld [vmem:[#allocation5 + $0x100] sm:$0xff]  ;;  %v5366_v27 = vpack.c.bf16 %v1221_v6, %v1219_v5 }
  0xc3   : > { %5333 = vmatpush1.bf16.msra.mxu0 %v6611_v56  ;;  %5255 = vmatprep.subr.bf16.mxu1 %v5254_v18  ;;  %v585_v18 = vld [vmem:[%s6537_s6 + $0x58] sm:$0xff]  ;;  %v1120_v23 = vld [vmem:[#allocation5 + $0x110] sm:$0xff]  ;;  %v1218_v28 = vld [vmem:[#allocation5 + $0x420] sm:$0xff]  ;;  %v5266_v34 = vpack.c.bf16 %v1121_v11, %v1119_v10 }
  0xc4   : > { %5335 = vmatprep.subr.bf16.mxu0 %v6614_v57  ;;  %v1220_v30 = vld [vmem:[#allocation5 + $0x430] sm:$0xff]  ;;  %v1223_v33 = vld [vmem:[#allocation5 + $0x448] sm:$0xff]  ;;  %v5268_v42 = vpack.c.bf16 %v1120_v23, %v1118_v21  ;;  %v593_v47 = vld [vmem:[%s6537_s6 + $0x98] sm:$0xff] }
  0xc5   : > { %v1123_v39 = vld [vmem:[#allocation5 + $0x128] sm:$0xff]  ;;  %v584_v41 = vld [vmem:[%s6537_s6 + $0x50] sm:$0xff]  ;;  %v5368_v48 = vpack.c.bf16 %v1220_v30, %v1218_v28  ;;  %v1122_v49 = vld [vmem:[#allocation5 + $0x120] sm:$0xff] }
  0xc6   : > { %5257 = vmatpush1.bf16.msra.mxu1 %v5256_v35  ;;  %v1225_v35 = vld [vmem:[#allocation5 + $0x458] sm:$0xff]  ;;  %v1124_v53 = vld [vmem:[#allocation5 + $0x130] sm:$0xff]  ;;  %v1227_v60 = vld [vmem:[#allocation5 + $0x468] sm:$0xff] }
  0xc7   : > { %5337 = vmatpush1.bf16.msra.mxu0 %v6617_v2  ;;  %5259 = vmatprep.subr.bf16.mxu1 %v5258_v40  ;;  %v1125_v40 = vld [vmem:[#allocation5 + $0x138] sm:$0xff]  ;;  %v5370_v54 = vpack.c.bf16 %v1225_v35, %v1223_v33  ;;  %v1127_v0 = vld [vmem:[#allocation5 + $0x148] sm:$0xff]  ;;  %v592_v5 = vld [vmem:[%s6537_s6 + $0x90] sm:$0xff]  ;;  %v5272_v6 = vpack.c.bf16 %v1124_v53, %v1122_v49 }
  0xc8   : > { %5339 = vmatprep.subr.bf16.mxu0 %v6620_v9  ;;  %v5270_v62 = vpack.c.bf16 %v1125_v40, %v1123_v39  ;;  %v1129_v1 = vld [vmem:[#allocation5 + $0x158] sm:$0xff]  ;;  %v1228_v21 = vld [vmem:[#allocation5 + $0x470] sm:$0xff]  ;;  %v1231_v23 = vld [vmem:[#allocation5 + $0x488] sm:$0xff] }
  0xc9   : > { %v601_v10 = vld [vmem:[%s6537_s6 + $0xd8] sm:$0xff]  ;;  %v1131_v30 = vld [vmem:[#allocation5 + $0x168] sm:$0xff]  ;;  %v1232_v49 = vld [vmem:[#allocation5 + $0x490] sm:$0xff] }
  0xca   : > { %5261 = vmatpush1.bf16.msra.mxu1 %v5260_v55  ;;  %v1222_v55 = vld [vmem:[#allocation5 + $0x440] sm:$0xff]  ;;  %v1233_v28 = vld [vmem:[#allocation5 + $0x498] sm:$0xff]  ;;  %v1235_v53 = vld [vmem:[#allocation5 + $0x4a8] sm:$0xff] }
  0xcb   : > { %5341 = vmatpush1.bf16.msra.mxu0 %v6623_v22  ;;  %5263 = vmatprep.subr.bf16.mxu1 %v5262_v59  ;;  %v1224_v59 = vld [vmem:[#allocation5 + $0x450] sm:$0xff]  ;;  %v1133_v33 = vld [vmem:[#allocation5 + $0x178] sm:$0xff] }
  0xcc   : > { %5343 = vmatprep.subr.bf16.mxu0 %v6626_v29  ;;  %v5372_v11 = vpack.c.bf16 %v1224_v59, %v1222_v55  ;;  %v609_v35 = vld [vmem:[%s6537_s6 + $0x118] sm:$0xff]  ;;  %v575_v55 = vld [vmem:[%s6537_s6 + $0x8] sm:$0xff] }
  0xcd   : > { %v1237_v59 = vld [vmem:[#allocation5 + $0x4b8] sm:$0xff]  ;;  %1406 = vmatprep.mubr.f32.mxu1 %v575_v55  ;;  %v624_v55 = vld [vmem:[%s6537_s6 + $0x190] sm:$0xff] }
  0xce   : > { %5265 = vmatpush1.bf16.msra.mxu1 %v5264_v15  ;;  %v1128_v15 = vld [vmem:[#allocation5 + $0x150] sm:$0xff] }
  0xcf   : > { %5345 = vmatpush1.bf16.msra.mxu0 %v6629_v43  ;;  %5267 = vmatprep.subr.bf16.mxu1 %v5266_v34  ;;  %v600_v34 = vld [vmem:[%s6537_s6 + $0xd0] sm:$0xff] }
  0xd0   : > { %5347 = vmatprep.subr.bf16.mxu0 %v6632_v52 }
  0xd2   : > { %5269 = vmatpush1.bf16.msra.mxu1 %v5268_v42  ;;  %v1130_v42 = vld [vmem:[#allocation5 + $0x160] sm:$0xff] }
  0xd3   : > { %5349 = vmatpush1.bf16.msra.mxu0 %v6635_v61  ;;  %5271 = vmatprep.subr.bf16.mxu1 %v5270_v62  ;;  %v1137_v62 = vld [vmem:[#allocation5 + $0x198] sm:$0xff] }
  0xd4   : > { %5351 = vmatprep.subr.bf16.mxu0 %v6638_v4 }
  0xd6   : > { %5273 = vmatpush1.bf16.msra.mxu1 %v5272_v6  ;;  %v1134_v6 = vld [vmem:[#allocation5 + $0x180] sm:$0xff] }
  0xd7   : > { %5353 = vmatpush1.bf16.msra.mxu0 %v6641_v16 }
  0xd8   : > { %5355 = vmatprep.subr.bf16.mxu0 %v6644_v24 }
  0xdb   : > { %5357 = vmatpush1.bf16.msra.mxu0 %v6647_v36 }
  0xdc   : > { %5359 = vmatprep.subr.bf16.mxu0 %v6650_v46 }
  0xdf   : > { %5361 = vmatpush1.bf16.msra.mxu0 %v6653_v58 }
  0xe0   : > { %5363 = vmatprep.subr.bf16.mxu0 %v5362_v63  ;;  %v1229_v63 = vld [vmem:[#allocation5 + $0x478] sm:$0xff] }
  0xe2   : > { %1856 = vmatmul.mubr.f32.vlgmr.msra.gmra.mrb[0].mxu0 %v576_v12  ;;  %v1126_v12 = vld [vmem:[#allocation5 + $0x140] sm:$0xff] }
  0xe3   : > { %5365 = vmatpush1.bf16.msra.mxu0 %v5364_v17  ;;  %1861 = vmatprep.mubr.f32.mxu0 %v585_v18  ;;  %v5374_v17 = vpack.c.bf16 %v1229_v63, %v1227_v60  ;;  %v1226_v18 = vld [vmem:[#allocation5 + $0x460] sm:$0xff]  ;;  %v5276_v39 = vpack.c.bf16 %v1128_v15, %v1126_v12  ;;  %v1135_v60 = vld [vmem:[#allocation5 + $0x188] sm:$0xff]  ;;  %v608_v63 = vld [vmem:[%s6537_s6 + $0x110] sm:$0xff] }
  0xe4   : > { %5367 = vmatprep.subr.bf16.mxu0 %v5366_v27  ;;  %v5274_v27 = vpack.c.bf16 %v1129_v1, %v1127_v0  ;;  %v5376_v40 = vpack.c.bf16 %v1228_v21, %v1226_v18  ;;  %v617_v1 = vld [vmem:[%s6537_s6 + $0x158] sm:$0xff]  ;;  %v1234_v12 = vld [vmem:[#allocation5 + $0x4a0] sm:$0xff]  ;;  %v1236_v15 = vld [vmem:[#allocation5 + $0x4b0] sm:$0xff]  ;;  %v5282_v18 = vpack.c.bf16 %v1137_v62, %v1135_v60 }
  0xe5   : > { %v1241_v21 = vld [vmem:[#allocation5 + $0x4d8] sm:$0xff] }
  0xe6   : > { %1862 = vmatmul.mubr.f32.gmra.mrb[2].mxu0 %v584_v41  ;;  %v1230_v41 = vld [vmem:[#allocation5 + $0x480] sm:$0xff]  ;;  %5275 = vmatprep.subr.bf16.mxu1 %v5274_v27  ;;  %v1141_v27 = vld [vmem:[#allocation5 + $0x1b8] sm:$0xff] }
  0xe7   : > { %1867 = vmatprep.mubr.f32.mxu0 %v593_v47  ;;  %5369 = vmatpush1.bf16.msra.mxu0 %v5368_v48  ;;  %v1132_v47 = vld [vmem:[#allocation5 + $0x170] sm:$0xff]  ;;  %v5378_v48 = vpack.c.bf16 %v1233_v28, %v1231_v23  ;;  %v1139_v23 = vld [vmem:[#allocation5 + $0x1a8] sm:$0xff]  ;;  %v633_v60 = vld [vmem:[%s6537_s6 + $0x1d8] sm:$0xff] }
  0xe8   : > { %5371 = vmatprep.subr.bf16.mxu0 %v5370_v54  ;;  %v5278_v54 = vpack.c.bf16 %v1133_v33, %v1131_v30  ;;  %5277 = vmatpush1.bf16.msra.mxu1 %v5276_v39  ;;  %v5280_v0 = vpack.c.bf16 %v1132_v47, %v1130_v42  ;;  %v616_v28 = vld [vmem:[%s6537_s6 + $0x150] sm:$0xff]  ;;  %v625_v33 = vld [vmem:[%s6537_s6 + $0x198] sm:$0xff]  ;;  %v1243_v47 = vld [vmem:[#allocation5 + $0x4e8] sm:$0xff] }
  0xe9   : > { %v1140_v39 = vld [vmem:[#allocation5 + $0x1b0] sm:$0xff] }
  0xea   : > { %1868 = vmatmul.mubr.f32.gmra.mrb[4].mxu0 %v592_v5  ;;  %v5380_v5 = vpack.c.bf16 %v1232_v49, %v1230_v41  ;;  %5279 = vmatprep.subr.bf16.mxu1 %v5278_v54  ;;  %v1238_v41 = vld [vmem:[#allocation5 + $0x4c0] sm:$0xff]  ;;  %v1240_v42 = vld [vmem:[#allocation5 + $0x4d0] sm:$0xff]  ;;  %v1245_v49 = vld [vmem:[#allocation5 + $0x4f8] sm:$0xff] }
  0xeb   : > { %1873 = vmatprep.mubr.f32.mxu0 %v601_v10  ;;  %5373 = vmatpush1.bf16.msra.mxu0 %v5372_v11  ;;  %v1136_v10 = vld [vmem:[#allocation5 + $0x190] sm:$0xff]  ;;  %v5382_v11 = vpack.c.bf16 %v1237_v59, %v1235_v53  ;;  %v1143_v53 = vld [vmem:[#allocation5 + $0x1c8] sm:$0xff]  ;;  %v1145_v54 = vld [vmem:[#allocation5 + $0x1d8] sm:$0xff]  ;;  %v5388_v62 = vpack.c.bf16 %v1240_v42, %v1238_v41 }
  0xec   : > { %5375 = vmatprep.subr.bf16.mxu0 %v5374_v17  ;;  %v1239_v17 = vld [vmem:[#allocation5 + $0x4c8] sm:$0xff]  ;;  %5281 = vmatpush1.bf16.msra.mxu1 %v5280_v0  ;;  %v5284_v30 = vpack.c.bf16 %v1136_v10, %v1134_v6  ;;  %v1144_v0 = vld [vmem:[#allocation5 + $0x1d0] sm:$0xff]  ;;  %v1253_v41 = vld [vmem:[#allocation5 + $0x538] sm:$0xff] }
  0xed   : > { %5283 = vmatprep.subr.bf16.mxu1 %v5282_v18  ;;  %v1244_v6 = vld [vmem:[#allocation5 + $0x4f0] sm:$0xff]  ;;  %v1247_v10 = vld [vmem:[#allocation5 + $0x508] sm:$0xff] }
  0xee   : > { %1874 = vmatmul.mubr.f32.gmra.mrb[6].mxu0 %v600_v34  ;;  %v5384_v34 = vpack.c.bf16 %v1236_v15, %v1234_v12  ;;  %v1249_v12 = vld [vmem:[#allocation5 + $0x518] sm:$0xff]  ;;  %v1147_v15 = vld [vmem:[#allocation5 + $0x1e8] sm:$0xff] }
  0xef   : > { %1879 = vmatprep.mubr.f32.mxu0 %v609_v35  ;;  %5377 = vmatpush1.bf16.msra.mxu0 %v5376_v40  ;;  %v1138_v35 = vld [vmem:[#allocation5 + $0x1a0] sm:$0xff]  ;;  %v5386_v40 = vpack.c.bf16 %v1241_v21, %v1239_v17  ;;  %v1149_v17 = vld [vmem:[#allocation5 + $0x1f8] sm:$0xff]  ;;  %v632_v21 = vld [vmem:[%s6537_s6 + $0x1d0] sm:$0xff] }
  0xf0   : > { %5379 = vmatprep.subr.bf16.mxu0 %v5378_v48  ;;  %v5286_v48 = vpack.c.bf16 %v1141_v27, %v1139_v23  ;;  %5285 = vmatpush1.bf16.msra.mxu1 %v5284_v30  ;;  %v5288_v59 = vpack.c.bf16 %v1140_v39, %v1138_v35  ;;  %v1146_v27 = vld [vmem:[#allocation5 + $0x1e0] sm:$0xff]  ;;  %v641_v30 = vld [vmem:[%s6537_s6 + $0x218] sm:$0xff]  ;;  %v1248_v35 = vld [vmem:[#allocation5 + $0x510] sm:$0xff]  ;;  %v5294_v39 = vpack.c.bf16 %v1149_v17, %v1147_v15 }
  0xf1   : > { %v1261_v15 = vld [vmem:[#allocation5 + $0x578] sm:$0xff]  ;;  %v582_v17 = vld [vmem:[%s6537_s6 + $0x40] sm:$0xff] }
  0xf2   : > { %1880 = vmatmul.mubr.f32.gmra.mrb[8].mxu0 %v608_v63  ;;  %v1142_v63 = vld [vmem:[#allocation5 + $0x1c0] sm:$0xff]  ;;  %5287 = vmatprep.subr.bf16.mxu1 %v5286_v48 }
  0xf3   : > { %1885 = vmatprep.mubr.f32.mxu0 %v617_v1  ;;  %5381 = vmatpush1.bf16.msra.mxu0 %v5380_v5  ;;  %v5390_v1 = vpack.c.bf16 %v1245_v49, %v1243_v47  ;;  %v1242_v5 = vld [vmem:[#allocation5 + $0x4e0] sm:$0xff]  ;;  %v5292_v18 = vpack.c.bf16 %v1144_v0, %v1142_v63  ;;  %v640_v47 = vld [vmem:[%s6537_s6 + $0x210] sm:$0xff]  ;;  %v649_v49 = vld [vmem:[%s6537_s6 + $0x258] sm:$0xff] }
  0xf4   : > { %5383 = vmatprep.subr.bf16.mxu0 %v5382_v11  ;;  %v5290_v11 = vpack.c.bf16 %v1145_v54, %v1143_v53  ;;  %5289 = vmatpush1.bf16.msra.mxu1 %v5288_v59  ;;  %v5392_v23 = vpack.c.bf16 %v1244_v6, %v1242_v5  ;;  %v1250_v54 = vld [vmem:[#allocation5 + $0x520] sm:$0xff]  ;;  %v1255_v59 = vld [vmem:[#allocation5 + $0x548] sm:$0xff]  ;;  %v648_v63 = vld [vmem:[%s6537_s6 + $0x250] sm:$0xff] }
  0xf5   : > { %v657_v5 = vld [vmem:[%s6537_s6 + $0x298] sm:$0xff] }
  0xf6   : > { %1886 = vmatmul.mubr.f32.gmra.mrb[10].mxu0 %v616_v28  ;;  %v1148_v28 = vld [vmem:[#allocation5 + $0x1f0] sm:$0xff]  ;;  %5291 = vmatprep.subr.bf16.mxu1 %v5290_v11 }
  0xf7   : > { %1891 = vmatprep.mubr.f32.mxu0 %v625_v33  ;;  %5385 = vmatpush1.bf16.msra.mxu0 %v5384_v34  ;;  %v5394_v33 = vpack.c.bf16 %v1249_v12, %v1247_v10  ;;  %v1246_v34 = vld [vmem:[#allocation5 + $0x500] sm:$0xff]  ;;  %v5296_v42 = vpack.c.bf16 %v1148_v28, %v1146_v27  ;;  %v1256_v11 = vld [vmem:[#allocation5 + $0x550] sm:$0xff]  ;;  %v1259_v12 = vld [vmem:[#allocation5 + $0x568] sm:$0xff] }
  0xf8   : > { %5387 = vmatprep.subr.bf16.mxu0 %v5386_v40  ;;  %v1251_v40 = vld [vmem:[#allocation5 + $0x528] sm:$0xff]  ;;  %5293 = vmatpush1.bf16.msra.mxu1 %v5292_v18  ;;  %v5396_v48 = vpack.c.bf16 %v1248_v35, %v1246_v34  ;;  %v1254_v10 = vld [vmem:[#allocation5 + $0x540] sm:$0xff]  ;;  %v656_v18 = vld [vmem:[%s6537_s6 + $0x290] sm:$0xff]  ;;  %v5406_v28 = vpack.c.bf16 %v1261_v15, %v1259_v12 }
  0xf9   : > { %v5398_v53 = vpack.c.bf16 %v1253_v41, %v1251_v40  ;;  %5295 = vmatprep.subr.bf16.mxu1 %v5294_v39  ;;  %v665_v27 = vld [vmem:[%s6537_s6 + $0x2d8] sm:$0xff]  ;;  %v590_v35 = vld [vmem:[%s6537_s6 + $0x80] sm:$0xff]  ;;  %v664_v39 = vld [vmem:[%s6537_s6 + $0x2d0] sm:$0xff] }
  0xfa   : > { %1892 = vmatmul.mubr.f32.gmra.mrb[12].mxu0 %v624_v55  ;;  %v1252_v55 = vld [vmem:[#allocation5 + $0x530] sm:$0xff]  ;;  %v1265_v34 = vld [vmem:[#allocation5 + $0x598] sm:$0xff]  ;;  %v599_v41 = vld [vmem:[%s6537_s6 + $0xc8] sm:$0xff] }
  0xfb   : > { %1897 = vmatprep.mubr.f32.mxu0 %v633_v60  ;;  %5389 = vmatpush1.bf16.msra.mxu0 %v5388_v62  ;;  %v1257_v60 = vld [vmem:[#allocation5 + $0x558] sm:$0xff]  ;;  %v574_v62 = vld [vmem:[%s6537_s6] sm:$0xff]  ;;  %v5400_v0 = vpack.c.bf16 %v1252_v55, %v1250_v54  ;;  %v672_v54 = vld [vmem:[%s6537_s6 + $0x310] sm:$0xff] }
  0xfc   : > { %5391 = vmatprep.subr.bf16.mxu0 %v5390_v1  ;;  %5297 = vmatpush1.bf16.msra.mxu1 %v5296_v42  ;;  %v583_v1 = vld [vmem:[%s6537_s6 + $0x48] sm:$0xff]  ;;  %v5402_v6 = vpack.c.bf16 %v1257_v60, %v1255_v59  ;;  %v673_v42 = vld [vmem:[%s6537_s6 + $0x318] sm:$0xff]  ;;  %v1272_v15 = vld [vmem:[#allocation5 + $0x5d0] sm:$0xff] }
  0xfd   : > { %5554 = vmatprep.subr.bf16.mxu1 %v6560_v3  ;;  %v1260_v3 = vld [vmem:[#allocation5 + $0x570] sm:$0xff]  ;;  %v607_v59 = vld [vmem:[%s6537_s6 + $0x108] sm:$0xff]  ;;  %v681_v60 = vld [vmem:[%s6537_s6 + $0x358] sm:$0xff] }
  0xfe   : > { %1898 = vmatmul.mubr.f32.gmra.mrb[14].mxu0 %v632_v21  ;;  %v5404_v21 = vpack.c.bf16 %v1256_v11, %v1254_v10  ;;  %v615_v10 = vld [vmem:[%s6537_s6 + $0x148] sm:$0xff]  ;;  %v689_v11 = vld [vmem:[%s6537_s6 + $0x398] sm:$0xff] }
  0xff   : > { %1903 = vmatprep.mubr.f32.mxu0 %v641_v30  ;;  %5393 = vmatpush1.bf16.msra.mxu0 %v5392_v23  ;;  %v591_v23 = vld [vmem:[%s6537_s6 + $0x88] sm:$0xff]  ;;  %v1258_v30 = vld [vmem:[#allocation5 + $0x560] sm:$0xff] }
 0x100   : > { %5395 = vmatprep.subr.bf16.mxu0 %v5394_v33  ;;  %1407 = vmatmul.mubr.f32.vlgmr.msra.gmra.mrb[0].mxu1 %v574_v62  ;;  %v1263_v33 = vld [vmem:[#allocation5 + $0x588] sm:$0xff]  ;;  %v5408_v40 = vpack.c.bf16 %v1260_v3, %v1258_v30  ;;  %v1276_v3 = vld [vmem:[#allocation5 + $0x5f0] sm:$0xff] }
 0x101   : > { %1412 = vmatprep.mubr.f32.mxu1 %v583_v1  ;;  %5570 = vmatpush1.bf16.msra.mxu1 %v6562_v7  ;;  %v1262_v7 = vld [vmem:[#allocation5 + $0x580] sm:$0xff] }
 0x102   : > { %1904 = vmatmul.mubr.f32.gmra.mrb[16].mxu0 %v640_v47  ;;  %5555 = vmatprep.subr.bf16.mxu1 %v6564_v8  ;;  %v5410_v47 = vpack.c.bf16 %v1265_v34, %v1263_v33  ;;  %v1267_v8 = vld [vmem:[#allocation5 + $0x5a8] sm:$0xff]  ;;  %v606_v1 = vld [vmem:[%s6537_s6 + $0x100] sm:$0xff]  ;;  %v1281_v33 = vld [vmem:[#allocation5 + $0x618] sm:$0xff] }
 0x103   : > { %1909 = vmatprep.mubr.f32.mxu0 %v649_v49  ;;  %5397 = vmatpush1.bf16.msra.mxu0 %v5396_v48  ;;  %v1264_v48 = vld [vmem:[#allocation5 + $0x590] sm:$0xff]  ;;  %v1269_v49 = vld [vmem:[#allocation5 + $0x5b8] sm:$0xff]  ;;  %v622_v34 = vld [vmem:[%s6537_s6 + $0x180] sm:$0xff] }
 0x104   : > { %5399 = vmatprep.subr.bf16.mxu0 %v5398_v53  ;;  %1413 = vmatmul.mubr.f32.gmra.mrb[2].mxu1 %v582_v17  ;;  %v598_v53 = vld [vmem:[%s6537_s6 + $0xc0] sm:$0xff]  ;;  %v5412_v55 = vpack.c.bf16 %v1264_v48, %v1262_v7  ;;  %v5414_v62 = vpack.c.bf16 %v1269_v49, %v1267_v8  ;;  %v1277_v17 = vld [vmem:[#allocation5 + $0x5f8] sm:$0xff]  ;;  %v647_v48 = vld [vmem:[%s6537_s6 + $0x248] sm:$0xff] }
 0x105   : > { %1418 = vmatprep.mubr.f32.mxu1 %v591_v23  ;;  %5571 = vmatpush1.bf16.msra.mxu1 %v6568_v13  ;;  %v1266_v13 = vld [vmem:[#allocation5 + $0x5a0] sm:$0xff]  ;;  %v713_v7 = vld [vmem:[%s6537_s6 + $0x458] sm:$0xff]  ;;  %v655_v49 = vld [vmem:[%s6537_s6 + $0x288] sm:$0xff] }
 0x106   : > { %1910 = vmatmul.mubr.f32.gmra.mrb[18].mxu0 %v648_v63  ;;  %5556 = vmatprep.subr.bf16.mxu1 %v6571_v14  ;;  %v1268_v63 = vld [vmem:[#allocation5 + $0x5b0] sm:$0xff]  ;;  %v1271_v14 = vld [vmem:[#allocation5 + $0x5c8] sm:$0xff]  ;;  %v721_v8 = vld [vmem:[%s6537_s6 + $0x498] sm:$0xff] }
 0x107   : > { %1915 = vmatprep.mubr.f32.mxu0 %v657_v5  ;;  %5401 = vmatpush1.bf16.msra.mxu0 %v5400_v0  ;;  %v1273_v0 = vld [vmem:[#allocation5 + $0x5d8] sm:$0xff]  ;;  %v680_v5 = vld [vmem:[%s6537_s6 + $0x350] sm:$0xff] }
 0x108   : > { %5403 = vmatprep.subr.bf16.mxu0 %v5402_v6  ;;  %1419 = vmatmul.mubr.f32.gmra.mrb[4].mxu1 %v590_v35  ;;  %v5416_v6 = vpack.c.bf16 %v1268_v63, %v1266_v13  ;;  %v5418_v12 = vpack.c.bf16 %v1273_v0, %v1271_v14  ;;  %v696_v35 = vld [vmem:[%s6537_s6 + $0x3d0] sm:$0xff]  ;;  %v753_v13 = vld [vmem:[%s6537_s6 + $0x598] sm:$0xff]  ;;  %v687_v63 = vld [vmem:[%s6537_s6 + $0x388] sm:$0xff] }
 0x109   : > { %1424 = vmatprep.mubr.f32.mxu1 %v599_v41  ;;  %5572 = vmatpush1.bf16.msra.mxu1 %v6574_v19  ;;  %v1270_v19 = vld [vmem:[#allocation5 + $0x5c0] sm:$0xff]  ;;  %v705_v41 = vld [vmem:[%s6537_s6 + $0x418] sm:$0xff]  ;;  %v695_v0 = vld [vmem:[%s6537_s6 + $0x3c8] sm:$0xff] }
 0x10a   : > { %1916 = vmatmul.mubr.f32.gmra.mrb[20].mxu0 %v656_v18  ;;  %5557 = vmatprep.subr.bf16.mxu1 %v6577_v20  ;;  %v1275_v20 = vld [vmem:[#allocation5 + $0x5e8] sm:$0xff]  ;;  %v614_v18 = vld [vmem:[%s6537_s6 + $0x140] sm:$0xff]  ;;  %v5420_v23 = vpack.c.bf16 %v1272_v15, %v1270_v19  ;;  %v761_v14 = vld [vmem:[%s6537_s6 + $0x5d8] sm:$0xff] }
 0x10b   : > { %1921 = vmatprep.mubr.f32.mxu0 %v665_v27  ;;  %5405 = vmatpush1.bf16.msra.mxu0 %v5404_v21  ;;  %v688_v21 = vld [vmem:[%s6537_s6 + $0x390] sm:$0xff]  ;;  %v623_v27 = vld [vmem:[%s6537_s6 + $0x188] sm:$0xff]  ;;  %v5422_v30 = vpack.c.bf16 %v1277_v17, %v1275_v20  ;;  %v793_v19 = vld [vmem:[%s6537_s6 + $0x6d8] sm:$0xff] }
 0x10c   : > { %5407 = vmatprep.subr.bf16.mxu0 %v5406_v28  ;;  %1425 = vmatmul.mubr.f32.gmra.mrb[6].mxu1 %v598_v53  ;;  %v697_v28 = vld [vmem:[%s6537_s6 + $0x3d8] sm:$0xff]  ;;  %v718_v15 = vld [vmem:[%s6537_s6 + $0x480] sm:$0xff]  ;;  %v727_v20 = vld [vmem:[%s6537_s6 + $0x4c8] sm:$0xff] }
 0x10d   : > { %1430 = vmatprep.mubr.f32.mxu1 %v607_v59  ;;  %5573 = vmatpush1.bf16.msra.mxu1 %v6580_v25  ;;  %v1274_v25 = vld [vmem:[#allocation5 + $0x5e0] sm:$0xff]  ;;  %v729_v53 = vld [vmem:[%s6537_s6 + $0x4d8] sm:$0xff]  ;;  %v671_v59 = vld [vmem:[%s6537_s6 + $0x308] sm:$0xff] }
 0x10e   : > { %1922 = vmatmul.mubr.f32.gmra.mrb[22].mxu0 %v664_v39  ;;  %5558 = vmatprep.subr.bf16.mxu1 %v6583_v26  ;;  %v1279_v26 = vld [vmem:[#allocation5 + $0x608] sm:$0xff]  ;;  %v5424_v39 = vpack.c.bf16 %v1276_v3, %v1274_v25  ;;  %v801_v17 = vld [vmem:[%s6537_s6 + $0x718] sm:$0xff] }
 0x10f   : > { %1927 = vmatprep.mubr.f32.mxu0 %v673_v42  ;;  %5409 = vmatpush1.bf16.msra.mxu0 %v5408_v40  ;;  %v631_v40 = vld [vmem:[%s6537_s6 + $0x1c8] sm:$0xff]  ;;  %v704_v42 = vld [vmem:[%s6537_s6 + $0x410] sm:$0xff]  ;;  %v817_v3 = vld [vmem:[%s6537_s6 + $0x798] sm:$0xff] }
 0x110   : > { %5411 = vmatprep.subr.bf16.mxu0 %v5410_v47  ;;  %1431 = vmatmul.mubr.f32.gmra.mrb[8].mxu1 %v606_v1  ;;  %v639_v47 = vld [vmem:[%s6537_s6 + $0x208] sm:$0xff]  ;;  %v769_v1 = vld [vmem:[%s6537_s6 + $0x618] sm:$0xff] }
 0x111   : > { %1436 = vmatprep.mubr.f32.mxu1 %v615_v10  ;;  %5574 = vmatpush1.bf16.msra.mxu1 %v6586_v31  ;;  %v5426_v31 = vpack.c.bf16 %v1281_v33, %v1279_v26  ;;  %v711_v10 = vld [vmem:[%s6537_s6 + $0x448] sm:$0xff]  ;;  %v742_v26 = vld [vmem:[%s6537_s6 + $0x540] sm:$0xff]  ;;  %v816_v33 = vld [vmem:[%s6537_s6 + $0x790] sm:$0xff] }
 0x112   : > { %1928 = vmatmul.mubr.f32.gmra.mrb[24].mxu0 %v672_v54  ;;  %5559 = vmatprep.subr.bf16.mxu1 %v6589_v32  ;;  %v630_v32 = vld [vmem:[%s6537_s6 + $0x1c0] sm:$0xff]  ;;  %v663_v54 = vld [vmem:[%s6537_s6 + $0x2c8] sm:$0xff] }
 0x113   : > { %1933 = vmatprep.mubr.f32.mxu0 %v681_v60  ;;  %5413 = vmatpush1.bf16.msra.mxu0 %v5412_v55  ;;  %v737_v55 = vld [vmem:[%s6537_s6 + $0x518] sm:$0xff]  ;;  %v743_v25 = vld [vmem:[%s6537_s6 + $0x548] sm:$0xff] }
 0x114   : > { %5415 = vmatprep.subr.bf16.mxu0 %v5414_v62  ;;  %1437 = vmatmul.mubr.f32.gmra.mrb[10].mxu1 %v614_v18  ;;  %v745_v60 = vld [vmem:[%s6537_s6 + $0x558] sm:$0xff]  ;;  %v679_v62 = vld [vmem:[%s6537_s6 + $0x348] sm:$0xff]  ;;  %v726_v18 = vld [vmem:[%s6537_s6 + $0x4c0] sm:$0xff] }
 0x115   : > { %1442 = vmatprep.mubr.f32.mxu1 %v623_v27  ;;  %5575 = vmatpush1.bf16.msra.mxu1 %v6592_v37  ;;  %v638_v37 = vld [vmem:[%s6537_s6 + $0x200] sm:$0xff]  ;;  %v809_v27 = vld [vmem:[%s6537_s6 + $0x758] sm:$0xff] }
 0x116   : > { %1934 = vmatmul.mubr.f32.gmra.mrb[26].mxu0 %v680_v5  ;;  %5560 = vmatprep.subr.bf16.mxu1 %v6595_v38  ;;  %v712_v38 = vld [vmem:[%s6537_s6 + $0x450] sm:$0xff]  ;;  %v703_v5 = vld [vmem:[%s6537_s6 + $0x408] sm:$0xff] }
 0x117   : > { %1939 = vmatprep.mubr.f32.mxu0 %v689_v11  ;;  %5417 = vmatpush1.bf16.msra.mxu0 %v5416_v6  ;;  %v777_v6 = vld [vmem:[%s6537_s6 + $0x658] sm:$0xff] }
 0x118   : > { %5419 = vmatprep.subr.bf16.mxu0 %v5418_v12  ;;  %1443 = vmatmul.mubr.f32.gmra.mrb[12].mxu1 %v622_v34  ;;  %v785_v11 = vld [vmem:[%s6537_s6 + $0x698] sm:$0xff]  ;;  %v719_v12 = vld [vmem:[%s6537_s6 + $0x488] sm:$0xff] }
 0x119   : > { %1448 = vmatprep.mubr.f32.mxu1 %v631_v40  ;;  %5576 = vmatpush1.bf16.msra.mxu1 %v6599_v44  ;;  %v646_v44 = vld [vmem:[%s6537_s6 + $0x240] sm:$0xff]  ;;  %v751_v34 = vld [vmem:[%s6537_s6 + $0x588] sm:$0xff]  ;;  %v824_v40 = vld [vmem:[%s6537_s6 + $0x7d0] sm:$0xff] }
 0x11a   : > { %1940 = vmatmul.mubr.f32.gmra.mrb[28].mxu0 %v688_v21  ;;  %5561 = vmatprep.subr.bf16.mxu1 %v6602_v45  ;;  %v720_v45 = vld [vmem:[%s6537_s6 + $0x490] sm:$0xff] }
 0x11b   : > { %1945 = vmatprep.mubr.f32.mxu0 %v697_v28  ;;  %5421 = vmatpush1.bf16.msra.mxu0 %v5420_v23  ;;  %v800_v21 = vld [vmem:[%s6537_s6 + $0x710] sm:$0xff]  ;;  %v735_v23 = vld [vmem:[%s6537_s6 + $0x508] sm:$0xff]  ;;  %v734_v28 = vld [vmem:[%s6537_s6 + $0x500] sm:$0xff] }
 0x11c   : > { %5423 = vmatprep.subr.bf16.mxu0 %v5422_v30  ;;  %1449 = vmatmul.mubr.f32.gmra.mrb[14].mxu1 %v630_v32  ;;  %v808_v30 = vld [vmem:[%s6537_s6 + $0x750] sm:$0xff]  ;;  %v1278_v32 = vld [vmem:[#allocation5 + $0x600] sm:$0xff] }
 0x11d   : > { %1454 = vmatprep.mubr.f32.mxu1 %v639_v47  ;;  %5577 = vmatpush1.bf16.msra.mxu1 %v6605_v50  ;;  %v654_v50 = vld [vmem:[%s6537_s6 + $0x280] sm:$0xff]  ;;  %v1283_v47 = vld [vmem:[#allocation5 + $0x628] sm:$0xff] }
 0x11e   : > { %1946 = vmatmul.mubr.f32.gmra.mrb[30].mxu0 %v696_v35  ;;  %5562 = vmatprep.subr.bf16.mxu1 %v6608_v51  ;;  %v728_v51 = vld [vmem:[%s6537_s6 + $0x4d0] sm:$0xff]  ;;  %v825_v35 = vld [vmem:[%s6537_s6 + $0x7d8] sm:$0xff] }
 0x11f   : > { %1951 = vmatprep.mubr.f32.mxu0 %v705_v41  ;;  %5425 = vmatpush1.bf16.msra.mxu0 %v5424_v39  ;;  %v750_v39 = vld [vmem:[%s6537_s6 + $0x580] sm:$0xff]  ;;  %v759_v41 = vld [vmem:[%s6537_s6 + $0x5c8] sm:$0xff] }
 0x120   : > { %5427 = vmatprep.subr.bf16.mxu0 %v5426_v31  ;;  %1455 = vmatmul.mubr.f32.gmra.mrb[16].mxu1 %v638_v37  ;;  %v579_v31 = vld [vmem:[%s6537_s6 + $0x28] sm:$0xff]  ;;  %v758_v37 = vld [vmem:[%s6537_s6 + $0x5c0] sm:$0xff] }
 0x121   : > { %1460 = vmatprep.mubr.f32.mxu1 %v647_v48  ;;  %5578 = vmatpush1.bf16.msra.mxu1 %v6611_v56  ;;  %v662_v56 = vld [vmem:[%s6537_s6 + $0x2c0] sm:$0xff] }
 0x122   : > { %1952 = vmatmul.mubr.f32.gmra.mrb[32].mxu0 %v704_v42  ;;  %5563 = vmatprep.subr.bf16.mxu1 %v6614_v57  ;;  %v736_v57 = vld [vmem:[%s6537_s6 + $0x510] sm:$0xff] }
 0x123   : > { %1957 = vmatprep.mubr.f32.mxu0 %v713_v7  ;;  %v1280_v42 = vld [vmem:[#allocation5 + $0x610] sm:$0xff]  ;;  %v1285_v7 = vld [vmem:[#allocation5 + $0x638] sm:$0xff] }
 0x124   : > { %1461 = vmatmul.mubr.f32.gmra.mrb[18].mxu1 %v646_v44  ;;  %v5428_v48 = vpack.c.bf16 %v1280_v42, %v1278_v32  ;;  %v587_v44 = vld [vmem:[%s6537_s6 + $0x68] sm:$0xff]  ;;  %v806_v32 = vld [vmem:[%s6537_s6 + $0x740] sm:$0xff] }
 0x125   : > { %1466 = vmatprep.mubr.f32.mxu1 %v655_v49  ;;  %5579 = vmatpush1.bf16.msra.mxu1 %v6617_v2  ;;  %v670_v2 = vld [vmem:[%s6537_s6 + $0x300] sm:$0xff] }
 0x126   : > { %1958 = vmatmul.mubr.f32.gmra.mrb[34].mxu0 %v712_v38  ;;  %5564 = vmatprep.subr.bf16.mxu1 %v6620_v9  ;;  %v744_v9 = vld [vmem:[%s6537_s6 + $0x550] sm:$0xff]  ;;  %v578_v38 = vld [vmem:[%s6537_s6 + $0x20] sm:$0xff] }
 0x127   : > { %1963 = vmatprep.mubr.f32.mxu0 %v721_v8  ;;  %v767_v8 = vld [vmem:[%s6537_s6 + $0x608] sm:$0xff]  ;;  %v1282_v49 = vld [vmem:[#allocation5 + $0x620] sm:$0xff] }
 0x128   : > { %1467 = vmatmul.mubr.f32.gmra.mrb[20].mxu1 %v654_v50  ;;  %v1287_v50 = vld [vmem:[#allocation5 + $0x648] sm:$0xff]  ;;  %v626_v42 = vld [vmem:[%s6537_s6 + $0x1a0] sm:$0xff] }
 0x129   : > { %1472 = vmatprep.mubr.f32.mxu1 %v663_v54  ;;  %5580 = vmatpush1.bf16.msra.mxu1 %v6623_v22  ;;  %v678_v22 = vld [vmem:[%s6537_s6 + $0x340] sm:$0xff] }
 0x12a   : > { %1964 = vmatmul.mubr.f32.gmra.mrb[36].mxu0 %v720_v45  ;;  %5565 = vmatprep.subr.bf16.mxu1 %v6626_v29  ;;  %v752_v29 = vld [vmem:[%s6537_s6 + $0x590] sm:$0xff]  ;;  %v5430_v45 = vpack.c.bf16 %v1285_v7, %v1283_v47  ;;  %v766_v54 = vld [vmem:[%s6537_s6 + $0x600] sm:$0xff]  ;;  %v815_v47 = vld [vmem:[%s6537_s6 + $0x788] sm:$0xff] }
 0x12b   : > { %1969 = vmatprep.mubr.f32.mxu0 %v729_v53  ;;  %v1284_v53 = vld [vmem:[#allocation5 + $0x630] sm:$0xff] }
 0x12c   : > { %1473 = vmatmul.mubr.f32.gmra.mrb[22].mxu1 %v662_v56  ;;  %v5432_v56 = vpack.c.bf16 %v1284_v53, %v1282_v49  ;;  %v814_v49 = vld [vmem:[%s6537_s6 + $0x780] sm:$0xff] }
 0x12d   : > { %1478 = vmatprep.mubr.f32.mxu1 %v671_v59  ;;  %5581 = vmatpush1.bf16.msra.mxu1 %v6629_v43  ;;  %v686_v43 = vld [vmem:[%s6537_s6 + $0x380] sm:$0xff]  ;;  %v595_v59 = vld [vmem:[%s6537_s6 + $0xa8] sm:$0xff] }
 0x12e   : > { %1970 = vmatmul.mubr.f32.gmra.mrb[38].mxu0 %v728_v51  ;;  %5566 = vmatprep.subr.bf16.mxu1 %v6632_v52  ;;  %v760_v52 = vld [vmem:[%s6537_s6 + $0x5d0] sm:$0xff]  ;;  %v1289_v51 = vld [vmem:[#allocation5 + $0x658] sm:$0xff]  ;;  %v634_v53 = vld [vmem:[%s6537_s6 + $0x1e0] sm:$0xff] }
 0x12f   : > { %1975 = vmatprep.mubr.f32.mxu0 %v737_v55  ;;  %v586_v55 = vld [vmem:[%s6537_s6 + $0x60] sm:$0xff] }
 0x130   : > { %1479 = vmatmul.mubr.f32.gmra.mrb[24].mxu1 %v670_v2  ;;  %v1286_v2 = vld [vmem:[#allocation5 + $0x640] sm:$0xff] }
 0x131   : > { %1484 = vmatprep.mubr.f32.mxu1 %v679_v62  ;;  %5582 = vmatpush1.bf16.msra.mxu1 %v6635_v61  ;;  %v694_v61 = vld [vmem:[%s6537_s6 + $0x3c0] sm:$0xff]  ;;  %v1291_v62 = vld [vmem:[#allocation5 + $0x668] sm:$0xff] }
 0x132   : > { %1976 = vmatmul.mubr.f32.gmra.mrb[40].mxu0 %v736_v57  ;;  %5567 = vmatprep.subr.bf16.mxu1 %v6638_v4  ;;  %v768_v4 = vld [vmem:[%s6537_s6 + $0x610] sm:$0xff]  ;;  %v775_v57 = vld [vmem:[%s6537_s6 + $0x648] sm:$0xff] }
 0x133   : > { %1981 = vmatprep.mubr.f32.mxu0 %v745_v60  ;;  %v5434_v60 = vpack.c.bf16 %v1289_v51, %v1287_v50  ;;  %v823_v50 = vld [vmem:[%s6537_s6 + $0x7c8] sm:$0xff] }
 0x134   : > { %1485 = vmatmul.mubr.f32.gmra.mrb[26].mxu1 %v678_v22  ;;  %v774_v22 = vld [vmem:[%s6537_s6 + $0x640] sm:$0xff] }
 0x135   : > { %1490 = vmatprep.mubr.f32.mxu1 %v687_v63  ;;  %5583 = vmatpush1.bf16.msra.mxu1 %v6641_v16  ;;  %v702_v16 = vld [vmem:[%s6537_s6 + $0x400] sm:$0xff] }
 0x136   : > { %1982 = vmatmul.mubr.f32.gmra.mrb[42].mxu0 %v744_v9  ;;  %5568 = vmatprep.subr.bf16.mxu1 %v6644_v24  ;;  %v776_v24 = vld [vmem:[%s6537_s6 + $0x650] sm:$0xff] }
 0x137   : > { %1987 = vmatprep.mubr.f32.mxu0 %v753_v13  ;;  %v1288_v9 = vld [vmem:[#allocation5 + $0x650] sm:$0xff]  ;;  %v1293_v13 = vld [vmem:[#allocation5 + $0x678] sm:$0xff] }
 0x138   : > { %1491 = vmatmul.mubr.f32.gmra.mrb[28].mxu1 %v686_v43  ;;  %v5436_v63 = vpack.c.bf16 %v1288_v9, %v1286_v2  ;;  %v603_v43 = vld [vmem:[%s6537_s6 + $0xe8] sm:$0xff]  ;;  %v822_v2 = vld [vmem:[%s6537_s6 + $0x7c0] sm:$0xff] }
 0x139   : > { %1496 = vmatprep.mubr.f32.mxu1 %v695_v0  ;;  %5584 = vmatpush1.bf16.msra.mxu1 %v6647_v36  ;;  %v710_v36 = vld [vmem:[%s6537_s6 + $0x440] sm:$0xff] }
 0x13a   : > { %1988 = vmatmul.mubr.f32.gmra.mrb[44].mxu0 %v752_v29  ;;  %5569 = vmatprep.subr.bf16.mxu1 %v6650_v46  ;;  %v784_v46 = vld [vmem:[%s6537_s6 + $0x690] sm:$0xff]  ;;  %v594_v29 = vld [vmem:[%s6537_s6 + $0xa0] sm:$0xff] }
 0x13b   : > { %1993 = vmatprep.mubr.f32.mxu0 %v761_v14  ;;  %v783_v14 = vld [vmem:[%s6537_s6 + $0x688] sm:$0xff]  ;;  %v1290_v0 = vld [vmem:[#allocation5 + $0x660] sm:$0xff] }
 0x13c   : > { %1497 = vmatmul.mubr.f32.gmra.mrb[30].mxu1 %v694_v61  ;;  %v1295_v61 = vld [vmem:[#allocation5 + $0x688] sm:$0xff]  ;;  %v642_v9 = vld [vmem:[%s6537_s6 + $0x220] sm:$0xff] }
 0x13d   : > { %1502 = vmatprep.mubr.f32.mxu1 %v703_v5  ;;  %5585 = vmatpush1.bf16.msra.mxu1 %v6653_v58  ;;  %v792_v58 = vld [vmem:[%s6537_s6 + $0x6d0] sm:$0xff]  ;;  %v782_v5 = vld [vmem:[%s6537_s6 + $0x680] sm:$0xff] }
 0x13e   : > { %1994 = vmatmul.mubr.f32.gmra.mrb[46].mxu0 %v760_v52  ;;  %v5438_v52 = vpack.c.bf16 %v1293_v13, %v1291_v62  ;;  %v831_v62 = vld [vmem:[%s6537_s6 + $0x808] sm:$0xff] }
 0x13f   : > { %1999 = vmatprep.mubr.f32.mxu0 %v769_v1  ;;  %v1292_v1 = vld [vmem:[#allocation5 + $0x670] sm:$0xff] }
 0x140   : > { %1503 = vmatmul.mubr.f32.gmra.mrb[32].mxu1 %v702_v16  ;;  %v5440_v16 = vpack.c.bf16 %v1292_v1, %v1290_v0  ;;  %v1321_v0 = vld [vmem:[#allocation5 + $0x758] sm:$0xff]  ;;  %v650_v1 = vld [vmem:[%s6537_s6 + $0x260] sm:$0xff] }
 0x141   : > { %1508 = vmatprep.mubr.f32.mxu1 %v711_v10  ;;  %v611_v10 = vld [vmem:[%s6537_s6 + $0x128] sm:$0xff] }
 0x142   : > { %2000 = vmatmul.mubr.f32.gmra.mrb[48].mxu0 %v768_v4  ;;  %v1297_v4 = vld [vmem:[#allocation5 + $0x698] sm:$0xff] }
 0x143   : > { %2005 = vmatprep.mubr.f32.mxu0 %v777_v6  ;;  %v602_v6 = vld [vmem:[%s6537_s6 + $0xe0] sm:$0xff] }
 0x144   : > { %1509 = vmatmul.mubr.f32.gmra.mrb[34].mxu1 %v710_v36  ;;  %v1294_v36 = vld [vmem:[#allocation5 + $0x680] sm:$0xff] }
 0x145   : > { %1514 = vmatprep.mubr.f32.mxu1 %v719_v12  ;;  %v1299_v12 = vld [vmem:[#allocation5 + $0x6a8] sm:$0xff] }
 0x146   : > { %2006 = vmatmul.mubr.f32.gmra.mrb[50].mxu0 %v776_v24  ;;  %v791_v24 = vld [vmem:[%s6537_s6 + $0x6c8] sm:$0xff] }
 0x147   : > { %2011 = vmatprep.mubr.f32.mxu0 %v785_v11  ;;  %v5442_v11 = vpack.c.bf16 %v1297_v4, %v1295_v61  ;;  %v839_v61 = vld [vmem:[%s6537_s6 + $0x848] sm:$0xff] }
 0x148   : > { %1515 = vmatmul.mubr.f32.gmra.mrb[36].mxu1 %v718_v15  ;;  %v790_v15 = vld [vmem:[%s6537_s6 + $0x6c0] sm:$0xff] }
 0x149   : > { %1520 = vmatprep.mubr.f32.mxu1 %v727_v20 }
 0x14a   : > { %2012 = vmatmul.mubr.f32.gmra.mrb[52].mxu0 %v784_v46  ;;  %v1296_v46 = vld [vmem:[#allocation5 + $0x690] sm:$0xff] }
 0x14b   : > { %2017 = vmatprep.mubr.f32.mxu0 %v793_v19  ;;  %v1301_v19 = vld [vmem:[#allocation5 + $0x6b8] sm:$0xff]  ;;  %v5444_v20 = vpack.c.bf16 %v1296_v46, %v1294_v36  ;;  %v847_v36 = vld [vmem:[%s6537_s6 + $0x888] sm:$0xff] }
 0x14c   : > { %1521 = vmatmul.mubr.f32.gmra.mrb[38].mxu1 %v726_v18  ;;  %v619_v18 = vld [vmem:[%s6537_s6 + $0x168] sm:$0xff] }
 0x14d   : > { %1526 = vmatprep.mubr.f32.mxu1 %v735_v23  ;;  %v1298_v23 = vld [vmem:[#allocation5 + $0x6a0] sm:$0xff] }
 0x14e   : > { %2018 = vmatmul.mubr.f32.gmra.mrb[54].mxu0 %v792_v58  ;;  %v610_v58 = vld [vmem:[%s6537_s6 + $0x120] sm:$0xff] }
 0x14f   : > { %2023 = vmatprep.mubr.f32.mxu0 %v801_v17  ;;  %v799_v17 = vld [vmem:[%s6537_s6 + $0x708] sm:$0xff] }
 0x150   : > { %1527 = vmatmul.mubr.f32.gmra.mrb[40].mxu1 %v734_v28  ;;  %v1303_v28 = vld [vmem:[#allocation5 + $0x6c8] sm:$0xff] }
 0x151   : > { %1532 = vmatprep.mubr.f32.mxu1 %v743_v25  ;;  %v798_v25 = vld [vmem:[%s6537_s6 + $0x700] sm:$0xff] }
 0x152   : > { %2024 = vmatmul.mubr.f32.gmra.mrb[56].mxu0 %v800_v21  ;;  %v5446_v21 = vpack.c.bf16 %v1301_v19, %v1299_v12  ;;  %v667_v12 = vld [vmem:[%s6537_s6 + $0x2e8] sm:$0xff]  ;;  %v846_v19 = vld [vmem:[%s6537_s6 + $0x880] sm:$0xff] }
 0x153   : > { %2029 = vmatprep.mubr.f32.mxu0 %v809_v27  ;;  %v1300_v27 = vld [vmem:[#allocation5 + $0x6b0] sm:$0xff] }
 0x154   : > { %1533 = vmatmul.mubr.f32.gmra.mrb[42].mxu1 %v742_v26  ;;  %v5448_v26 = vpack.c.bf16 %v1300_v27, %v1298_v23  ;;  %v683_v23 = vld [vmem:[%s6537_s6 + $0x368] sm:$0xff]  ;;  %v862_v27 = vld [vmem:[%s6537_s6 + $0x900] sm:$0xff] }
 0x155   : > { %1538 = vmatprep.mubr.f32.mxu1 %v751_v34  ;;  %v627_v34 = vld [vmem:[%s6537_s6 + $0x1a8] sm:$0xff] }
 0x156   : > { %2030 = vmatmul.mubr.f32.gmra.mrb[58].mxu0 %v808_v30  ;;  %v1305_v30 = vld [vmem:[#allocation5 + $0x6d8] sm:$0xff] }
 0x157   : > { %2035 = vmatprep.mubr.f32.mxu0 %v817_v3  ;;  %v618_v3 = vld [vmem:[%s6537_s6 + $0x160] sm:$0xff] }
 0x158   : > { %1539 = vmatmul.mubr.f32.gmra.mrb[44].mxu1 %v750_v39  ;;  %v1302_v39 = vld [vmem:[#allocation5 + $0x6c0] sm:$0xff] }
 0x159   : > { %1544 = vmatprep.mubr.f32.mxu1 %v759_v41  ;;  %v1307_v41 = vld [vmem:[#allocation5 + $0x6e8] sm:$0xff] }
 0x15a   : > { %2036 = vmatmul.mubr.f32.gmra.mrb[60].mxu0 %v816_v33  ;;  %v807_v33 = vld [vmem:[%s6537_s6 + $0x748] sm:$0xff] }
 0x15b   : > { %2041 = vmatprep.mubr.f32.mxu0 %v825_v35  ;;  %v5450_v35 = vpack.c.bf16 %v1305_v30, %v1303_v28  ;;  %v1323_v28 = vld [vmem:[#allocation5 + $0x768] sm:$0xff]  ;;  %v1325_v30 = vld [vmem:[#allocation5 + $0x778] sm:$0xff] }
 0x15c   : > { %1545 = vmatmul.mubr.f32.gmra.mrb[46].mxu1 %v758_v37  ;;  %v635_v37 = vld [vmem:[%s6537_s6 + $0x1e8] sm:$0xff] }
 0x15d   : > { %1550 = vmatprep.mubr.f32.mxu1 %v767_v8  ;;  %v1308_v8 = vld [vmem:[#allocation5 + $0x6f0] sm:$0xff] }
 0x15e   : > { %2042 = vmatmul.mubr.f32.gmra.mrb[62].mxu0 %v824_v40  ;;  %v1304_v40 = vld [vmem:[#allocation5 + $0x6d0] sm:$0xff] }
 0x15f   : > { %2304 = vmatprep.mubr.f32.mxu0 %v579_v31  ;;  %v1309_v31 = vld [vmem:[#allocation5 + $0x6f8] sm:$0xff]  ;;  %v5452_v7 = vpack.c.bf16 %v1304_v40, %v1302_v39  ;;  %v870_v40 = vld [vmem:[%s6537_s6 + $0x940] sm:$0xff] }
 0x160   : > { %1551 = vmatmul.mubr.f32.gmra.mrb[48].mxu1 %v766_v54  ;;  %v643_v54 = vld [vmem:[%s6537_s6 + $0x228] sm:$0xff] }
 0x161   : > { %1556 = vmatprep.mubr.f32.mxu1 %v775_v57  ;;  %v1312_v57 = vld [vmem:[#allocation5 + $0x710] sm:$0xff] }
 0x162   : > { %2305 = vmatmul.mubr.f32.vlgmr.msra.gmra.mrb[0].mxu0 %v578_v38  ;;  %v5454_v38 = vpack.c.bf16 %v1309_v31, %v1307_v41  ;;  %v690_v41 = vld [vmem:[%s6537_s6 + $0x3a0] sm:$0xff]  ;;  %v879_v31 = vld [vmem:[%s6537_s6 + $0x988] sm:$0xff] }
 0x163   : > { %5429 = vmatpush1.bf16.msra.mxu0 %v5428_v48  ;;  %2310 = vmatprep.mubr.f32.mxu0 %v587_v44  ;;  %v1306_v48 = vld [vmem:[#allocation5 + $0x6e0] sm:$0xff]  ;;  %v1311_v44 = vld [vmem:[#allocation5 + $0x708] sm:$0xff] }
 0x164   : > { %5431 = vmatprep.subr.bf16.mxu0 %v5430_v45  ;;  %1557 = vmatmul.mubr.f32.gmra.mrb[50].mxu1 %v774_v22  ;;  %v1313_v45 = vld [vmem:[#allocation5 + $0x718] sm:$0xff]  ;;  %v5456_v51 = vpack.c.bf16 %v1308_v8, %v1306_v48  ;;  %v651_v22 = vld [vmem:[%s6537_s6 + $0x268] sm:$0xff]  ;;  %v706_v48 = vld [vmem:[%s6537_s6 + $0x420] sm:$0xff] }
 0x165   : > { %1562 = vmatprep.mubr.f32.mxu1 %v783_v14  ;;  %v1316_v14 = vld [vmem:[#allocation5 + $0x730] sm:$0xff]  ;;  %v895_v8 = vld [vmem:[%s6537_s6 + $0xa08] sm:$0xff] }
 0x166   : > { %2311 = vmatmul.mubr.f32.gmra.mrb[2].mxu0 %v586_v55  ;;  %v5458_v55 = vpack.c.bf16 %v1313_v45, %v1311_v44  ;;  %v715_v44 = vld [vmem:[%s6537_s6 + $0x468] sm:$0xff]  ;;  %v894_v45 = vld [vmem:[%s6537_s6 + $0xa00] sm:$0xff] }
 0x167   : > { %2316 = vmatprep.mubr.f32.mxu0 %v595_v59  ;;  %5433 = vmatpush1.bf16.msra.mxu0 %v5432_v56  ;;  %v1310_v56 = vld [vmem:[#allocation5 + $0x700] sm:$0xff]  ;;  %v1315_v59 = vld [vmem:[#allocation5 + $0x728] sm:$0xff] }
 0x168   : > { %5435 = vmatprep.subr.bf16.mxu0 %v5434_v60  ;;  %1563 = vmatmul.mubr.f32.gmra.mrb[52].mxu1 %v782_v5  ;;  %v1317_v60 = vld [vmem:[#allocation5 + $0x738] sm:$0xff]  ;;  %v5460_v13 = vpack.c.bf16 %v1312_v57, %v1310_v56  ;;  %v659_v5 = vld [vmem:[%s6537_s6 + $0x2a8] sm:$0xff]  ;;  %v1328_v56 = vld [vmem:[#allocation5 + $0x790] sm:$0xff] }
 0x169   : > { %1568 = vmatprep.mubr.f32.mxu1 %v791_v24  ;;  %v1320_v24 = vld [vmem:[#allocation5 + $0x750] sm:$0xff]  ;;  %v723_v57 = vld [vmem:[%s6537_s6 + $0x4a8] sm:$0xff] }
 0x16a   : > { %2317 = vmatmul.mubr.f32.gmra.mrb[4].mxu0 %v594_v29  ;;  %v5462_v29 = vpack.c.bf16 %v1317_v60, %v1315_v59  ;;  %v902_v60 = vld [vmem:[%s6537_s6 + $0xa40] sm:$0xff] }
 0x16b   : > { %2322 = vmatprep.mubr.f32.mxu0 %v603_v43  ;;  %5437 = vmatpush1.bf16.msra.mxu0 %v5436_v63  ;;  %v1314_v63 = vld [vmem:[#allocation5 + $0x720] sm:$0xff] }
 0x16c   : > { %5439 = vmatprep.subr.bf16.mxu0 %v5438_v52  ;;  %1569 = vmatmul.mubr.f32.gmra.mrb[54].mxu1 %v790_v15  ;;  %v830_v43 = vld [vmem:[%s6537_s6 + $0x800] sm:$0xff]  ;;  %v1319_v52 = vld [vmem:[#allocation5 + $0x748] sm:$0xff]  ;;  %v5464_v4 = vpack.c.bf16 %v1316_v14, %v1314_v63 }
 0x16d   : > { %1574 = vmatprep.mubr.f32.mxu1 %v799_v17  ;;  %v666_v15 = vld [vmem:[%s6537_s6 + $0x2e0] sm:$0xff]  ;;  %v739_v63 = vld [vmem:[%s6537_s6 + $0x528] sm:$0xff] }
 0x16e   : > { %2323 = vmatmul.mubr.f32.gmra.mrb[6].mxu0 %v602_v6  ;;  %v5466_v6 = vpack.c.bf16 %v1321_v0, %v1319_v52  ;;  %v854_v17 = vld [vmem:[%s6537_s6 + $0x8c0] sm:$0xff]  ;;  %v927_v52 = vld [vmem:[%s6537_s6 + $0xb08] sm:$0xff] }
 0x16f   : > { %2328 = vmatprep.mubr.f32.mxu0 %v611_v10  ;;  %5441 = vmatpush1.bf16.msra.mxu0 %v5440_v16  ;;  %v1318_v16 = vld [vmem:[#allocation5 + $0x740] sm:$0xff]  ;;  %v747_v0 = vld [vmem:[%s6537_s6 + $0x568] sm:$0xff] }
 0x170   : > { %5443 = vmatprep.subr.bf16.mxu0 %v5442_v11  ;;  %1575 = vmatmul.mubr.f32.gmra.mrb[56].mxu1 %v798_v25  ;;  %v838_v10 = vld [vmem:[%s6537_s6 + $0x840] sm:$0xff]  ;;  %v5468_v46 = vpack.c.bf16 %v1320_v24, %v1318_v16  ;;  %v935_v16 = vld [vmem:[%s6537_s6 + $0xb48] sm:$0xff] }
 0x171   : > { %1580 = vmatprep.mubr.f32.mxu1 %v807_v33  ;;  %v658_v11 = vld [vmem:[%s6537_s6 + $0x2a0] sm:$0xff]  ;;  %v5470_v33 = vpack.c.bf16 %v1325_v30, %v1323_v28  ;;  %v779_v28 = vld [vmem:[%s6537_s6 + $0x668] sm:$0xff] }
 0x172   : > { %2329 = vmatmul.mubr.f32.gmra.mrb[8].mxu0 %v610_v58  ;;  %v855_v58 = vld [vmem:[%s6537_s6 + $0x8c8] sm:$0xff]  ;;  %v1322_v25 = vld [vmem:[#allocation5 + $0x760] sm:$0xff] }
 0x173   : > { %2334 = vmatprep.mubr.f32.mxu0 %v619_v18  ;;  %5445 = vmatpush1.bf16.msra.mxu0 %v5444_v20  ;;  %v675_v20 = vld [vmem:[%s6537_s6 + $0x328] sm:$0xff]  ;;  %v674_v18 = vld [vmem:[%s6537_s6 + $0x320] sm:$0xff] }
 0x174   : > { %5447 = vmatprep.subr.bf16.mxu0 %v5446_v21  ;;  %1581 = vmatmul.mubr.f32.gmra.mrb[58].mxu1 %v806_v32  ;;  %v863_v21 = vld [vmem:[%s6537_s6 + $0x908] sm:$0xff]  ;;  %v918_v14 = vld [vmem:[%s6537_s6 + $0xac0] sm:$0xff] }
 0x175   : > { %1586 = vmatprep.mubr.f32.mxu1 %v815_v47  ;;  %v699_v32 = vld [vmem:[%s6537_s6 + $0x3e8] sm:$0xff]  ;;  %v698_v47 = vld [vmem:[%s6537_s6 + $0x3e0] sm:$0xff] }
 0x176   : > { %2335 = vmatmul.mubr.f32.gmra.mrb[10].mxu0 %v618_v3  ;;  %v682_v3 = vld [vmem:[%s6537_s6 + $0x360] sm:$0xff] }
 0x177   : > { %2340 = vmatprep.mubr.f32.mxu0 %v627_v34  ;;  %5449 = vmatpush1.bf16.msra.mxu0 %v5448_v26  ;;  %v871_v26 = vld [vmem:[%s6537_s6 + $0x948] sm:$0xff]  ;;  %v1324_v34 = vld [vmem:[#allocation5 + $0x770] sm:$0xff]  ;;  %v958_v30 = vld [vmem:[%s6537_s6 + $0xc00] sm:$0xff] }
 0x178   : > { %5451 = vmatprep.subr.bf16.mxu0 %v5450_v35  ;;  %1587 = vmatmul.mubr.f32.gmra.mrb[60].mxu1 %v814_v49  ;;  %v691_v35 = vld [vmem:[%s6537_s6 + $0x3a8] sm:$0xff]  ;;  %v5472_v39 = vpack.c.bf16 %v1324_v34, %v1322_v25 }
 0x179   : > { %1592 = vmatprep.mubr.f32.mxu1 %v823_v50  ;;  %v1327_v49 = vld [vmem:[#allocation5 + $0x788] sm:$0xff]  ;;  %v1326_v50 = vld [vmem:[#allocation5 + $0x780] sm:$0xff] }
 0x17a   : > { %2341 = vmatmul.mubr.f32.gmra.mrb[12].mxu0 %v626_v42  ;;  %v878_v42 = vld [vmem:[%s6537_s6 + $0x980] sm:$0xff]  ;;  %v5476_v59 = vpack.c.bf16 %v1328_v56, %v1326_v50  ;;  %v1335_v25 = vld [vmem:[#allocation5 + $0x7c8] sm:$0xff] }
 0x17b   : > { %2346 = vmatprep.mubr.f32.mxu0 %v635_v37  ;;  %5453 = vmatpush1.bf16.msra.mxu0 %v5452_v7  ;;  %v887_v7 = vld [vmem:[%s6537_s6 + $0x9c8] sm:$0xff] }
 0x17c   : > { %5455 = vmatprep.subr.bf16.mxu0 %v5454_v38  ;;  %1593 = vmatmul.mubr.f32.gmra.mrb[62].mxu1 %v822_v2  ;;  %v707_v37 = vld [vmem:[%s6537_s6 + $0x428] sm:$0xff]  ;;  %v886_v38 = vld [vmem:[%s6537_s6 + $0x9c0] sm:$0xff] }
 0x17d   : > { %1598 = vmatprep.mubr.f32.mxu1 %v831_v62  ;;  %v722_v2 = vld [vmem:[%s6537_s6 + $0x4a0] sm:$0xff]  ;;  %v731_v62 = vld [vmem:[%s6537_s6 + $0x4e8] sm:$0xff] }
 0x17e   : > { %2347 = vmatmul.mubr.f32.gmra.mrb[14].mxu0 %v634_v53  ;;  %v1329_v53 = vld [vmem:[#allocation5 + $0x798] sm:$0xff]  ;;  %v967_v34 = vld [vmem:[%s6537_s6 + $0xc48] sm:$0xff] }
 0x17f   : > { %2352 = vmatprep.mubr.f32.mxu0 %v643_v54  ;;  %5457 = vmatpush1.bf16.msra.mxu0 %v5456_v51  ;;  %v714_v51 = vld [vmem:[%s6537_s6 + $0x460] sm:$0xff]  ;;  %v903_v54 = vld [vmem:[%s6537_s6 + $0xa48] sm:$0xff] }
 0x180   : > { %5459 = vmatprep.subr.bf16.mxu0 %v5458_v55  ;;  %1599 = vmatmul.mubr.f32.gmra.mrb[64].mxu1 %v830_v43  ;;  %v5474_v55 = vpack.c.bf16 %v1329_v53, %v1327_v49  ;;  %v738_v43 = vld [vmem:[%s6537_s6 + $0x520] sm:$0xff]  ;;  %v811_v49 = vld [vmem:[%s6537_s6 + $0x768] sm:$0xff] }
 0x181   : > { %1604 = vmatprep.mubr.f32.mxu1 %v839_v61  ;;  %v1331_v61 = vld [vmem:[#allocation5 + $0x7a8] sm:$0xff]  ;;  %v990_v53 = vld [vmem:[%s6537_s6 + $0xd00] sm:$0xff] }
 0x182   : > { %2353 = vmatmul.mubr.f32.gmra.mrb[16].mxu0 %v642_v9  ;;  %v911_v9 = vld [vmem:[%s6537_s6 + $0xa88] sm:$0xff] }
 0x183   : > { %2358 = vmatprep.mubr.f32.mxu0 %v651_v22  ;;  %5461 = vmatpush1.bf16.msra.mxu0 %v5460_v13  ;;  %v910_v13 = vld [vmem:[%s6537_s6 + $0xa80] sm:$0xff]  ;;  %v1339_v50 = vld [vmem:[#allocation5 + $0x7e8] sm:$0xff] }
 0x184   : > { %5463 = vmatprep.subr.bf16.mxu0 %v5462_v29  ;;  %1605 = vmatmul.mubr.f32.gmra.mrb[66].mxu1 %v838_v10  ;;  %v730_v22 = vld [vmem:[%s6537_s6 + $0x4e0] sm:$0xff]  ;;  %v919_v29 = vld [vmem:[%s6537_s6 + $0xac8] sm:$0xff]  ;;  %v1332_v10 = vld [vmem:[#allocation5 + $0x7b0] sm:$0xff] }
 0x185   : > { %1610 = vmatprep.mubr.f32.mxu1 %v847_v36  ;;  %v999_v56 = vld [vmem:[%s6537_s6 + $0xd48] sm:$0xff] }
 0x186   : > { %2359 = vmatmul.mubr.f32.gmra.mrb[18].mxu0 %v650_v1  ;;  %v926_v1 = vld [vmem:[%s6537_s6 + $0xb00] sm:$0xff] }
 0x187   : > { %2364 = vmatprep.mubr.f32.mxu0 %v659_v5  ;;  %5465 = vmatpush1.bf16.msra.mxu0 %v5464_v4  ;;  %v1333_v4 = vld [vmem:[#allocation5 + $0x7b8] sm:$0xff]  ;;  %v1330_v5 = vld [vmem:[#allocation5 + $0x7a0] sm:$0xff] }
 0x188   : > { %5467 = vmatprep.subr.bf16.mxu0 %v5466_v6  ;;  %1611 = vmatmul.mubr.f32.gmra.mrb[68].mxu1 %v846_v19  ;;  %v746_v6 = vld [vmem:[%s6537_s6 + $0x560] sm:$0xff]  ;;  %v5478_v24 = vpack.c.bf16 %v1333_v4, %v1331_v61  ;;  %v5480_v36 = vpack.c.bf16 %v1332_v10, %v1330_v5  ;;  %v943_v19 = vld [vmem:[%s6537_s6 + $0xb88] sm:$0xff] }
 0x189   : > { %1616 = vmatprep.mubr.f32.mxu1 %v855_v58  ;;  %v942_v58 = vld [vmem:[%s6537_s6 + $0xb80] sm:$0xff]  ;;  %v843_v61 = vld [vmem:[%s6537_s6 + $0x868] sm:$0xff] }
 0x18a   : > { %2365 = vmatmul.mubr.f32.gmra.mrb[20].mxu0 %v658_v11  ;;  %v755_v11 = vld [vmem:[%s6537_s6 + $0x5a8] sm:$0xff]  ;;  %v1022_v4 = vld [vmem:[%s6537_s6 + $0xe00] sm:$0xff] }
 0x18b   : > { %2370 = vmatprep.mubr.f32.mxu0 %v667_v12  ;;  %5469 = vmatpush1.bf16.msra.mxu0 %v5468_v46  ;;  %v934_v46 = vld [vmem:[%s6537_s6 + $0xb40] sm:$0xff] }
 0x18c   : > { %1617 = vmatmul.mubr.f32.gmra.mrb[70].mxu1 %v854_v17  ;;  %5471 = vmatprep.subr.bf16.mxu0 %v5470_v33  ;;  %v754_v12 = vld [vmem:[%s6537_s6 + $0x5a0] sm:$0xff]  ;;  %v951_v17 = vld [vmem:[%s6537_s6 + $0xbc8] sm:$0xff] }
 0x18d   : > { %1622 = vmatprep.mubr.f32.mxu1 %v863_v21  ;;  %v950_v21 = vld [vmem:[%s6537_s6 + $0xbc0] sm:$0xff] }
 0x18e   : > { %2371 = vmatmul.mubr.f32.gmra.mrb[22].mxu0 %v666_v15  ;;  %v763_v15 = vld [vmem:[%s6537_s6 + $0x5e8] sm:$0xff]  ;;  %v778_v33 = vld [vmem:[%s6537_s6 + $0x660] sm:$0xff] }
 0x18f   : > { %2376 = vmatprep.mubr.f32.mxu0 %v675_v20  ;;  %5473 = vmatpush1.bf16.msra.mxu0 %v5472_v39  ;;  %v762_v20 = vld [vmem:[%s6537_s6 + $0x5e0] sm:$0xff]  ;;  %v1336_v39 = vld [vmem:[#allocation5 + $0x7d0] sm:$0xff] }
 0x190   : > { %1623 = vmatmul.mubr.f32.gmra.mrb[72].mxu1 %v862_v27  ;;  %5475 = vmatprep.subr.bf16.mxu0 %v5474_v55  ;;  %v959_v27 = vld [vmem:[%s6537_s6 + $0xc08] sm:$0xff]  ;;  %v810_v55 = vld [vmem:[%s6537_s6 + $0x760] sm:$0xff] }
 0x191   : > { %1628 = vmatprep.mubr.f32.mxu1 %v871_v26  ;;  %v1334_v26 = vld [vmem:[#allocation5 + $0x7c0] sm:$0xff] }
 0x192   : > { %2377 = vmatmul.mubr.f32.gmra.mrb[24].mxu0 %v674_v18  ;;  %v771_v18 = vld [vmem:[%s6537_s6 + $0x628] sm:$0xff]  ;;  %v842_v5 = vld [vmem:[%s6537_s6 + $0x860] sm:$0xff] }
 0x193   : > { %2382 = vmatprep.mubr.f32.mxu0 %v683_v23  ;;  %5477 = vmatpush1.bf16.msra.mxu0 %v5476_v59  ;;  %v770_v23 = vld [vmem:[%s6537_s6 + $0x620] sm:$0xff]  ;;  %v1340_v59 = vld [vmem:[#allocation5 + $0x7f0] sm:$0xff] }
 0x194   : > { %1629 = vmatmul.mubr.f32.gmra.mrb[74].mxu1 %v870_v40  ;;  %5479 = vmatprep.subr.bf16.mxu0 %v5478_v24  ;;  %v787_v40 = vld [vmem:[%s6537_s6 + $0x6a8] sm:$0xff]  ;;  %v1030_v24 = vld [vmem:[%s6537_s6 + $0xe40] sm:$0xff] }
 0x195   : > { %1634 = vmatprep.mubr.f32.mxu1 %v879_v31  ;;  %v966_v31 = vld [vmem:[%s6537_s6 + $0xc40] sm:$0xff] }
 0x196   : > { %2383 = vmatmul.mubr.f32.gmra.mrb[26].mxu0 %v682_v3  ;;  %v1337_v3 = vld [vmem:[#allocation5 + $0x7d8] sm:$0xff]  ;;  %v850_v10 = vld [vmem:[%s6537_s6 + $0x8a0] sm:$0xff] }
 0x197   : > { %2388 = vmatprep.mubr.f32.mxu0 %v691_v35  ;;  %5481 = vmatpush1.bf16.msra.mxu0 %v5480_v36  ;;  %v5482_v35 = vpack.c.bf16 %v1337_v3, %v1335_v25  ;;  %v859_v36 = vld [vmem:[%s6537_s6 + $0x8e8] sm:$0xff]  ;;  %v882_v25 = vld [vmem:[%s6537_s6 + $0x9a0] sm:$0xff] }
 0x198   : > { %1635 = vmatmul.mubr.f32.gmra.mrb[76].mxu1 %v878_v42  ;;  %v975_v42 = vld [vmem:[%s6537_s6 + $0xc88] sm:$0xff] }
 0x199   : > { %1640 = vmatprep.mubr.f32.mxu1 %v887_v7  ;;  %5483 = vmatprep.subr.bf16.mxu0 %v5482_v35  ;;  %v974_v7 = vld [vmem:[%s6537_s6 + $0xc80] sm:$0xff]  ;;  %v1071_v3 = vld [vmem:[%s6537_s6 + $0xf88] sm:$0xff] }
 0x19a   : > { %2389 = vmatmul.mubr.f32.gmra.mrb[28].mxu0 %v690_v41  ;;  %v5484_v41 = vpack.c.bf16 %v1336_v39, %v1334_v26  ;;  %v891_v26 = vld [vmem:[%s6537_s6 + $0x9e8] sm:$0xff] }
 0x19b   : > { %2394 = vmatprep.mubr.f32.mxu0 %v699_v32  ;;  %v786_v32 = vld [vmem:[%s6537_s6 + $0x6a0] sm:$0xff]  ;;  %v1079_v35 = vld [vmem:[%s6537_s6 + $0xfc8] sm:$0xff] }
 0x19c   : > { %1641 = vmatmul.mubr.f32.gmra.mrb[78].mxu1 %v886_v38  ;;  %5485 = vmatpush1.bf16.msra.mxu0 %v5484_v41  ;;  %v983_v38 = vld [vmem:[%s6537_s6 + $0xcc8] sm:$0xff]  ;;  %v898_v41 = vld [vmem:[%s6537_s6 + $0xa20] sm:$0xff] }
 0x19d   : > { %1646 = vmatprep.mubr.f32.mxu1 %v895_v8  ;;  %v982_v8 = vld [vmem:[%s6537_s6 + $0xcc0] sm:$0xff]  ;;  %v899_v39 = vld [vmem:[%s6537_s6 + $0xa28] sm:$0xff] }
 0x19e   : > { %2395 = vmatmul.mubr.f32.gmra.mrb[30].mxu0 %v698_v47  ;;  %v795_v47 = vld [vmem:[%s6537_s6 + $0x6e8] sm:$0xff] }
 0x19f   : > { %2400 = vmatprep.mubr.f32.mxu0 %v707_v37  ;;  %v794_v37 = vld [vmem:[%s6537_s6 + $0x6e0] sm:$0xff] }
 0x1a0   : > { %1647 = vmatmul.mubr.f32.gmra.mrb[80].mxu1 %v894_v45  ;;  %v991_v45 = vld [vmem:[%s6537_s6 + $0xd08] sm:$0xff] }
 0x1a1   : > { %1652 = vmatprep.mubr.f32.mxu1 %v903_v54  ;;  %v1338_v54 = vld [vmem:[#allocation5 + $0x7e0] sm:$0xff] }
 0x1a2   : > { %2401 = vmatmul.mubr.f32.gmra.mrb[32].mxu0 %v706_v48  ;;  %v803_v48 = vld [vmem:[%s6537_s6 + $0x728] sm:$0xff] }
 0x1a3   : > { %2406 = vmatprep.mubr.f32.mxu0 %v715_v44  ;;  %v802_v44 = vld [vmem:[%s6537_s6 + $0x720] sm:$0xff] }
 0x1a4   : > { %1653 = vmatmul.mubr.f32.gmra.mrb[82].mxu1 %v902_v60  ;;  %v819_v60 = vld [vmem:[%s6537_s6 + $0x7a8] sm:$0xff] }
 0x1a5   : > { %1658 = vmatprep.mubr.f32.mxu1 %v911_v9  ;;  %v998_v9 = vld [vmem:[%s6537_s6 + $0xd40] sm:$0xff] }
 0x1a6   : > { %2407 = vmatmul.mubr.f32.gmra.mrb[34].mxu0 %v714_v51  ;;  %v1341_v51 = vld [vmem:[#allocation5 + $0x7f8] sm:$0xff] }
 0x1a7   : > { %2412 = vmatprep.mubr.f32.mxu0 %v723_v57  ;;  %v5486_v57 = vpack.c.bf16 %v1341_v51, %v1339_v50  ;;  %v931_v50 = vld [vmem:[%s6537_s6 + $0xb28] sm:$0xff]  ;;  %v856_v51 = vld [vmem:[%s6537_s6 + $0x8d0] sm:$0xff] }
 0x1a8   : > { %1659 = vmatmul.mubr.f32.gmra.mrb[84].mxu1 %v910_v13  ;;  %v1007_v13 = vld [vmem:[%s6537_s6 + $0xd88] sm:$0xff] }
 0x1a9   : > { %1664 = vmatprep.mubr.f32.mxu1 %v919_v29  ;;  %5487 = vmatprep.subr.bf16.mxu0 %v5486_v57  ;;  %v1006_v29 = vld [vmem:[%s6537_s6 + $0xd80] sm:$0xff]  ;;  %v864_v57 = vld [vmem:[%s6537_s6 + $0x910] sm:$0xff] }
 0x1aa   : > { %2413 = vmatmul.mubr.f32.gmra.mrb[36].mxu0 %v722_v2  ;;  %v5488_v2 = vpack.c.bf16 %v1340_v59, %v1338_v54  ;;  %v930_v54 = vld [vmem:[%s6537_s6 + $0xb20] sm:$0xff] }
 0x1ab   : > { %2418 = vmatprep.mubr.f32.mxu0 %v731_v62  ;;  %v818_v62 = vld [vmem:[%s6537_s6 + $0x7a0] sm:$0xff] }
 0x1ac   : > { %1665 = vmatmul.mubr.f32.gmra.mrb[86].mxu1 %v918_v14  ;;  %5489 = vmatpush1.bf16.msra.mxu0 %v5488_v2  ;;  %v1015_v14 = vld [vmem:[%s6537_s6 + $0xdc8] sm:$0xff]  ;;  %v873_v2 = vld [vmem:[%s6537_s6 + $0x958] sm:$0xff] }
 0x1ad   : > { %1670 = vmatprep.mubr.f32.mxu1 %v927_v52  ;;  %v1014_v52 = vld [vmem:[%s6537_s6 + $0xdc0] sm:$0xff] }
 0x1ae   : > { %2419 = vmatmul.mubr.f32.gmra.mrb[38].mxu0 %v730_v22  ;;  %v827_v22 = vld [vmem:[%s6537_s6 + $0x7e8] sm:$0xff] }
 0x1af   : > { %2424 = vmatprep.mubr.f32.mxu0 %v739_v63  ;;  %v826_v63 = vld [vmem:[%s6537_s6 + $0x7e0] sm:$0xff] }
 0x1b0   : > { %1671 = vmatmul.mubr.f32.gmra.mrb[88].mxu1 %v926_v1  ;;  %v1023_v1 = vld [vmem:[%s6537_s6 + $0xe08] sm:$0xff] }
 0x1b1   : > { %1676 = vmatprep.mubr.f32.mxu1 %v935_v16  ;;  %v851_v16 = vld [vmem:[%s6537_s6 + $0x8a8] sm:$0xff] }
 0x1b2   : > { %2425 = vmatmul.mubr.f32.gmra.mrb[40].mxu0 %v738_v43  ;;  %v835_v43 = vld [vmem:[%s6537_s6 + $0x828] sm:$0xff] }
 0x1b3   : > { %2430 = vmatprep.mubr.f32.mxu0 %v747_v0  ;;  %v834_v0 = vld [vmem:[%s6537_s6 + $0x820] sm:$0xff] }
 0x1b4   : > { %1677 = vmatmul.mubr.f32.gmra.mrb[90].mxu1 %v934_v46  ;;  %v1038_v46 = vld [vmem:[%s6537_s6 + $0xe80] sm:$0xff] }
 0x1b5   : > { %1682 = vmatprep.mubr.f32.mxu1 %v943_v19  ;;  %v1047_v19 = vld [vmem:[%s6537_s6 + $0xec8] sm:$0xff] }
 0x1b6   : > { %2431 = vmatmul.mubr.f32.gmra.mrb[42].mxu0 %v746_v6  ;;  %v1031_v6 = vld [vmem:[%s6537_s6 + $0xe48] sm:$0xff] }
 0x1b7   : > { %2436 = vmatprep.mubr.f32.mxu0 %v755_v11  ;;  %v1039_v11 = vld [vmem:[%s6537_s6 + $0xe88] sm:$0xff] }
 0x1b8   : > { %1683 = vmatmul.mubr.f32.gmra.mrb[92].mxu1 %v942_v58  ;;  %v1046_v58 = vld [vmem:[%s6537_s6 + $0xec0] sm:$0xff] }
 0x1b9   : > { %1688 = vmatprep.mubr.f32.mxu1 %v951_v17  ;;  %v1055_v17 = vld [vmem:[%s6537_s6 + $0xf08] sm:$0xff] }
 0x1ba   : > { %2437 = vmatmul.mubr.f32.gmra.mrb[44].mxu0 %v754_v12  ;;  %v858_v12 = vld [vmem:[%s6537_s6 + $0x8e0] sm:$0xff] }
 0x1bb   : > { %2442 = vmatprep.mubr.f32.mxu0 %v763_v15  ;;  %v867_v15 = vld [vmem:[%s6537_s6 + $0x928] sm:$0xff] }
 0x1bc   : > { %1689 = vmatmul.mubr.f32.gmra.mrb[94].mxu1 %v950_v21  ;;  %v1054_v21 = vld [vmem:[%s6537_s6 + $0xf00] sm:$0xff] }
 0x1bd   : > { %1694 = vmatprep.mubr.f32.mxu1 %v959_v27  ;;  %v1063_v27 = vld [vmem:[%s6537_s6 + $0xf48] sm:$0xff] }
 0x1be   : > { %2443 = vmatmul.mubr.f32.gmra.mrb[46].mxu0 %v762_v20  ;;  %v866_v20 = vld [vmem:[%s6537_s6 + $0x920] sm:$0xff] }
 0x1bf   : > { %2448 = vmatprep.mubr.f32.mxu0 %v771_v18  ;;  %v875_v18 = vld [vmem:[%s6537_s6 + $0x968] sm:$0xff] }
 0x1c0   : > { %1695 = vmatmul.mubr.f32.gmra.mrb[96].mxu1 %v958_v30  ;;  %v1062_v30 = vld [vmem:[%s6537_s6 + $0xf40] sm:$0xff] }
 0x1c1   : > { %1700 = vmatprep.mubr.f32.mxu1 %v967_v34  ;;  %v890_v34 = vld [vmem:[%s6537_s6 + $0x9e0] sm:$0xff] }
 0x1c2   : > { %2449 = vmatmul.mubr.f32.gmra.mrb[48].mxu0 %v770_v23  ;;  %v874_v23 = vld [vmem:[%s6537_s6 + $0x960] sm:$0xff] }
 0x1c3   : > { %2454 = vmatprep.mubr.f32.mxu0 %v779_v28  ;;  %v883_v28 = vld [vmem:[%s6537_s6 + $0x9a8] sm:$0xff] }
 0x1c4   : > { %1701 = vmatmul.mubr.f32.gmra.mrb[98].mxu1 %v966_v31  ;;  %v833_v31 = vld [vmem:[%s6537_s6 + $0x818] sm:$0xff] }
 0x1c5   : > { %1706 = vmatprep.mubr.f32.mxu1 %v975_v42  ;;  %v832_v42 = vld [vmem:[%s6537_s6 + $0x810] sm:$0xff] }
 0x1c6   : > { %2455 = vmatmul.mubr.f32.gmra.mrb[50].mxu0 %v778_v33  ;;  %v1070_v33 = vld [vmem:[%s6537_s6 + $0xf80] sm:$0xff] }
 0x1c7   : > { %2460 = vmatprep.mubr.f32.mxu0 %v787_v40  ;;  %v1078_v40 = vld [vmem:[%s6537_s6 + $0xfc0] sm:$0xff] }
 0x1c8   : > { %1707 = vmatmul.mubr.f32.gmra.mrb[100].mxu1 %v974_v7  ;;  %v841_v7 = vld [vmem:[%s6537_s6 + $0x858] sm:$0xff] }
 0x1c9   : > { %1712 = vmatprep.mubr.f32.mxu1 %v983_v38  ;;  %v840_v38 = vld [vmem:[%s6537_s6 + $0x850] sm:$0xff] }
 0x1ca   : > { %2461 = vmatmul.mubr.f32.gmra.mrb[52].mxu0 %v786_v32  ;;  %v907_v32 = vld [vmem:[%s6537_s6 + $0xa68] sm:$0xff] }
 0x1cb   : > { %2466 = vmatprep.mubr.f32.mxu0 %v795_v47  ;;  %v906_v47 = vld [vmem:[%s6537_s6 + $0xa60] sm:$0xff] }
 0x1cc   : > { %1713 = vmatmul.mubr.f32.gmra.mrb[102].mxu1 %v982_v8  ;;  %v849_v8 = vld [vmem:[%s6537_s6 + $0x898] sm:$0xff] }
 0x1cd   : > { %1718 = vmatprep.mubr.f32.mxu1 %v991_v45  ;;  %v848_v45 = vld [vmem:[%s6537_s6 + $0x890] sm:$0xff] }
 0x1ce   : > { %2467 = vmatmul.mubr.f32.gmra.mrb[54].mxu0 %v794_v37  ;;  %v915_v37 = vld [vmem:[%s6537_s6 + $0xaa8] sm:$0xff] }
 0x1cf   : > { %2472 = vmatprep.mubr.f32.mxu0 %v803_v48  ;;  %v914_v48 = vld [vmem:[%s6537_s6 + $0xaa0] sm:$0xff] }
 0x1d0   : > { %1719 = vmatmul.mubr.f32.gmra.mrb[104].mxu1 %v990_v53  ;;  %v857_v53 = vld [vmem:[%s6537_s6 + $0x8d8] sm:$0xff] }
 0x1d1   : > { %1724 = vmatprep.mubr.f32.mxu1 %v999_v56  ;;  %v939_v56 = vld [vmem:[%s6537_s6 + $0xb68] sm:$0xff] }
 0x1d2   : > { %2473 = vmatmul.mubr.f32.gmra.mrb[56].mxu0 %v802_v44  ;;  %v923_v44 = vld [vmem:[%s6537_s6 + $0xae8] sm:$0xff] }
 0x1d3   : > { %2478 = vmatprep.mubr.f32.mxu0 %v811_v49  ;;  %v922_v49 = vld [vmem:[%s6537_s6 + $0xae0] sm:$0xff]  ;;  %v6981_v59 = vpop.f32.mrb[0].mxu1 }
 0x1d4   : > { %1725 = vmatmul.mubr.f32.gmra.mrb[106].mxu1 %v998_v9  ;;  %v6985_v9 = vpop.f32.mrb[1].mxu1 }
 0x1d5   : > { %1730 = vmatprep.mubr.f32.mxu1 %v1007_v13  ;;  %v872_v13 = vld [vmem:[%s6537_s6 + $0x950] sm:$0xff] }
 0x1d6   : > { %2479 = vmatmul.mubr.f32.gmra.mrb[58].mxu0 %v810_v55  ;;  %v865_v55 = vld [vmem:[%s6537_s6 + $0x918] sm:$0xff] }
 0x1d7   : > { %2484 = vmatprep.mubr.f32.mxu0 %v819_v60  ;;  %v938_v60 = vld [vmem:[%s6537_s6 + $0xb60] sm:$0xff] }
 0x1d8   : > { %1731 = vmatmul.mubr.f32.gmra.mrb[108].mxu1 %v1006_v29  ;;  %v946_v29 = vld [vmem:[%s6537_s6 + $0xba0] sm:$0xff] }
 0x1d9   : > { %1736 = vmatprep.mubr.f32.mxu1 %v1015_v14 }
 0x1da   : > { %2485 = vmatmul.mubr.f32.gmra.mrb[60].mxu0 %v818_v62  ;;  %v947_v62 = vld [vmem:[%s6537_s6 + $0xba8] sm:$0xff] }
 0x1db   : > { %2490 = vmatprep.mubr.f32.mxu0 %v827_v22  ;;  %v6989_v22 = vpop.f32.mrb[2].mxu1 }
 0x1dc   : > { %1737 = vmatmul.mubr.f32.gmra.mrb[110].mxu1 %v1014_v52  ;;  %v6993_v14 = vpop.f32.mrb[3].mxu1  ;;  %v880_v52 = vld [vmem:[%s6537_s6 + $0x990] sm:$0xff] }
 0x1dd   : > { %1742 = vmatprep.mubr.f32.mxu1 %v1023_v1  ;;  %v954_v1 = vld [vmem:[%s6537_s6 + $0xbe0] sm:$0xff] }
 0x1de   : > { %2491 = vmatmul.mubr.f32.gmra.mrb[62].mxu0 %v826_v63  ;;  %v881_v63 = vld [vmem:[%s6537_s6 + $0x998] sm:$0xff] }
 0x1df   : > { %2496 = vmatprep.mubr.f32.mxu0 %v835_v43  ;;  %v955_v43 = vld [vmem:[%s6537_s6 + $0xbe8] sm:$0xff] }
 0x1e0   : > { %1743 = vmatmul.mubr.f32.gmra.mrb[112].mxu1 %v1022_v4 }
 0x1e1   : > { %1748 = vmatprep.mubr.f32.mxu1 %v1031_v6  ;;  %v888_v6 = vld [vmem:[%s6537_s6 + $0x9d0] sm:$0xff] }
 0x1e2   : > { %2497 = vmatmul.mubr.f32.gmra.mrb[64].mxu0 %v834_v0  ;;  %v6997_v0 = vpop.f32.mrb[4].mxu1 }
 0x1e3   : > { %2502 = vmatprep.mubr.f32.mxu0 %v843_v61  ;;  %v889_v61 = vld [vmem:[%s6537_s6 + $0x9d8] sm:$0xff]  ;;  %v7001_v4 = vpop.f32.mrb[5].mxu1 }
 0x1e4   : > { %1749 = vmatmul.mubr.f32.gmra.mrb[114].mxu1 %v1030_v24  ;;  %v962_v24 = vld [vmem:[%s6537_s6 + $0xc20] sm:$0xff] }
 0x1e5   : > { %1754 = vmatprep.mubr.f32.mxu1 %v1039_v11 }
 0x1e6   : > { %2503 = vmatmul.mubr.f32.gmra.mrb[66].mxu0 %v842_v5  ;;  %v963_v5 = vld [vmem:[%s6537_s6 + $0xc28] sm:$0xff] }
 0x1e7   : > { %2508 = vmatprep.mubr.f32.mxu0 %v851_v16  ;;  %v7005_v16 = vpop.f32.mrb[6].mxu1 }
 0x1e8   : > { %1755 = vmatmul.mubr.f32.gmra.mrb[116].mxu1 %v1038_v46  ;;  %v7009_v11 = vpop.f32.mrb[7].mxu1  ;;  %v896_v46 = vld [vmem:[%s6537_s6 + $0xa10] sm:$0xff] }
 0x1e9   : > { %1760 = vmatprep.mubr.f32.mxu1 %v1047_v19  ;;  %v970_v19 = vld [vmem:[%s6537_s6 + $0xc60] sm:$0xff] }
 0x1ea   : > { %2509 = vmatmul.mubr.f32.gmra.mrb[68].mxu0 %v850_v10  ;;  %v897_v10 = vld [vmem:[%s6537_s6 + $0xa18] sm:$0xff] }
 0x1eb   : > { %2514 = vmatprep.mubr.f32.mxu0 %v859_v36  ;;  %v971_v36 = vld [vmem:[%s6537_s6 + $0xc68] sm:$0xff] }
 0x1ec   : > { %1761 = vmatmul.mubr.f32.gmra.mrb[118].mxu1 %v1046_v58 }
 0x1ed   : > { %1766 = vmatprep.mubr.f32.mxu1 %v1055_v17  ;;  %v904_v17 = vld [vmem:[%s6537_s6 + $0xa50] sm:$0xff] }
 0x1ee   : > { %2515 = vmatmul.mubr.f32.gmra.mrb[70].mxu0 %v858_v12  ;;  %v7013_v12 = vpop.f32.mrb[8].mxu1 }
 0x1ef   : > { %2520 = vmatprep.mubr.f32.mxu0 %v867_v15  ;;  %v905_v15 = vld [vmem:[%s6537_s6 + $0xa58] sm:$0xff]  ;;  %v7017_v58 = vpop.f32.mrb[9].mxu1 }
 0x1f0   : > { %1767 = vmatmul.mubr.f32.gmra.mrb[120].mxu1 %v1054_v21  ;;  %v978_v21 = vld [vmem:[%s6537_s6 + $0xca0] sm:$0xff] }
 0x1f1   : > { %1772 = vmatprep.mubr.f32.mxu1 %v1063_v27 }
 0x1f2   : > { %2521 = vmatmul.mubr.f32.gmra.mrb[72].mxu0 %v866_v20  ;;  %v979_v20 = vld [vmem:[%s6537_s6 + $0xca8] sm:$0xff] }
 0x1f3   : > { %2526 = vmatprep.mubr.f32.mxu0 %v875_v18  ;;  %v7021_v18 = vpop.f32.mrb[10].mxu1 }
 0x1f4   : > { %1773 = vmatmul.mubr.f32.gmra.mrb[122].mxu1 %v1062_v30  ;;  %v7025_v27 = vpop.f32.mrb[11].mxu1  ;;  %v912_v30 = vld [vmem:[%s6537_s6 + $0xa90] sm:$0xff] }
 0x1f5   : > { %1778 = vmatprep.mubr.f32.mxu1 %v1071_v3  ;;  %v986_v3 = vld [vmem:[%s6537_s6 + $0xce0] sm:$0xff] }
 0x1f6   : > { %2527 = vmatmul.mubr.f32.gmra.mrb[74].mxu0 %v874_v23  ;;  %v913_v23 = vld [vmem:[%s6537_s6 + $0xa98] sm:$0xff] }
 0x1f7   : > { %2532 = vmatprep.mubr.f32.mxu0 %v883_v28  ;;  %v987_v28 = vld [vmem:[%s6537_s6 + $0xce8] sm:$0xff] }
 0x1f8   : > { %1779 = vmatmul.mubr.f32.gmra.mrb[124].mxu1 %v1070_v33 }
 0x1f9   : > { %1784 = vmatprep.mubr.f32.mxu1 %v1079_v35  ;;  %v920_v35 = vld [vmem:[%s6537_s6 + $0xad0] sm:$0xff] }
 0x1fa   : > { %2533 = vmatmul.mubr.f32.gmra.mrb[76].mxu0 %v882_v25  ;;  %v7029_v25 = vpop.f32.mrb[12].mxu1 }
 0x1fb   : > { %2538 = vmatprep.mubr.f32.mxu0 %v891_v26  ;;  %v921_v26 = vld [vmem:[%s6537_s6 + $0xad8] sm:$0xff]  ;;  %v7033_v33 = vpop.f32.mrb[13].mxu1 }
 0x1fc   : > { %1785 = vmatmul.mubr.f32.gmra.mrb[126].mxu1 %v1078_v40  ;;  %v994_v40 = vld [vmem:[%s6537_s6 + $0xd20] sm:$0xff] }
 0x1fd   : > { %2047 = vmatprep.mubr.f32.mxu1 %v833_v31 }
 0x1fe   : > { %2539 = vmatmul.mubr.f32.gmra.mrb[78].mxu0 %v890_v34  ;;  %v995_v34 = vld [vmem:[%s6537_s6 + $0xd28] sm:$0xff] }
 0x1ff   : > { %2544 = vmatprep.mubr.f32.mxu0 %v899_v39  ;;  %v7037_v39 = vpop.f32.mrb[14].mxu1 }
 0x200   : > { %2048 = vmatmul.mubr.f32.vlgmr.msra.gmra.mrb[64].mxu1 %v832_v42  ;;  %v7041_v31 = vpop.f32.mrb[15].mxu1  ;;  %v928_v42 = vld [vmem:[%s6537_s6 + $0xb10] sm:$0xff] }
 0x201   : > { %2053 = vmatprep.mubr.f32.mxu1 %v841_v7  ;;  %v1002_v7 = vld [vmem:[%s6537_s6 + $0xd60] sm:$0xff] }
 0x202   : > { %2545 = vmatmul.mubr.f32.gmra.mrb[80].mxu0 %v898_v41  ;;  %v929_v41 = vld [vmem:[%s6537_s6 + $0xb18] sm:$0xff] }
 0x203   : > { %2550 = vmatprep.mubr.f32.mxu0 %v907_v32  ;;  %v1003_v32 = vld [vmem:[%s6537_s6 + $0xd68] sm:$0xff] }
 0x204   : > { %2054 = vmatmul.mubr.f32.gmra.mrb[66].mxu1 %v840_v38 }
 0x205   : > { %2059 = vmatprep.mubr.f32.mxu1 %v849_v8  ;;  %v936_v8 = vld [vmem:[%s6537_s6 + $0xb50] sm:$0xff] }
 0x206   : > { %2551 = vmatmul.mubr.f32.gmra.mrb[82].mxu0 %v906_v47  ;;  %v7045_v47 = vpop.f32.mrb[16].mxu1 }
 0x207   : > { %2556 = vmatprep.mubr.f32.mxu0 %v915_v37  ;;  %v937_v37 = vld [vmem:[%s6537_s6 + $0xb58] sm:$0xff]  ;;  %v7049_v38 = vpop.f32.mrb[17].mxu1 }
 0x208   : > { %2060 = vmatmul.mubr.f32.gmra.mrb[68].mxu1 %v848_v45  ;;  %v1010_v45 = vld [vmem:[%s6537_s6 + $0xda0] sm:$0xff] }
 0x209   : > { %2065 = vmatprep.mubr.f32.mxu1 %v857_v53 }
 0x20a   : > { %2557 = vmatmul.mubr.f32.gmra.mrb[84].mxu0 %v914_v48  ;;  %v1011_v48 = vld [vmem:[%s6537_s6 + $0xda8] sm:$0xff] }
 0x20b   : > { %2562 = vmatprep.mubr.f32.mxu0 %v923_v44  ;;  %v7053_v44 = vpop.f32.mrb[18].mxu1 }
 0x20c   : > { %2066 = vmatmul.mubr.f32.gmra.mrb[70].mxu1 %v856_v51  ;;  %v7057_v53 = vpop.f32.mrb[19].mxu1  ;;  %v944_v51 = vld [vmem:[%s6537_s6 + $0xb90] sm:$0xff] }
 0x20d   : > { %2071 = vmatprep.mubr.f32.mxu1 %v865_v55  ;;  %v1018_v55 = vld [vmem:[%s6537_s6 + $0xde0] sm:$0xff] }
 0x20e   : > { %2563 = vmatmul.mubr.f32.gmra.mrb[86].mxu0 %v922_v49  ;;  %v945_v49 = vld [vmem:[%s6537_s6 + $0xb98] sm:$0xff] }
 0x20f   : > { %2568 = vmatprep.mubr.f32.mxu0 %v931_v50  ;;  %v1019_v50 = vld [vmem:[%s6537_s6 + $0xde8] sm:$0xff] }
 0x210   : > { %2072 = vmatmul.mubr.f32.gmra.mrb[72].mxu1 %v864_v57 }
 0x211   : > { %2077 = vmatprep.mubr.f32.mxu1 %v873_v2  ;;  %v952_v2 = vld [vmem:[%s6537_s6 + $0xbd0] sm:$0xff] }
 0x212   : > { %2569 = vmatmul.mubr.f32.gmra.mrb[88].mxu0 %v930_v54  ;;  %v7061_v54 = vpop.f32.mrb[20].mxu1 }
 0x213   : > { %2574 = vmatprep.mubr.f32.mxu0 %v939_v56  ;;  %v953_v56 = vld [vmem:[%s6537_s6 + $0xbd8] sm:$0xff]  ;;  %v7065_v57 = vpop.f32.mrb[21].mxu1 }
 0x214   : > { %2078 = vmatmul.mubr.f32.gmra.mrb[74].mxu1 %v872_v13  ;;  %v1026_v13 = vld [vmem:[%s6537_s6 + $0xe20] sm:$0xff] }
 0x215   : > { %2083 = vmatprep.mubr.f32.mxu1 %v881_v63 }
 0x216   : > { %2575 = vmatmul.mubr.f32.gmra.mrb[90].mxu0 %v938_v60  ;;  %v1027_v60 = vld [vmem:[%s6537_s6 + $0xe28] sm:$0xff] }
 0x217   : > { %2580 = vmatprep.mubr.f32.mxu0 %v947_v62  ;;  %v7069_v62 = vpop.f32.mrb[22].mxu1 }
 0x218   : > { %2084 = vmatmul.mubr.f32.gmra.mrb[76].mxu1 %v880_v52  ;;  %v7073_v63 = vpop.f32.mrb[23].mxu1  ;;  %v960_v52 = vld [vmem:[%s6537_s6 + $0xc10] sm:$0xff] }
 0x219   : > { %2089 = vmatprep.mubr.f32.mxu1 %v889_v61  ;;  %v1034_v61 = vld [vmem:[%s6537_s6 + $0xe60] sm:$0xff] }
 0x21a   : > { %2581 = vmatmul.mubr.f32.gmra.mrb[92].mxu0 %v946_v29  ;;  %v961_v29 = vld [vmem:[%s6537_s6 + $0xc18] sm:$0xff] }
 0x21b   : > { %2586 = vmatprep.mubr.f32.mxu0 %v955_v43  ;;  %v1035_v43 = vld [vmem:[%s6537_s6 + $0xe68] sm:$0xff] }
 0x21c   : > { %2090 = vmatmul.mubr.f32.gmra.mrb[78].mxu1 %v888_v6 }
 0x21d   : > { %2095 = vmatprep.mubr.f32.mxu1 %v897_v10  ;;  %v1042_v10 = vld [vmem:[%s6537_s6 + $0xea0] sm:$0xff] }
 0x21e   : > { %2587 = vmatmul.mubr.f32.gmra.mrb[94].mxu0 %v954_v1  ;;  %v7077_v1 = vpop.f32.mrb[24].mxu1 }
 0x21f   : > { %2592 = vmatprep.mubr.f32.mxu0 %v963_v5  ;;  %v969_v5 = vld [vmem:[%s6537_s6 + $0xc58] sm:$0xff]  ;;  %v7081_v6 = vpop.f32.mrb[25].mxu1 }
 0x220   : > { %2096 = vmatmul.mubr.f32.gmra.mrb[80].mxu1 %v896_v46  ;;  %v4038_v46 = vld [vmem:[#allocation8 + $0x8] sm:$0xff] }
 0x221   : > { %2101 = vmatprep.mubr.f32.mxu1 %v905_v15  ;;  %v7086_v15 = vpop.f32.mrb[26].mxu1 }
 0x222   : > { %2593 = vmatmul.mubr.f32.gmra.mrb[96].mxu0 %v962_v24  ;;  %v1043_v24 = vld [vmem:[%s6537_s6 + $0xea8] sm:$0xff] }
 0x223   : > { %2598 = vmatprep.mubr.f32.mxu0 %v971_v36  ;;  %v968_v36 = vld [vmem:[%s6537_s6 + $0xc50] sm:$0xff] }
 0x224   : > { %2102 = vmatmul.mubr.f32.gmra.mrb[82].mxu1 %v904_v17 }
 0x225   : > { %2107 = vmatprep.mubr.f32.mxu1 %v913_v23  ;;  %v4039_v23 = vld [vmem:[#allocation8 + $0x10] sm:$0xff] }
 0x226   : > { %2599 = vmatmul.mubr.f32.gmra.mrb[98].mxu0 %v970_v19  ;;  %v4040_v19 = vld [vmem:[#allocation8 + $0x18] sm:$0xff] }
 0x227   : > { %2604 = vmatprep.mubr.f32.mxu0 %v979_v20  ;;  %v977_v20 = vld [vmem:[%s6537_s6 + $0xc98] sm:$0xff]  ;;  %v5490_v17 = vpack.c.bf16 %v4040_v19, %v4038_v46 }
 0x228   : > { %2108 = vmatmul.mubr.f32.gmra.mrb[84].mxu1 %v912_v30  ;;  %v1051_v30 = vld [vmem:[%s6537_s6 + $0xee8] sm:$0xff]  ;;  %v1009_v19 = vld [vmem:[%s6537_s6 + $0xd98] sm:$0xff] }
 0x229   : > { %2113 = vmatprep.mubr.f32.mxu1 %v921_v26  ;;  %5491 = vmatprep.subr.bf16.mxu1 %v5490_v17  ;;  %v976_v26 = vld [vmem:[%s6537_s6 + $0xc90] sm:$0xff]  ;;  %v4045_v17 = vld [vmem:[#allocation8 + $0x40] sm:$0xff] }
 0x22a   : > { %2605 = vmatmul.mubr.f32.gmra.mrb[100].mxu0 %v978_v21  ;;  %v4037_v21 = vld [vmem:[#allocation8] sm:$0xff] }
 0x22b   : > { %2610 = vmatprep.mubr.f32.mxu0 %v987_v28  ;;  %v7089_v28 = vpop.f32.mrb[27].mxu1 }
 0x22c   : > { %2114 = vmatmul.mubr.f32.gmra.mrb[86].mxu1 %v920_v35  ;;  %v1050_v35 = vld [vmem:[%s6537_s6 + $0xee0] sm:$0xff] }
 0x22d   : > { %2119 = vmatprep.mubr.f32.mxu1 %v929_v41 }
 0x22e   : > { %2611 = vmatmul.mubr.f32.gmra.mrb[102].mxu0 %v986_v3  ;;  %v5492_v3 = vpack.c.bf16 %v4039_v23, %v4037_v21  ;;  %v4047_v21 = vld [vmem:[#allocation8 + $0x50] sm:$0xff] }
 0x22f   : > { %2616 = vmatprep.mubr.f32.mxu0 %v995_v34  ;;  %v7093_v34 = vpop.f32.mrb[28].mxu1 }
 0x230   : > { %2120 = vmatmul.mubr.f32.gmra.mrb[88].mxu1 %v928_v42  ;;  %v7097_v41 = vpop.f32.mrb[29].mxu1  ;;  %v1058_v42 = vld [vmem:[%s6537_s6 + $0xf20] sm:$0xff] }
 0x231   : > { %2125 = vmatprep.mubr.f32.mxu1 %v937_v37  ;;  %5493 = vmatpush1.bf16.msra.mxu1 %v5492_v3  ;;  %v4042_v37 = vld [vmem:[#allocation8 + $0x28] sm:$0xff]  ;;  %v5500_v3 = vpack.c.bf16 %v4047_v21, %v4045_v17  ;;  %v596_v17 = vld [vmem:[%s6537_s6 + $0xb0] sm:$0xff] }
 0x232   : > { %2617 = vmatmul.mubr.f32.gmra.mrb[104].mxu0 %v994_v40  ;;  %v985_v40 = vld [vmem:[%s6537_s6 + $0xcd8] sm:$0xff]  ;;  %v1032_v21 = vld [vmem:[%s6537_s6 + $0xe50] sm:$0xff] }
 0x233   : > { %2622 = vmatprep.mubr.f32.mxu0 %v1003_v32  ;;  %v1059_v32 = vld [vmem:[%s6537_s6 + $0xf28] sm:$0xff] }
 0x234   : > { %2126 = vmatmul.mubr.f32.gmra.mrb[90].mxu1 %v936_v8  ;;  %v7102_v8 = vpop.f32.mrb[30].mxu1 }
 0x235   : > { %2131 = vmatprep.mubr.f32.mxu1 %v945_v49 }
 0x236   : > { %2623 = vmatmul.mubr.f32.gmra.mrb[106].mxu0 %v1002_v7  ;;  %v984_v7 = vld [vmem:[%s6537_s6 + $0xcd0] sm:$0xff] }
 0x237   : > { %2628 = vmatprep.mubr.f32.mxu0 %v1011_v48  ;;  %v4044_v48 = vld [vmem:[#allocation8 + $0x38] sm:$0xff] }
 0x238   : > { %2132 = vmatmul.mubr.f32.gmra.mrb[92].mxu1 %v944_v51  ;;  %v5494_v49 = vpack.c.bf16 %v4044_v48, %v4042_v37  ;;  %v4043_v51 = vld [vmem:[#allocation8 + $0x30] sm:$0xff] }
 0x239   : > { %2137 = vmatprep.mubr.f32.mxu1 %v953_v56  ;;  %v1067_v56 = vld [vmem:[%s6537_s6 + $0xf68] sm:$0xff]  ;;  %v580_v37 = vld [vmem:[%s6537_s6 + $0x30] sm:$0xff] }
 0x23a   : > { %2629 = vmatmul.mubr.f32.gmra.mrb[108].mxu0 %v1010_v45  ;;  %v993_v45 = vld [vmem:[%s6537_s6 + $0xd18] sm:$0xff]  ;;  %5495 = vmatprep.subr.bf16.mxu1 %v5494_v49  ;;  %v1016_v48 = vld [vmem:[%s6537_s6 + $0xdd0] sm:$0xff] }
 0x23b   : > { %2634 = vmatprep.mubr.f32.mxu0 %v1019_v50  ;;  %v4041_v50 = vld [vmem:[#allocation8 + $0x20] sm:$0xff]  ;;  %v4052_v49 = vld [vmem:[#allocation8 + $0x78] sm:$0xff] }
 0x23c   : > { %2138 = vmatmul.mubr.f32.gmra.mrb[94].mxu1 %v952_v2  ;;  %v992_v2 = vld [vmem:[%s6537_s6 + $0xd10] sm:$0xff] }
 0x23d   : > { %2143 = vmatprep.mubr.f32.mxu1 %v961_v29  ;;  %v1066_v29 = vld [vmem:[%s6537_s6 + $0xf60] sm:$0xff] }
 0x23e   : > { %2635 = vmatmul.mubr.f32.gmra.mrb[110].mxu0 %v1018_v55  ;;  %v7105_v55 = vpop.f32.mrb[31].mxu1 }
 0x23f   : > { %2640 = vmatprep.mubr.f32.mxu0 %v1027_v60  ;;  %v5496_v60 = vpack.c.bf16 %v4043_v51, %v4041_v50  ;;  %v1025_v51 = vld [vmem:[%s6537_s6 + $0xe18] sm:$0xff] }
 0x240   : > { %2144 = vmatmul.mubr.f32.gmra.mrb[96].mxu1 %v960_v52 }
 0x241   : > { %2149 = vmatprep.mubr.f32.mxu1 %v969_v5  ;;  %5497 = vmatpush1.bf16.msra.mxu1 %v5496_v60  ;;  %v1074_v5 = vld [vmem:[%s6537_s6 + $0xfa0] sm:$0xff] }
 0x242   : > { %2641 = vmatmul.mubr.f32.gmra.mrb[112].mxu0 %v1026_v13  ;;  %v7109_v13 = vpop.f32.mrb[32].mxu1  ;;  %v4049_v60 = vld [vmem:[#allocation8 + $0x60] sm:$0xff] }
 0x243   : > { %2646 = vmatprep.mubr.f32.mxu0 %v1035_v43  ;;  %v1001_v43 = vld [vmem:[%s6537_s6 + $0xd58] sm:$0xff]  ;;  %v7113_v52 = vpop.f32.mrb[33].mxu1 }
 0x244   : > { %2150 = vmatmul.mubr.f32.gmra.mrb[98].mxu1 %v968_v36  ;;  %v4048_v36 = vld [vmem:[#allocation8 + $0x58] sm:$0xff]  ;;  %v7118_v46 = vpop.f32.mrb[34].mxu1 }
 0x245   : > { %2155 = vmatprep.mubr.f32.mxu1 %v977_v20  ;;  %v7121_v23 = vpop.f32.mrb[35].mxu1 }
 0x246   : > { %2647 = vmatmul.mubr.f32.gmra.mrb[114].mxu0 %v1034_v61  ;;  %v1075_v61 = vld [vmem:[%s6537_s6 + $0xfa8] sm:$0xff] }
 0x247   : > { %2652 = vmatprep.mubr.f32.mxu0 %v1043_v24  ;;  %v1000_v24 = vld [vmem:[%s6537_s6 + $0xd50] sm:$0xff] }
 0x248   : > { %2156 = vmatmul.mubr.f32.gmra.mrb[100].mxu1 %v976_v26  ;;  %v1008_v26 = vld [vmem:[%s6537_s6 + $0xd90] sm:$0xff] }
 0x249   : > { %2161 = vmatprep.mubr.f32.mxu1 %v985_v40  ;;  %v1082_v40 = vld [vmem:[%s6537_s6 + $0xfe0] sm:$0xff] }
 0x24a   : > { %2653 = vmatmul.mubr.f32.gmra.mrb[116].mxu0 %v1042_v10  ;;  %v4046_v10 = vld [vmem:[#allocation8 + $0x48] sm:$0xff] }
 0x24b   : > { %2658 = vmatprep.mubr.f32.mxu0 %v1051_v30  ;;  %v5498_v20 = vpack.c.bf16 %v4048_v36, %v4046_v10  ;;  %v1083_v30 = vld [vmem:[%s6537_s6 + $0xfe8] sm:$0xff]  ;;  %v588_v10 = vld [vmem:[%s6537_s6 + $0x70] sm:$0xff]  ;;  %v1033_v36 = vld [vmem:[%s6537_s6 + $0xe58] sm:$0xff] }
 0x24c   : > { %2162 = vmatmul.mubr.f32.gmra.mrb[102].mxu1 %v984_v7  ;;  %v581_v7 = vld [vmem:[%s6537_s6 + $0x38] sm:$0xff] }
 0x24d   : > { %2167 = vmatprep.mubr.f32.mxu1 %v993_v45  ;;  %5499 = vmatprep.subr.bf16.mxu1 %v5498_v20  ;;  %v4050_v45 = vld [vmem:[#allocation8 + $0x68] sm:$0xff]  ;;  %v597_v20 = vld [vmem:[%s6537_s6 + $0xb8] sm:$0xff] }
 0x24e   : > { %2659 = vmatmul.mubr.f32.gmra.mrb[118].mxu0 %v1050_v35  ;;  %v7125_v35 = vpop.f32.mrb[36].mxu1  ;;  %5501 = vmatpush1.bf16.msra.mxu1 %v5500_v3  ;;  %v4056_v3 = vld [vmem:[#allocation8 + $0x98] sm:$0xff] }
 0x24f   : > { %2664 = vmatprep.mubr.f32.mxu0 %v1059_v32  ;;  %v1017_v32 = vld [vmem:[%s6537_s6 + $0xdd8] sm:$0xff] }
 0x250   : > { %2168 = vmatmul.mubr.f32.gmra.mrb[104].mxu1 %v992_v2  ;;  %v4051_v2 = vld [vmem:[#allocation8 + $0x70] sm:$0xff] }
 0x251   : > { %2173 = vmatprep.mubr.f32.mxu1 %v1001_v43  ;;  %v589_v43 = vld [vmem:[%s6537_s6 + $0x78] sm:$0xff] }
 0x252   : > { %2665 = vmatmul.mubr.f32.gmra.mrb[120].mxu0 %v1058_v42  ;;  %v7129_v42 = vpop.f32.mrb[37].mxu1 }
 0x253   : > { %2670 = vmatprep.mubr.f32.mxu0 %v1067_v56  ;;  %v7134_v50 = vpop.f32.mrb[38].mxu1  ;;  %v5502_v56 = vpack.c.bf16 %v4052_v49, %v4050_v45  ;;  %v605_v45 = vld [vmem:[%s6537_s6 + $0xf8] sm:$0xff] }
 0x254   : > { %2174 = vmatmul.mubr.f32.gmra.mrb[106].mxu1 %v1000_v24 }
 0x255   : > { %2179 = vmatprep.mubr.f32.mxu1 %v1009_v19  ;;  %5503 = vmatprep.subr.bf16.mxu1 %v5502_v56 }
 0x256   : > { %2671 = vmatmul.mubr.f32.gmra.mrb[122].mxu0 %v1066_v29  ;;  %v7137_v29 = vpop.f32.mrb[39].mxu1 }
 0x257   : > { %2676 = vmatprep.mubr.f32.mxu0 %v1075_v61  ;;  %v5504_v61 = vpack.c.bf16 %v4051_v2, %v4049_v60  ;;  %v7141_v24 = vpop.f32.mrb[40].mxu1  ;;  %v604_v60 = vld [vmem:[%s6537_s6 + $0xf0] sm:$0xff]  ;;  %v1049_v2 = vld [vmem:[%s6537_s6 + $0xed8] sm:$0xff] }
 0x258   : > { %2180 = vmatmul.mubr.f32.gmra.mrb[108].mxu1 %v1008_v26  ;;  %v7145_v19 = vpop.f32.mrb[41].mxu1 }
 0x259   : > { %2185 = vmatprep.mubr.f32.mxu1 %v1017_v32  ;;  %5505 = vmatpush1.bf16.msra.mxu1 %v5504_v61  ;;  %v7150_v26 = vpop.f32.mrb[42].mxu1  ;;  %v613_v61 = vld [vmem:[%s6537_s6 + $0x138] sm:$0xff] }
 0x25a   : > { %2677 = vmatmul.mubr.f32.gmra.mrb[124].mxu0 %v1074_v5  ;;  %v1024_v5 = vld [vmem:[%s6537_s6 + $0xe10] sm:$0xff] }
 0x25b   : > { %2682 = vmatprep.mubr.f32.mxu0 %v1083_v30  ;;  %v4054_v30 = vld [vmem:[#allocation8 + $0x88] sm:$0xff] }
 0x25c   : > { %2186 = vmatmul.mubr.f32.gmra.mrb[110].mxu1 %v1016_v48  ;;  %v5506_v32 = vpack.c.bf16 %v4056_v3, %v4054_v30  ;;  %v7153_v48 = vpop.f32.mrb[43].mxu1  ;;  %v4057_v3 = vld [vmem:[#allocation8 + $0xa0] sm:$0xff] }
 0x25d   : > { %2191 = vmatprep.mubr.f32.mxu1 %v1025_v51  ;;  %v1040_v51 = vld [vmem:[%s6537_s6 + $0xe90] sm:$0xff]  ;;  %v7157_v56 = vpop.f32.mrb[44].mxu1 }
 0x25e   : > { %2683 = vmatmul.mubr.f32.gmra.mrb[126].mxu0 %v1082_v40  ;;  %v1041_v40 = vld [vmem:[%s6537_s6 + $0xe98] sm:$0xff]  ;;  %5507 = vmatprep.subr.bf16.mxu1 %v5506_v32 }
 0x25f   : > { %2753 = vmatprep.mubr.f32.mxu0 %v581_v7  ;;  %v4053_v7 = vld [vmem:[#allocation8 + $0x80] sm:$0xff] }
 0x260   : > { %2192 = vmatmul.mubr.f32.gmra.mrb[112].mxu1 %v1024_v5  ;;  %v612_v5 = vld [vmem:[%s6537_s6 + $0x130] sm:$0xff] }
 0x261   : > { %2197 = vmatprep.mubr.f32.mxu1 %v1033_v36  ;;  %v4058_v36 = vld [vmem:[#allocation8 + $0xa8] sm:$0xff] }
 0x262   : > { %2754 = vmatmul.mubr.f32.vlgmr.msra.gmra.mrb[0].mxu0 %v580_v37  ;;  %v4055_v37 = vld [vmem:[#allocation8 + $0x90] sm:$0xff] }
 0x263   : > { %2759 = vmatprep.mubr.f32.mxu0 %v589_v43  ;;  %v5508_v49 = vpack.c.bf16 %v4055_v37, %v4053_v7  ;;  %v7161_v43 = vpop.f32.mrb[45].mxu1  ;;  %v621_v7 = vld [vmem:[%s6537_s6 + $0x178] sm:$0xff] }
 0x264   : > { %2198 = vmatmul.mubr.f32.gmra.mrb[114].mxu1 %v1032_v21  ;;  %v1057_v21 = vld [vmem:[%s6537_s6 + $0xf18] sm:$0xff] }
 0x265   : > { %2203 = vmatprep.mubr.f32.mxu1 %v1041_v40  ;;  %5509 = vmatpush1.bf16.msra.mxu1 %v5508_v49  ;;  %v4059_v40 = vld [vmem:[#allocation8 + $0xb0] sm:$0xff] }
 0x266   : > { %2760 = vmatmul.mubr.f32.gmra.mrb[2].mxu0 %v588_v10  ;;  %v1048_v10 = vld [vmem:[%s6537_s6 + $0xed0] sm:$0xff]  ;;  %v5512_v37 = vpack.c.bf16 %v4059_v40, %v4057_v3  ;;  %v4061_v40 = vld [vmem:[#allocation8 + $0xc0] sm:$0xff] }
 0x267   : > { %2765 = vmatprep.mubr.f32.mxu0 %v597_v20  ;;  %v4060_v20 = vld [vmem:[#allocation8 + $0xb8] sm:$0xff] }
 0x268   : > { %2204 = vmatmul.mubr.f32.gmra.mrb[116].mxu1 %v1040_v51  ;;  %v5510_v30 = vpack.c.bf16 %v4060_v20, %v4058_v36  ;;  %v620_v51 = vld [vmem:[%s6537_s6 + $0x170] sm:$0xff]  ;;  %v4064_v20 = vld [vmem:[#allocation8 + $0xd8] sm:$0xff] }
 0x269   : > { %2209 = vmatprep.mubr.f32.mxu1 %v1049_v2  ;;  %v628_v36 = vld [vmem:[%s6537_s6 + $0x1b0] sm:$0xff] }
 0x26a   : > { %2766 = vmatmul.mubr.f32.gmra.mrb[4].mxu0 %v596_v17  ;;  %v7166_v17 = vpop.f32.mrb[46].mxu1  ;;  %5511 = vmatprep.subr.bf16.mxu1 %v5510_v30  ;;  %v1073_v30 = vld [vmem:[%s6537_s6 + $0xf98] sm:$0xff] }
 0x26b   : > { %2771 = vmatprep.mubr.f32.mxu0 %v605_v45  ;;  %8558 = vst [vmem:[#allocation18_spill] sm:$0xff] %v7166_v17  ;;  %v7169_v32 = vpop.f32.mrb[47].mxu1  ;;  %v1056_v45 = vld [vmem:[%s6537_s6 + $0xf10] sm:$0xff]  ;;  %5513 = vmatpush1.bf16.msra.mxu1 %v5512_v37 }
 0x26c   : > { %8559 = vst [vmem:[#allocation19_spill] sm:$0xff] %v7169_v32  ;;  %2210 = vmatmul.mubr.f32.gmra.mrb[118].mxu1 %v1048_v10  ;;  %v7173_v49 = vpop.f32.mrb[48].mxu1  ;;  %v1064_v10 = vld [vmem:[%s6537_s6 + $0xf50] sm:$0xff] }
 0x26d   : > { %2215 = vmatprep.mubr.f32.mxu1 %v1057_v21  ;;  %8560 = vst [vmem:[#allocation20_spill] sm:$0xff] %v7173_v49  ;;  %v7177_v2 = vpop.f32.mrb[49].mxu1  ;;  %v3527_v32 = vld [vmem:[%s6550_s26 + $0x10] sm:$0xff] }
 0x26e   : > { %2772 = vmatmul.mubr.f32.gmra.mrb[6].mxu0 %v604_v60  ;;  %v1065_v60 = vld [vmem:[%s6537_s6 + $0xf58] sm:$0xff]  ;;  %8561 = vst [vmem:[#allocation21_spill] sm:$0xff] %v7177_v2  ;;  %v7182_v21 = vpop.f32.mrb[50].mxu1 }
 0x26f   : > { %2777 = vmatprep.mubr.f32.mxu0 %v613_v61  ;;  %v629_v61 = vld [vmem:[%s6537_s6 + $0x1b8] sm:$0xff]  ;;  %8562 = vst [vmem:[#allocation22_spill] sm:$0xff] %v7182_v21  ;;  %v7185_v37 = vpop.f32.mrb[51].mxu1 }
 0x270   : > { %2216 = vmatmul.mubr.f32.gmra.mrb[120].mxu1 %v1056_v45  ;;  %8563 = vst [vmem:[#allocation23_spill] sm:$0xff] %v7185_v37  ;;  %v637_v2 = vld [vmem:[%s6537_s6 + $0x1f8] sm:$0xff] }
 0x271   : > { %2221 = vmatprep.mubr.f32.mxu1 %v1065_v60  ;;  %v7189_v60 = vpop.f32.mrb[52].mxu1  ;;  %v1081_v21 = vld [vmem:[%s6537_s6 + $0xfd8] sm:$0xff] }
 0x272   : > { %2778 = vmatmul.mubr.f32.gmra.mrb[8].mxu0 %v612_v5  ;;  %v4062_v5 = vld [vmem:[#allocation8 + $0xc8] sm:$0xff]  ;;  %8564 = vst [vmem:[#allocation24_spill] sm:$0xff] %v7189_v60  ;;  %v4067_v60 = vld [vmem:[#allocation8 + $0xf0] sm:$0xff]  ;;  %v653_v37 = vld [vmem:[%s6537_s6 + $0x278] sm:$0xff] }
 0x273   : > { %2783 = vmatprep.mubr.f32.mxu0 %v621_v7  ;;  %v5514_v3 = vpack.c.bf16 %v4064_v20, %v4062_v5  ;;  %v4063_v7 = vld [vmem:[#allocation8 + $0xd0] sm:$0xff]  ;;  %v7193_v5 = vpop.f32.mrb[53].mxu1  ;;  %v645_v20 = vld [vmem:[%s6537_s6 + $0x238] sm:$0xff] }
 0x274   : > { %v5516_v45 = vpack.c.bf16 %v4063_v7, %v4061_v40  ;;  %2222 = vmatmul.mubr.f32.gmra.mrb[122].mxu1 %v1064_v10  ;;  %8565 = vst [vmem:[#allocation25_spill] sm:$0xff] %v7193_v5  ;;  %v1080_v40 = vld [vmem:[%s6537_s6 + $0xfd0] sm:$0xff]  ;;  %v4066_v10 = vld [vmem:[#allocation8 + $0xe8] sm:$0xff]  ;;  %v4065_v7 = vld [vmem:[#allocation8 + $0xe0] sm:$0xff] }
 0x275   : > { %5515 = vmatprep.subr.bf16.mxu1 %v5514_v3  ;;  %2227 = vmatprep.mubr.f32.mxu1 %v1073_v30  ;;  %v4068_v3 = vld [vmem:[#allocation8 + $0xf8] sm:$0xff]  ;;  %v644_v30 = vld [vmem:[%s6537_s6 + $0x230] sm:$0xff]  ;;  %v5520_v5 = vpack.c.bf16 %v4067_v60, %v4065_v7 }
 0x276   : > { %2784 = vmatmul.mubr.f32.gmra.mrb[10].mxu0 %v620_v51  ;;  %v1072_v51 = vld [vmem:[%s6537_s6 + $0xf90] sm:$0xff]  ;;  %5517 = vmatpush1.bf16.msra.mxu1 %v5516_v45 }
 0x277   : > { %2789 = vmatprep.mubr.f32.mxu0 %v629_v61  ;;  %v636_v61 = vld [vmem:[%s6537_s6 + $0x1f0] sm:$0xff] }
 0x278   : > { %2228 = vmatmul.mubr.f32.gmra.mrb[124].mxu1 %v1072_v51  ;;  %v652_v51 = vld [vmem:[%s6537_s6 + $0x270] sm:$0xff] }
 0x279   : > { %2233 = vmatprep.mubr.f32.mxu1 %v1081_v21  ;;  %v660_v60 = vld [vmem:[%s6537_s6 + $0x2b0] sm:$0xff] }
 0x27a   : > { %2790 = vmatmul.mubr.f32.gmra.mrb[12].mxu0 %v628_v36  ;;  %v7197_v36 = vpop.f32.mrb[54].mxu1 }
 0x27b   : > { %2795 = vmatprep.mubr.f32.mxu0 %v637_v2  ;;  %8566 = vst [vmem:[#allocation26_spill] sm:$0xff] %v7197_v36  ;;  %v5518_v2 = vpack.c.bf16 %v4068_v3, %v4066_v10  ;;  %v7200_v45 = vpop.f32.mrb[55].mxu1  ;;  %v4070_v10 = vld [vmem:[#allocation8 + $0x108] sm:$0xff]  ;;  %v4072_v3 = vld [vmem:[#allocation8 + $0x118] sm:$0xff] }
 0x27c   : > { %8567 = vst [vmem:[#allocation27_spill] sm:$0xff] %v7200_v45  ;;  %2234 = vmatmul.mubr.f32.gmra.mrb[126].mxu1 %v1080_v40  ;;  %v7203_v21 = vpop.f32.mrb[56].mxu1  ;;  %v5522_v40 = vpack.c.bf16 %v4072_v3, %v4070_v10  ;;  %v4074_v10 = vld [vmem:[#allocation8 + $0x128] sm:$0xff]  ;;  %v4076_v3 = vld [vmem:[#allocation8 + $0x138] sm:$0xff] }
 0x27d   : > { %5519 = vmatprep.subr.bf16.mxu1 %v5518_v2  ;;  %8568 = vst [vmem:[#allocation28_spill] sm:$0xff] %v7203_v21  ;;  %v4077_v21 = vld [vmem:[#allocation8 + $0x140] sm:$0xff]  ;;  %v701_v36 = vld [vmem:[%s6537_s6 + $0x3f8] sm:$0xff] }
 0x27e   : > { %2796 = vmatmul.mubr.f32.gmra.mrb[14].mxu0 %v636_v61  ;;  %5521 = vmatpush1.bf16.msra.mxu1 %v5520_v5  ;;  %v7206_v61 = vpop.f32.mrb[57].mxu1  ;;  %v4071_v5 = vld [vmem:[#allocation8 + $0x110] sm:$0xff] }
 0x27f   : > { %2801 = vmatprep.mubr.f32.mxu0 %v645_v20  ;;  %8569 = vst [vmem:[#allocation29_spill] sm:$0xff] %v7206_v61  ;;  %v661_v20 = vld [vmem:[%s6537_s6 + $0x2b8] sm:$0xff]  ;;  %v7209_v45 = vpop.f32.mrb[58].mxu1  ;;  %5523 = vmatprep.subr.bf16.mxu1 %v5522_v40  ;;  %v668_v61 = vld [vmem:[%s6537_s6 + $0x2f0] sm:$0xff]  ;;  %v5526_v40 = vpack.c.bf16 %v4076_v3, %v4074_v10 }
 0x280   : > { %8570 = vst [vmem:[#allocation30_spill] sm:$0xff] %v7209_v45  ;;  %v7212_v2 = vpop.f32.mrb[59].mxu1  ;;  %v692_v10 = vld [vmem:[%s6537_s6 + $0x3b0] sm:$0xff] }
 0x281   : > { %8571 = vst [vmem:[#allocation31_spill] sm:$0xff] %v7212_v2 }
 0x282   : > { %2802 = vmatmul.mubr.f32.gmra.mrb[16].mxu0 %v644_v30  ;;  %v4069_v30 = vld [vmem:[#allocation8 + $0x100] sm:$0xff] }
 0x283   : > { %2807 = vmatprep.mubr.f32.mxu0 %v653_v37  ;;  %v669_v37 = vld [vmem:[%s6537_s6 + $0x2f8] sm:$0xff]  ;;  %v5524_v7 = vpack.c.bf16 %v4071_v5, %v4069_v30  ;;  %v676_v30 = vld [vmem:[%s6537_s6 + $0x330] sm:$0xff] }
 0x284   : > { %v4075_v5 = vld [vmem:[#allocation8 + $0x130] sm:$0xff] }
 0x285   : > { %5525 = vmatpush1.bf16.msra.mxu1 %v5524_v7 }
 0x286   : > { %2808 = vmatmul.mubr.f32.gmra.mrb[18].mxu0 %v652_v51  ;;  %v7215_v51 = vpop.f32.mrb[60].mxu1  ;;  %5527 = vmatprep.subr.bf16.mxu1 %v5526_v40  ;;  %v4082_v40 = vld [vmem:[#allocation8 + $0x168] sm:$0xff] }
 0x287   : > { %2813 = vmatprep.mubr.f32.mxu0 %v661_v20  ;;  %8572 = vst [vmem:[#allocation32_spill] sm:$0xff] %v7215_v51  ;;  %v7218_v45 = vpop.f32.mrb[61].mxu1  ;;  %v677_v20 = vld [vmem:[%s6537_s6 + $0x338] sm:$0xff] }
 0x288   : > { %8573 = vst [vmem:[#allocation33_spill] sm:$0xff] %v7218_v45  ;;  %v7221_v2 = vpop.f32.mrb[62].mxu1  ;;  %v693_v45 = vld [vmem:[%s6537_s6 + $0x3b8] sm:$0xff] }
 0x289   : > { %8574 = vst [vmem:[#allocation34_spill] sm:$0xff] %v7221_v2  ;;  %v7224_v7 = vpop.f32.mrb[63].mxu1  ;;  %v4080_v2 = vld [vmem:[#allocation8 + $0x158] sm:$0xff] }
 0x28a   : > { %2814 = vmatmul.mubr.f32.gmra.mrb[20].mxu0 %v660_v60  ;;  %v4073_v60 = vld [vmem:[#allocation8 + $0x120] sm:$0xff]  ;;  %8575 = vst [vmem:[#allocation35_spill] sm:$0xff] %v7224_v7  ;;  %v4079_v7 = vld [vmem:[#allocation8 + $0x150] sm:$0xff] }
 0x28b   : > { %2819 = vmatprep.mubr.f32.mxu0 %v669_v37  ;;  %v685_v37 = vld [vmem:[%s6537_s6 + $0x378] sm:$0xff]  ;;  %v5528_v51 = vpack.c.bf16 %v4075_v5, %v4073_v60  ;;  %v5532_v60 = vpack.c.bf16 %v4079_v7, %v4077_v21 }
 0x28c   : > { %v4084_v5 = vld [vmem:[#allocation8 + $0x178] sm:$0xff] }
 0x28d   : > { %5529 = vmatpush1.bf16.msra.mxu1 %v5528_v51  ;;  %v700_v51 = vld [vmem:[%s6537_s6 + $0x3f0] sm:$0xff]  ;;  %v725_v7 = vld [vmem:[%s6537_s6 + $0x4b8] sm:$0xff] }
 0x28e   : > { %2820 = vmatmul.mubr.f32.gmra.mrb[22].mxu0 %v668_v61  ;;  %v684_v61 = vld [vmem:[%s6537_s6 + $0x370] sm:$0xff] }
 0x28f   : > { %2825 = vmatprep.mubr.f32.mxu0 %v677_v20  ;;  %v4078_v20 = vld [vmem:[#allocation8 + $0x148] sm:$0xff] }
 0x290   : > { %v5530_v3 = vpack.c.bf16 %v4080_v2, %v4078_v20  ;;  %v5534_v2 = vpack.c.bf16 %v4084_v5, %v4082_v40  ;;  %v717_v20 = vld [vmem:[%s6537_s6 + $0x478] sm:$0xff]  ;;  %v4087_v40 = vld [vmem:[#allocation8 + $0x190] sm:$0xff] }
 0x291   : > { %v733_v5 = vld [vmem:[%s6537_s6 + $0x4f8] sm:$0xff] }
 0x292   : > { %2826 = vmatmul.mubr.f32.gmra.mrb[24].mxu0 %v676_v30  ;;  %5531 = vmatprep.subr.bf16.mxu1 %v5530_v3  ;;  %v709_v30 = vld [vmem:[%s6537_s6 + $0x438] sm:$0xff] }
 0x293   : > { %2831 = vmatprep.mubr.f32.mxu0 %v685_v37  ;;  %5533 = vmatpush1.bf16.msra.mxu1 %v5532_v60  ;;  %v4081_v37 = vld [vmem:[#allocation8 + $0x160] sm:$0xff]  ;;  %v4088_v3 = vld [vmem:[#allocation8 + $0x198] sm:$0xff]  ;;  %v724_v60 = vld [vmem:[%s6537_s6 + $0x4b0] sm:$0xff] }
 0x294   : > { %5535 = vmatprep.subr.bf16.mxu1 %v5534_v2  ;;  %v741_v2 = vld [vmem:[%s6537_s6 + $0x538] sm:$0xff] }
 0x296   : > { %2832 = vmatmul.mubr.f32.gmra.mrb[26].mxu0 %v684_v61  ;;  %v4083_v61 = vld [vmem:[#allocation8 + $0x170] sm:$0xff] }
 0x297   : > { %2837 = vmatprep.mubr.f32.mxu0 %v693_v45  ;;  %v708_v45 = vld [vmem:[%s6537_s6 + $0x430] sm:$0xff]  ;;  %v5536_v21 = vpack.c.bf16 %v4083_v61, %v4081_v37  ;;  %v4090_v61 = vld [vmem:[#allocation8 + $0x1a8] sm:$0xff] }
 0x299   : > { %5537 = vmatpush1.bf16.msra.mxu1 %v5536_v21  ;;  %v740_v21 = vld [vmem:[%s6537_s6 + $0x530] sm:$0xff] }
 0x29a   : > { %2838 = vmatmul.mubr.f32.gmra.mrb[28].mxu0 %v692_v10  ;;  %v4086_v10 = vld [vmem:[#allocation8 + $0x188] sm:$0xff] }
 0x29b   : > { %2843 = vmatprep.mubr.f32.mxu0 %v701_v36  ;;  %v716_v36 = vld [vmem:[%s6537_s6 + $0x470] sm:$0xff] }
 0x29e   : > { %2844 = vmatmul.mubr.f32.gmra.mrb[30].mxu0 %v700_v51  ;;  %v5538_v51 = vpack.c.bf16 %v4088_v3, %v4086_v10  ;;  %v4091_v10 = vld [vmem:[#allocation8 + $0x1b0] sm:$0xff]  ;;  %v749_v3 = vld [vmem:[%s6537_s6 + $0x578] sm:$0xff] }
 0x29f   : > { %2849 = vmatprep.mubr.f32.mxu0 %v709_v30  ;;  %v4085_v30 = vld [vmem:[#allocation8 + $0x180] sm:$0xff] }
 0x2a0   : > { %v5540_v37 = vpack.c.bf16 %v4087_v40, %v4085_v30  ;;  %5539 = vmatprep.subr.bf16.mxu1 %v5538_v51  ;;  %v757_v51 = vld [vmem:[%s6537_s6 + $0x5b8] sm:$0xff]  ;;  %v4094_v30 = vld [vmem:[#allocation8 + $0x1c8] sm:$0xff] }
 0x2a1   : > { %v4096_v40 = vld [vmem:[#allocation8 + $0x1d8] sm:$0xff] }
 0x2a2   : > { %2850 = vmatmul.mubr.f32.gmra.mrb[32].mxu0 %v708_v45  ;;  %5541 = vmatpush1.bf16.msra.mxu1 %v5540_v37  ;;  %v732_v45 = vld [vmem:[%s6537_s6 + $0x4f0] sm:$0xff]  ;;  %v4093_v37 = vld [vmem:[#allocation8 + $0x1c0] sm:$0xff] }
 0x2a3   : > { %2855 = vmatprep.mubr.f32.mxu0 %v717_v20  ;;  %v4092_v20 = vld [vmem:[#allocation8 + $0x1b8] sm:$0xff] }
 0x2a6   : > { %2856 = vmatmul.mubr.f32.gmra.mrb[34].mxu0 %v716_v36  ;;  %v5542_v36 = vpack.c.bf16 %v4092_v20, %v4090_v61  ;;  %v765_v20 = vld [vmem:[%s6537_s6 + $0x5f8] sm:$0xff] }
 0x2a7   : > { %2861 = vmatprep.mubr.f32.mxu0 %v725_v7  ;;  %v4089_v7 = vld [vmem:[#allocation8 + $0x1a0] sm:$0xff] }
 0x2a8   : > { %v5544_v49 = vpack.c.bf16 %v4091_v10, %v4089_v7  ;;  %5543 = vmatprep.subr.bf16.mxu1 %v5542_v36  ;;  %v4097_v7 = vld [vmem:[#allocation8 + $0x1e0] sm:$0xff]  ;;  %v4099_v10 = vld [vmem:[#allocation8 + $0x1f0] sm:$0xff] }
 0x2aa   : > { %2862 = vmatmul.mubr.f32.gmra.mrb[36].mxu0 %v724_v60  ;;  %5545 = vmatpush1.bf16.msra.mxu1 %v5544_v49  ;;  %v748_v60 = vld [vmem:[%s6537_s6 + $0x570] sm:$0xff]  ;;  %v4098_v49 = vld [vmem:[#allocation8 + $0x1e8] sm:$0xff] }
 0x2ab   : > { %2867 = vmatprep.mubr.f32.mxu0 %v733_v5  ;;  %v5546_v5 = vpack.c.bf16 %v4096_v40, %v4094_v30  ;;  %v772_v30 = vld [vmem:[%s6537_s6 + $0x630] sm:$0xff]  ;;  %v781_v40 = vld [vmem:[%s6537_s6 + $0x678] sm:$0xff] }
 0x2ad   : > { %5547 = vmatprep.subr.bf16.mxu1 %v5546_v5  ;;  %v780_v5 = vld [vmem:[%s6537_s6 + $0x670] sm:$0xff] }
 0x2ae   : > { %2868 = vmatmul.mubr.f32.gmra.mrb[38].mxu0 %v732_v45  ;;  %v4095_v45 = vld [vmem:[#allocation8 + $0x1d0] sm:$0xff] }
 0x2af   : > { %2873 = vmatprep.mubr.f32.mxu0 %v741_v2  ;;  %v756_v2 = vld [vmem:[%s6537_s6 + $0x5b0] sm:$0xff]  ;;  %v5548_v61 = vpack.c.bf16 %v4095_v45, %v4093_v37  ;;  %v789_v37 = vld [vmem:[%s6537_s6 + $0x6b8] sm:$0xff] }
 0x2b0   : > { %v788_v45 = vld [vmem:[%s6537_s6 + $0x6b0] sm:$0xff] }
 0x2b1   : > { %5549 = vmatpush1.bf16.msra.mxu1 %v5548_v61  ;;  %v796_v61 = vld [vmem:[%s6537_s6 + $0x6f0] sm:$0xff] }
 0x2b2   : > { %2874 = vmatmul.mubr.f32.gmra.mrb[40].mxu0 %v740_v21  ;;  %v4100_v21 = vld [vmem:[#allocation8 + $0x1f8] sm:$0xff] }
 0x2b3   : > { %2879 = vmatprep.mubr.f32.mxu0 %v749_v3  ;;  %v5550_v36 = vpack.c.bf16 %v4100_v21, %v4098_v49  ;;  %v764_v3 = vld [vmem:[%s6537_s6 + $0x5f0] sm:$0xff]  ;;  %v813_v21 = vld [vmem:[%s6537_s6 + $0x778] sm:$0xff] }
 0x2b4   : > { %v804_v49 = vld [vmem:[%s6537_s6 + $0x730] sm:$0xff] }
 0x2b5   : > { %5551 = vmatprep.subr.bf16.mxu1 %v5550_v36  ;;  %v812_v36 = vld [vmem:[%s6537_s6 + $0x770] sm:$0xff] }
 0x2b6   : > { %2880 = vmatmul.mubr.f32.gmra.mrb[42].mxu0 %v748_v60  ;;  %v5552_v60 = vpack.c.bf16 %v4099_v10, %v4097_v7  ;;  %v821_v7 = vld [vmem:[%s6537_s6 + $0x7b8] sm:$0xff]  ;;  %v820_v10 = vld [vmem:[%s6537_s6 + $0x7b0] sm:$0xff] }
 0x2b7   : > { %2885 = vmatprep.mubr.f32.mxu0 %v757_v51  ;;  %v773_v51 = vld [vmem:[%s6537_s6 + $0x638] sm:$0xff] }
 0x2b8   : > { %5553 = vmatpush1.bf16.msra.mxu1 %v5552_v60 }
 0x2ba   : > { %2886 = vmatmul.mubr.f32.gmra.mrb[44].mxu0 %v756_v2  ;;  %v797_v2 = vld [vmem:[%s6537_s6 + $0x6f8] sm:$0xff] }
 0x2bb   : > { %2891 = vmatprep.mubr.f32.mxu0 %v765_v20  ;;  %v805_v20 = vld [vmem:[%s6537_s6 + $0x738] sm:$0xff] }
 0x2be   : > { %2892 = vmatmul.mubr.f32.gmra.mrb[46].mxu0 %v764_v3  ;;  %v829_v3 = vld [vmem:[%s6537_s6 + $0x7f8] sm:$0xff] }
 0x2bf   : > { %2897 = vmatprep.mubr.f32.mxu0 %v773_v51 }
 0x2c2   : > { %2898 = vmatmul.mubr.f32.gmra.mrb[48].mxu0 %v772_v30  ;;  %v828_v30 = vld [vmem:[%s6537_s6 + $0x7f0] sm:$0xff] }
 0x2c3   : > { %2903 = vmatprep.mubr.f32.mxu0 %v781_v40  ;;  %v837_v40 = vld [vmem:[%s6537_s6 + $0x838] sm:$0xff] }
 0x2c6   : > { %2904 = vmatmul.mubr.f32.gmra.mrb[50].mxu0 %v780_v5 }
 0x2c7   : > { %2909 = vmatprep.mubr.f32.mxu0 %v789_v37 }
 0x2ca   : > { %2910 = vmatmul.mubr.f32.gmra.mrb[52].mxu0 %v788_v45  ;;  %v836_v45 = vld [vmem:[%s6537_s6 + $0x830] sm:$0xff] }
 0x2cb   : > { %2915 = vmatprep.mubr.f32.mxu0 %v797_v2  ;;  %v845_v2 = vld [vmem:[%s6537_s6 + $0x878] sm:$0xff] }
 0x2ce   : > { %2916 = vmatmul.mubr.f32.gmra.mrb[54].mxu0 %v796_v61 }
 0x2cf   : > { %2921 = vmatprep.mubr.f32.mxu0 %v805_v20 }
 0x2d2   : > { %2922 = vmatmul.mubr.f32.gmra.mrb[56].mxu0 %v804_v49  ;;  %v844_v49 = vld [vmem:[%s6537_s6 + $0x870] sm:$0xff] }
 0x2d3   : > { %2927 = vmatprep.mubr.f32.mxu0 %v813_v21  ;;  %v7263_v60 = vpop.f32.mrb[64].mxu1  ;;  %v853_v21 = vld [vmem:[%s6537_s6 + $0x8b8] sm:$0xff] }
 0x2d4   : > { %8576 = vst [vmem:[#allocation36_spill] sm:$0xff] %v7263_v60  ;;  %v7265_v51 = vpop.f32.mrb[65].mxu1 }
 0x2d5   : > { %8577 = vst [vmem:[#allocation37_spill] sm:$0xff] %v7265_v51 }
 0x2d6   : > { %2928 = vmatmul.mubr.f32.gmra.mrb[58].mxu0 %v812_v36 }
 0x2d7   : > { %2933 = vmatprep.mubr.f32.mxu0 %v821_v7  ;;  %v7269_v5 = vpop.f32.mrb[66].mxu1 }
 0x2d8   : > { %8578 = vst [vmem:[#allocation38_spill] sm:$0xff] %v7269_v5  ;;  %v7271_v37 = vpop.f32.mrb[67].mxu1 }
 0x2d9   : > { %8579 = vst [vmem:[#allocation39_spill] sm:$0xff] %v7271_v37 }
 0x2da   : > { %2934 = vmatmul.mubr.f32.gmra.mrb[60].mxu0 %v820_v10  ;;  %v852_v10 = vld [vmem:[%s6537_s6 + $0x8b0] sm:$0xff] }
 0x2db   : > { %2939 = vmatprep.mubr.f32.mxu0 %v829_v3  ;;  %v7275_v61 = vpop.f32.mrb[68].mxu1  ;;  %v861_v3 = vld [vmem:[%s6537_s6 + $0x8f8] sm:$0xff] }
 0x2dc   : > { %8580 = vst [vmem:[#allocation40_spill] sm:$0xff] %v7275_v61  ;;  %v7277_v20 = vpop.f32.mrb[69].mxu1  ;;  %v3526_v61 = vld [vmem:[%s6550_s26 + $0x8] sm:$0xff] }
 0x2dd   : > { %8581 = vst [vmem:[#allocation41_spill] sm:$0xff] %v7277_v20  ;;  %v3782_v5 = vmul.f32 0.1, %v3526_v61 }
 0x2de   : > { %2940 = vmatmul.mubr.f32.gmra.mrb[62].mxu0 %v828_v30 }
 0x2df   : > { %2945 = vmatprep.mubr.f32.mxu0 %v837_v40  ;;  %v7281_v36 = vpop.f32.mrb[70].mxu1 }
 0x2e0   : > { %8582 = vst [vmem:[#allocation42_spill] sm:$0xff] %v7281_v36  ;;  %v7283_v7 = vpop.f32.mrb[71].mxu1 }
 0x2e1   : > { %8583 = vst [vmem:[#allocation43_spill] sm:$0xff] %v7283_v7 }
 0x2e2   : > { %2946 = vmatmul.mubr.f32.gmra.mrb[64].mxu0 %v836_v45  ;;  %v860_v45 = vld [vmem:[%s6537_s6 + $0x8f0] sm:$0xff] }
 0x2e3   : > { %2951 = vmatprep.mubr.f32.mxu0 %v845_v2  ;;  %v7287_v30 = vpop.f32.mrb[72].mxu1  ;;  %v869_v2 = vld [vmem:[%s6537_s6 + $0x938] sm:$0xff] }
 0x2e4   : > { %8584 = vst [vmem:[#allocation44_spill] sm:$0xff] %v7287_v30  ;;  %v7289_v40 = vpop.f32.mrb[73].mxu1 }
 0x2e5   : > { %8585 = vst [vmem:[#allocation45_spill] sm:$0xff] %v7289_v40 }
 0x2e6   : > { %2952 = vmatmul.mubr.f32.gmra.mrb[66].mxu0 %v844_v49  ;;  %v868_v49 = vld [vmem:[%s6537_s6 + $0x930] sm:$0xff] }
 0x2e7   : > { %2957 = vmatprep.mubr.f32.mxu0 %v853_v21  ;;  %v7293_v20 = vpop.f32.mrb[74].mxu1  ;;  %v877_v21 = vld [vmem:[%s6537_s6 + $0x978] sm:$0xff] }
 0x2e8   : > { %8586 = vst [vmem:[#allocation46_spill] sm:$0xff] %v7293_v20  ;;  %v7295_v36 = vpop.f32.mrb[75].mxu1 }
 0x2e9   : > { %8587 = vst [vmem:[#allocation47_spill] sm:$0xff] %v7295_v36 }
 0x2ea   : > { %2958 = vmatmul.mubr.f32.gmra.mrb[68].mxu0 %v852_v10  ;;  %v876_v10 = vld [vmem:[%s6537_s6 + $0x970] sm:$0xff] }
 0x2eb   : > { %2963 = vmatprep.mubr.f32.mxu0 %v861_v3  ;;  %v7299_v7 = vpop.f32.mrb[76].mxu1  ;;  %v885_v3 = vld [vmem:[%s6537_s6 + $0x9b8] sm:$0xff] }
 0x2ec   : > { %8588 = vst [vmem:[#allocation48_spill] sm:$0xff] %v7299_v7  ;;  %v7301_v30 = vpop.f32.mrb[77].mxu1 }
 0x2ed   : > { %8589 = vst [vmem:[#allocation49_spill] sm:$0xff] %v7301_v30 }
 0x2ee   : > { %2964 = vmatmul.mubr.f32.gmra.mrb[70].mxu0 %v860_v45  ;;  %v884_v45 = vld [vmem:[%s6537_s6 + $0x9b0] sm:$0xff] }
 0x2ef   : > { %2969 = vmatprep.mubr.f32.mxu0 %v869_v2  ;;  %v7305_v40 = vpop.f32.mrb[78].mxu1  ;;  %v893_v2 = vld [vmem:[%s6537_s6 + $0x9f8] sm:$0xff] }
 0x2f0   : > { %8590 = vst [vmem:[#allocation50_spill] sm:$0xff] %v7305_v40  ;;  %v7307_v20 = vpop.f32.mrb[79].mxu1 }
 0x2f1   : > { %8591 = vst [vmem:[#allocation51_spill] sm:$0xff] %v7307_v20 }
 0x2f2   : > { %2970 = vmatmul.mubr.f32.gmra.mrb[72].mxu0 %v868_v49  ;;  %v892_v49 = vld [vmem:[%s6537_s6 + $0x9f0] sm:$0xff] }
 0x2f3   : > { %2975 = vmatprep.mubr.f32.mxu0 %v877_v21  ;;  %v7311_v36 = vpop.f32.mrb[80].mxu1  ;;  %v901_v21 = vld [vmem:[%s6537_s6 + $0xa38] sm:$0xff] }
 0x2f4   : > { %8592 = vst [vmem:[#allocation52_spill] sm:$0xff] %v7311_v36  ;;  %v7313_v7 = vpop.f32.mrb[81].mxu1 }
 0x2f5   : > { %8593 = vst [vmem:[#allocation53_spill] sm:$0xff] %v7313_v7 }
 0x2f6   : > { %2976 = vmatmul.mubr.f32.gmra.mrb[74].mxu0 %v876_v10  ;;  %v900_v10 = vld [vmem:[%s6537_s6 + $0xa30] sm:$0xff] }
 0x2f7   : > { %2981 = vmatprep.mubr.f32.mxu0 %v885_v3  ;;  %v7317_v30 = vpop.f32.mrb[82].mxu1  ;;  %v909_v3 = vld [vmem:[%s6537_s6 + $0xa78] sm:$0xff] }
 0x2f8   : > { %8594 = vst [vmem:[#allocation54_spill] sm:$0xff] %v7317_v30  ;;  %v7319_v40 = vpop.f32.mrb[83].mxu1 }
 0x2f9   : > { %8595 = vst [vmem:[#allocation55_spill] sm:$0xff] %v7319_v40 }
 0x2fa   : > { %2982 = vmatmul.mubr.f32.gmra.mrb[76].mxu0 %v884_v45  ;;  %v908_v45 = vld [vmem:[%s6537_s6 + $0xa70] sm:$0xff] }
 0x2fb   : > { %2987 = vmatprep.mubr.f32.mxu0 %v893_v2  ;;  %v7323_v20 = vpop.f32.mrb[84].mxu1  ;;  %v917_v2 = vld [vmem:[%s6537_s6 + $0xab8] sm:$0xff] }
 0x2fc   : > { %8596 = vst [vmem:[#allocation56_spill] sm:$0xff] %v7323_v20  ;;  %v7325_v36 = vpop.f32.mrb[85].mxu1 }
 0x2fd   : > { %8597 = vst [vmem:[#allocation57_spill] sm:$0xff] %v7325_v36 }
 0x2fe   : > { %2988 = vmatmul.mubr.f32.gmra.mrb[78].mxu0 %v892_v49  ;;  %v916_v49 = vld [vmem:[%s6537_s6 + $0xab0] sm:$0xff] }
 0x2ff   : > { %2993 = vmatprep.mubr.f32.mxu0 %v901_v21  ;;  %v7329_v7 = vpop.f32.mrb[86].mxu1  ;;  %v925_v21 = vld [vmem:[%s6537_s6 + $0xaf8] sm:$0xff] }
 0x300   : > { %8598 = vst [vmem:[#allocation58_spill] sm:$0xff] %v7329_v7  ;;  %v7331_v30 = vpop.f32.mrb[87].mxu1 }
 0x301   : > { %8599 = vst [vmem:[#allocation59_spill] sm:$0xff] %v7331_v30 }
 0x302   : > { %2994 = vmatmul.mubr.f32.gmra.mrb[80].mxu0 %v900_v10  ;;  %v924_v10 = vld [vmem:[%s6537_s6 + $0xaf0] sm:$0xff] }
 0x303   : > { %2999 = vmatprep.mubr.f32.mxu0 %v909_v3  ;;  %v7335_v40 = vpop.f32.mrb[88].mxu1  ;;  %v933_v3 = vld [vmem:[%s6537_s6 + $0xb38] sm:$0xff] }
 0x304   : > { %8600 = vst [vmem:[#allocation60_spill] sm:$0xff] %v7335_v40  ;;  %v7337_v20 = vpop.f32.mrb[89].mxu1 }
 0x305   : > { %8601 = vst [vmem:[#allocation61_spill] sm:$0xff] %v7337_v20 }
 0x306   : > { %3000 = vmatmul.mubr.f32.gmra.mrb[82].mxu0 %v908_v45  ;;  %v932_v45 = vld [vmem:[%s6537_s6 + $0xb30] sm:$0xff] }
 0x307   : > { %3005 = vmatprep.mubr.f32.mxu0 %v917_v2  ;;  %v7341_v36 = vpop.f32.mrb[90].mxu1  ;;  %v941_v2 = vld [vmem:[%s6537_s6 + $0xb78] sm:$0xff] }
 0x308   : > { %8602 = vst [vmem:[#allocation62_spill] sm:$0xff] %v7341_v36  ;;  %v7343_v7 = vpop.f32.mrb[91].mxu1 }
 0x309   : > { %8603 = vst [vmem:[#allocation63_spill] sm:$0xff] %v7343_v7 }
 0x30a   : > { %3006 = vmatmul.mubr.f32.gmra.mrb[84].mxu0 %v916_v49  ;;  %v940_v49 = vld [vmem:[%s6537_s6 + $0xb70] sm:$0xff] }
 0x30b   : > { %3011 = vmatprep.mubr.f32.mxu0 %v925_v21  ;;  %v7347_v30 = vpop.f32.mrb[92].mxu1  ;;  %v949_v21 = vld [vmem:[%s6537_s6 + $0xbb8] sm:$0xff] }
 0x30c   : > { %8604 = vst [vmem:[#allocation64_spill] sm:$0xff] %v7347_v30  ;;  %v7349_v40 = vpop.f32.mrb[93].mxu1 }
 0x30d   : > { %8605 = vst [vmem:[#allocation65_spill] sm:$0xff] %v7349_v40 }
 0x30e   : > { %3012 = vmatmul.mubr.f32.gmra.mrb[86].mxu0 %v924_v10  ;;  %v948_v10 = vld [vmem:[%s6537_s6 + $0xbb0] sm:$0xff] }
 0x30f   : > { %3017 = vmatprep.mubr.f32.mxu0 %v933_v3  ;;  %v7353_v20 = vpop.f32.mrb[94].mxu1  ;;  %v957_v3 = vld [vmem:[%s6537_s6 + $0xbf8] sm:$0xff] }
 0x310   : > { %8606 = vst [vmem:[#allocation66_spill] sm:$0xff] %v7353_v20  ;;  %v7355_v36 = vpop.f32.mrb[95].mxu1 }
 0x311   : > { %8607 = vst [vmem:[#allocation67_spill] sm:$0xff] %v7355_v36 }
 0x312   : > { %3018 = vmatmul.mubr.f32.gmra.mrb[88].mxu0 %v932_v45  ;;  %v956_v45 = vld [vmem:[%s6537_s6 + $0xbf0] sm:$0xff] }
 0x313   : > { %3023 = vmatprep.mubr.f32.mxu0 %v941_v2  ;;  %v7359_v7 = vpop.f32.mrb[96].mxu1  ;;  %v965_v2 = vld [vmem:[%s6537_s6 + $0xc38] sm:$0xff] }
 0x314   : > { %8608 = vst [vmem:[#allocation68_spill] sm:$0xff] %v7359_v7  ;;  %v7361_v30 = vpop.f32.mrb[97].mxu1 }
 0x315   : > { %8609 = vst [vmem:[#allocation69_spill] sm:$0xff] %v7361_v30 }
 0x316   : > { %3024 = vmatmul.mubr.f32.gmra.mrb[90].mxu0 %v940_v49  ;;  %v964_v49 = vld [vmem:[%s6537_s6 + $0xc30] sm:$0xff] }
 0x317   : > { %3029 = vmatprep.mubr.f32.mxu0 %v949_v21  ;;  %v7365_v40 = vpop.f32.mrb[98].mxu1  ;;  %v973_v21 = vld [vmem:[%s6537_s6 + $0xc78] sm:$0xff] }
 0x318   : > { %8610 = vst [vmem:[#allocation70_spill] sm:$0xff] %v7365_v40  ;;  %v7367_v20 = vpop.f32.mrb[99].mxu1 }
 0x319   : > { %8611 = vst [vmem:[#allocation71_spill] sm:$0xff] %v7367_v20 }
 0x31a   : > { %3030 = vmatmul.mubr.f32.gmra.mrb[92].mxu0 %v948_v10  ;;  %v972_v10 = vld [vmem:[%s6537_s6 + $0xc70] sm:$0xff] }
 0x31b   : > { %3035 = vmatprep.mubr.f32.mxu0 %v957_v3  ;;  %v7371_v36 = vpop.f32.mrb[100].mxu1  ;;  %v981_v3 = vld [vmem:[%s6537_s6 + $0xcb8] sm:$0xff] }
 0x31c   : > { %8612 = vst [vmem:[#allocation72_spill] sm:$0xff] %v7371_v36  ;;  %v7373_v7 = vpop.f32.mrb[101].mxu1 }
 0x31d   : > { %8613 = vst [vmem:[#allocation73_spill] sm:$0xff] %v7373_v7 }
 0x31e   : > { %3036 = vmatmul.mubr.f32.gmra.mrb[94].mxu0 %v956_v45  ;;  %v980_v45 = vld [vmem:[%s6537_s6 + $0xcb0] sm:$0xff] }
 0x31f   : > { %3041 = vmatprep.mubr.f32.mxu0 %v965_v2  ;;  %v7377_v30 = vpop.f32.mrb[102].mxu1  ;;  %v989_v2 = vld [vmem:[%s6537_s6 + $0xcf8] sm:$0xff] }
 0x320   : > { %8614 = vst [vmem:[#allocation74_spill] sm:$0xff] %v7377_v30  ;;  %v7379_v40 = vpop.f32.mrb[103].mxu1 }
 0x321   : > { %8615 = vst [vmem:[#allocation75_spill] sm:$0xff] %v7379_v40 }
 0x322   : > { %3042 = vmatmul.mubr.f32.gmra.mrb[96].mxu0 %v964_v49  ;;  %v988_v49 = vld [vmem:[%s6537_s6 + $0xcf0] sm:$0xff] }
 0x323   : > { %3047 = vmatprep.mubr.f32.mxu0 %v973_v21  ;;  %v7383_v20 = vpop.f32.mrb[104].mxu1  ;;  %v997_v21 = vld [vmem:[%s6537_s6 + $0xd38] sm:$0xff] }
 0x324   : > { %8616 = vst [vmem:[#allocation76_spill] sm:$0xff] %v7383_v20  ;;  %v7385_v36 = vpop.f32.mrb[105].mxu1 }
 0x325   : > { %8617 = vst [vmem:[#allocation77_spill] sm:$0xff] %v7385_v36 }
 0x326   : > { %3048 = vmatmul.mubr.f32.gmra.mrb[98].mxu0 %v972_v10  ;;  %v996_v10 = vld [vmem:[%s6537_s6 + $0xd30] sm:$0xff] }
 0x327   : > { %3053 = vmatprep.mubr.f32.mxu0 %v981_v3  ;;  %v7389_v7 = vpop.f32.mrb[106].mxu1  ;;  %v1005_v3 = vld [vmem:[%s6537_s6 + $0xd78] sm:$0xff] }
 0x328   : > { %8618 = vst [vmem:[#allocation78_spill] sm:$0xff] %v7389_v7  ;;  %v7391_v30 = vpop.f32.mrb[107].mxu1 }
 0x329   : > { %8619 = vst [vmem:[#allocation79_spill] sm:$0xff] %v7391_v30 }
 0x32a   : > { %3054 = vmatmul.mubr.f32.gmra.mrb[100].mxu0 %v980_v45  ;;  %v1004_v45 = vld [vmem:[%s6537_s6 + $0xd70] sm:$0xff] }
 0x32b   : > { %3059 = vmatprep.mubr.f32.mxu0 %v989_v2  ;;  %v7395_v40 = vpop.f32.mrb[108].mxu1  ;;  %v1013_v2 = vld [vmem:[%s6537_s6 + $0xdb8] sm:$0xff] }
 0x32c   : > { %8620 = vst [vmem:[#allocation80_spill] sm:$0xff] %v7395_v40  ;;  %v7397_v20 = vpop.f32.mrb[109].mxu1 }
 0x32d   : > { %8621 = vst [vmem:[#allocation81_spill] sm:$0xff] %v7397_v20  ;;  %v1012_v20 = vld [vmem:[%s6537_s6 + $0xdb0] sm:$0xff] }
 0x32e   : > { %3060 = vmatmul.mubr.f32.gmra.mrb[102].mxu0 %v988_v49 }
 0x32f   : > { %3065 = vmatprep.mubr.f32.mxu0 %v997_v21  ;;  %v7401_v36 = vpop.f32.mrb[110].mxu1 }
 0x330   : > { %8622 = vst [vmem:[#allocation82_spill] sm:$0xff] %v7401_v36  ;;  %v7403_v30 = vpop.f32.mrb[111].mxu1 }
 0x331   : > { %8623 = vst [vmem:[#allocation83_spill] sm:$0xff] %v7403_v30 }
 0x332   : > { %3066 = vmatmul.mubr.f32.gmra.mrb[104].mxu0 %v996_v10  ;;  %v3525_v10 = vld [vmem:[%s6550_s26] sm:$0xff] }
 0x333   : > { %3071 = vmatprep.mubr.f32.mxu0 %v1005_v3  ;;  %v1021_v3 = vld [vmem:[%s6537_s6 + $0xdf8] sm:$0xff]  ;;  %v7411_v37 = vpop.f32.mrb[112].mxu1  ;;  %v3781_v51 = vmul.f32 0.1, %v3525_v10  ;;  %v3783_v10 = vmul.f32 0.1, %v3527_v32 }
 0x334   : > { %8624 = vst [vmem:[#allocation84_spill] sm:$0xff] %v7411_v37  ;;  %v7413_v30 = vpop.f32.mrb[113].mxu1  ;;  %v1029_v37 = vld [vmem:[%s6537_s6 + $0xe38] sm:$0xff] }
 0x335   : > { %v2755_v7 = vpop.f32.mrb[0].mxu0  ;;  %8625 = vst [vmem:[#allocation85_spill] sm:$0xff] %v7413_v30 }
 0x336   : > { %v5586_v49 = vadd.f32 %v2755_v7, %v6981_v59  ;;  %v2757_v21 = vpop.f32.mrb[1].mxu0  ;;  %3072 = vmatmul.mubr.f32.gmra.mrb[106].mxu0 %v1004_v45 }
 0x337   : > { %v5587_v40 = vadd.f32 %v2757_v21, %v6985_v9  ;;  %3077 = vmatprep.mubr.f32.mxu0 %v1013_v2  ;;  %v3528_v9 = vld [vmem:[%s6550_s26 + $0x18] sm:$0xff]  ;;  %v1020_v21 = vld [vmem:[%s6537_s6 + $0xdf0] sm:$0xff]  ;;  %v7421_v17 = vpop.f32.mrb[114].mxu1 }
 0x338   : > { %v3653_v45 = vmul.f32 0.9, %v5586_v49  ;;  %8626 = vst [vmem:[#allocation86_spill] sm:$0xff] %v7421_v17  ;;  %v1028_v17 = vld [vmem:[%s6537_s6 + $0xe30] sm:$0xff] }
 0x339   : > { %v2761_v36 = vpop.f32.mrb[2].mxu0  ;;  %v3654_v60 = vmul.f32 0.9, %v5587_v40 }
 0x33a   : > { %v5588_v59 = vadd.f32 %v2761_v36, %v6989_v22  ;;  %v2763_v7 = vpop.f32.mrb[3].mxu0  ;;  %3078 = vmatmul.mubr.f32.gmra.mrb[108].mxu0 %v1012_v20  ;;  %v3784_v22 = vmul.f32 0.1, %v3528_v9  ;;  %v7425_v20 = vpop.f32.mrb[115].mxu1  ;;  %v7428_v49 = vadd.f32 %v3781_v51, %v3653_v45  ;;  %v1037_v9 = vld [vmem:[%s6537_s6 + $0xe78] sm:$0xff] }
 0x33b   : > { %v5589_v2 = vadd.f32 %v2763_v7, %v6993_v14  ;;  %3083 = vmatprep.mubr.f32.mxu0 %v1021_v3  ;;  %v7423_v30 = vadd.f32 %v3782_v5, %v3654_v60  ;;  %8627 = vst [vmem:[#allocation87_spill] sm:$0xff] %v7425_v20  ;;  %v3530_v3 = vld [vmem:[%s6550_s26 + $0x28] sm:$0xff]  ;;  %v3529_v5 = vld [vmem:[%s6550_s26 + $0x20] sm:$0xff] }
 0x33c   : > { %v3655_v40 = vmul.f32 0.9, %v5588_v59  ;;  %v3786_v32 = vmul.f32 0.1, %v3530_v3  ;;  %v3531_v3 = vld [vmem:[%s6550_s26 + $0x30] sm:$0xff] }
 0x33d   : > { %v2767_v61 = vpop.f32.mrb[4].mxu0  ;;  %4165 = vmatprep.mubr.f32.mxu1 %v7423_v30  ;;  %v3656_v60 = vmul.f32 0.9, %v5589_v2 }
 0x33e   : > { %v5590_v36 = vadd.f32 %v2767_v61, %v6997_v0  ;;  %v2769_v14 = vpop.f32.mrb[5].mxu0  ;;  %3084 = vmatmul.mubr.f32.gmra.mrb[110].mxu0 %v1020_v21  ;;  %4166 = vmatmul.mubr.f32.vlgmr.msra.gmra.mrb[128].mxu1 %v7428_v49  ;;  %v7437_v0 = vpop.f32.mrb[116].mxu1  ;;  %v7444_v2 = vadd.f32 %v3783_v10, %v3655_v40  ;;  %v3785_v61 = vmul.f32 0.1, %v3529_v5 }
 0x33f   : > { %v5591_v7 = vadd.f32 %v2769_v14, %v7001_v4  ;;  %3089 = vmatprep.mubr.f32.mxu0 %v1029_v37  ;;  %8628 = vst [vmem:[#allocation88_spill] sm:$0xff] %v7437_v0  ;;  %v7439_v59 = vadd.f32 %v3784_v22, %v3656_v60  ;;  %v7441_v4 = vpop.f32.mrb[117].mxu1  ;;  %v3532_v14 = vld [vmem:[%s6550_s26 + $0x38] sm:$0xff]  ;;  %v1036_v0 = vld [vmem:[%s6537_s6 + $0xe70] sm:$0xff] }
 0x340   : > { %8629 = vst [vmem:[#allocation89_spill] sm:$0xff] %v7441_v4  ;;  %v3657_v21 = vmul.f32 0.9, %v5590_v36  ;;  %v1045_v60 = vld [vmem:[%s6537_s6 + $0xeb8] sm:$0xff]  ;;  %v3788_v40 = vmul.f32 0.1, %v3532_v14 }
 0x341   : > { %v2773_v51 = vpop.f32.mrb[6].mxu0  ;;  %4171 = vmatprep.mubr.f32.mxu1 %v7439_v59  ;;  %v3658_v22 = vmul.f32 0.9, %v5591_v7  ;;  %v3533_v14 = vld [vmem:[%s6550_s26 + $0x40] sm:$0xff] }
 0x342   : > { %v5592_v37 = vadd.f32 %v2773_v51, %v7005_v16  ;;  %v2775_v45 = vpop.f32.mrb[7].mxu0  ;;  %3090 = vmatmul.mubr.f32.gmra.mrb[112].mxu0 %v1028_v17  ;;  %4172 = vmatmul.mubr.f32.gmra.mrb[130].mxu1 %v7444_v2  ;;  %v7453_v16 = vpop.f32.mrb[118].mxu1  ;;  %v7460_v7 = vadd.f32 %v3785_v61, %v3657_v21  ;;  %v3787_v51 = vmul.f32 0.1, %v3531_v3 }
 0x343   : > { %v5593_v20 = vadd.f32 %v2775_v45, %v7009_v11  ;;  %3095 = vmatprep.mubr.f32.mxu0 %v1037_v9  ;;  %8630 = vst [vmem:[#allocation90_spill] sm:$0xff] %v7453_v16  ;;  %v7455_v36 = vadd.f32 %v3786_v32, %v3658_v22  ;;  %v7457_v11 = vpop.f32.mrb[119].mxu1  ;;  %v3534_v45 = vld [vmem:[%s6550_s26 + $0x48] sm:$0xff]  ;;  %v1044_v16 = vld [vmem:[%s6537_s6 + $0xeb0] sm:$0xff]  ;;  %v1053_v22 = vld [vmem:[%s6537_s6 + $0xef8] sm:$0xff] }
 0x344   : > { %8631 = vst [vmem:[#allocation91_spill] sm:$0xff] %v7457_v11  ;;  %v3659_v9 = vmul.f32 0.9, %v5592_v37  ;;  %v3790_v21 = vmul.f32 0.1, %v3534_v45  ;;  %v3535_v45 = vld [vmem:[%s6550_s26 + $0x50] sm:$0xff] }
 0x345   : > { %v2779_v17 = vpop.f32.mrb[8].mxu0  ;;  %4177 = vmatprep.mubr.f32.mxu1 %v7455_v36  ;;  %v3660_v32 = vmul.f32 0.9, %v5593_v20 }
 0x346   : > { %v5594_v10 = vadd.f32 %v2779_v17, %v7013_v12  ;;  %v2781_v5 = vpop.f32.mrb[9].mxu0  ;;  %3096 = vmatmul.mubr.f32.gmra.mrb[114].mxu0 %v1036_v0  ;;  %4178 = vmatmul.mubr.f32.gmra.mrb[132].mxu1 %v7460_v7  ;;  %v7469_v12 = vpop.f32.mrb[120].mxu1  ;;  %v7476_v20 = vadd.f32 %v3787_v51, %v3659_v9  ;;  %v3789_v17 = vmul.f32 0.1, %v3533_v14 }
 0x347   : > { %v5595_v4 = vadd.f32 %v2781_v5, %v7017_v58  ;;  %3101 = vmatprep.mubr.f32.mxu0 %v1045_v60  ;;  %8632 = vst [vmem:[#allocation92_spill] sm:$0xff] %v7469_v12  ;;  %v7471_v37 = vadd.f32 %v3788_v40, %v3660_v32  ;;  %v7473_v58 = vpop.f32.mrb[121].mxu1  ;;  %v3536_v5 = vld [vmem:[%s6550_s26 + $0x58] sm:$0xff]  ;;  %v1052_v12 = vld [vmem:[%s6537_s6 + $0xef0] sm:$0xff] }
 0x348   : > { %8633 = vst [vmem:[#allocation93_spill] sm:$0xff] %v7473_v58  ;;  %v3661_v60 = vmul.f32 0.9, %v5594_v10  ;;  %v1061_v32 = vld [vmem:[%s6537_s6 + $0xf38] sm:$0xff]  ;;  %v3792_v9 = vmul.f32 0.1, %v3536_v5 }
 0x349   : > { %v2785_v0 = vpop.f32.mrb[10].mxu0  ;;  %4183 = vmatprep.mubr.f32.mxu1 %v7471_v37  ;;  %v3662_v40 = vmul.f32 0.9, %v5595_v4  ;;  %v3537_v5 = vld [vmem:[%s6550_s26 + $0x60] sm:$0xff] }
 0x34a   : > { %v5596_v61 = vadd.f32 %v2785_v0, %v7021_v18  ;;  %v2787_v3 = vpop.f32.mrb[11].mxu0  ;;  %3102 = vmatmul.mubr.f32.gmra.mrb[116].mxu0 %v1044_v16  ;;  %4184 = vmatmul.mubr.f32.gmra.mrb[134].mxu1 %v7476_v20  ;;  %v7485_v18 = vpop.f32.mrb[122].mxu1  ;;  %v7492_v4 = vadd.f32 %v3789_v17, %v3661_v60  ;;  %v3791_v0 = vmul.f32 0.1, %v3535_v45 }
 0x34b   : > { %v5597_v11 = vadd.f32 %v2787_v3, %v7025_v27  ;;  %3107 = vmatprep.mubr.f32.mxu0 %v1053_v22  ;;  %8634 = vst [vmem:[#allocation94_spill] sm:$0xff] %v7485_v18  ;;  %v7487_v10 = vadd.f32 %v3790_v21, %v3662_v40  ;;  %v7489_v27 = vpop.f32.mrb[123].mxu1  ;;  %v3538_v3 = vld [vmem:[%s6550_s26 + $0x68] sm:$0xff]  ;;  %v1060_v18 = vld [vmem:[%s6537_s6 + $0xf30] sm:$0xff]  ;;  %v1069_v40 = vld [vmem:[%s6537_s6 + $0xf78] sm:$0xff] }
 0x34c   : > { %8635 = vst [vmem:[#allocation95_spill] sm:$0xff] %v7489_v27  ;;  %v3663_v22 = vmul.f32 0.9, %v5596_v61  ;;  %v3794_v60 = vmul.f32 0.1, %v3538_v3  ;;  %v3539_v3 = vld [vmem:[%s6550_s26 + $0x70] sm:$0xff] }
 0x34d   : > { %v2791_v16 = vpop.f32.mrb[12].mxu0  ;;  %4189 = vmatprep.mubr.f32.mxu1 %v7487_v10  ;;  %v3664_v21 = vmul.f32 0.9, %v5597_v11 }
 0x34e   : > { %v5598_v51 = vadd.f32 %v2791_v16, %v7029_v25  ;;  %v2793_v14 = vpop.f32.mrb[13].mxu0  ;;  %3108 = vmatmul.mubr.f32.gmra.mrb[118].mxu0 %v1052_v12  ;;  %4190 = vmatmul.mubr.f32.gmra.mrb[136].mxu1 %v7492_v4  ;;  %v7501_v25 = vpop.f32.mrb[124].mxu1  ;;  %v7508_v11 = vadd.f32 %v3791_v0, %v3663_v22  ;;  %v3793_v16 = vmul.f32 0.1, %v3537_v5 }
 0x34f   : > { %v5599_v58 = vadd.f32 %v2793_v14, %v7033_v33  ;;  %3113 = vmatprep.mubr.f32.mxu0 %v1061_v32  ;;  %8636 = vst [vmem:[#allocation96_spill] sm:$0xff] %v7501_v25  ;;  %v7503_v61 = vadd.f32 %v3792_v9, %v3664_v21  ;;  %v7505_v33 = vpop.f32.mrb[125].mxu1  ;;  %v3540_v14 = vld [vmem:[%s6550_s26 + $0x78] sm:$0xff]  ;;  %v1068_v25 = vld [vmem:[%s6537_s6 + $0xf70] sm:$0xff] }
 0x350   : > { %8637 = vst [vmem:[#allocation97_spill] sm:$0xff] %v7505_v33  ;;  %v3665_v32 = vmul.f32 0.9, %v5598_v51  ;;  %v1077_v21 = vld [vmem:[%s6537_s6 + $0xfb8] sm:$0xff]  ;;  %v3796_v22 = vmul.f32 0.1, %v3540_v14 }
 0x351   : > { %v2797_v12 = vpop.f32.mrb[14].mxu0  ;;  %4195 = vmatprep.mubr.f32.mxu1 %v7503_v61  ;;  %v3666_v9 = vmul.f32 0.9, %v5599_v58  ;;  %v3541_v14 = vld [vmem:[%s6550_s26 + $0x80] sm:$0xff] }
 0x352   : > { %v5600_v17 = vadd.f32 %v2797_v12, %v7037_v39  ;;  %v2799_v45 = vpop.f32.mrb[15].mxu0  ;;  %3114 = vmatmul.mubr.f32.gmra.mrb[120].mxu0 %v1060_v18  ;;  %4196 = vmatmul.mubr.f32.gmra.mrb[138].mxu1 %v7508_v11  ;;  %v7517_v39 = vpop.f32.mrb[126].mxu1  ;;  %v7524_v58 = vadd.f32 %v3793_v16, %v3665_v32  ;;  %v3795_v12 = vmul.f32 0.1, %v3539_v3 }
 0x353   : > { %v5601_v27 = vadd.f32 %v2799_v45, %v7041_v31  ;;  %3119 = vmatprep.mubr.f32.mxu0 %v1069_v40  ;;  %8638 = vst [vmem:[#allocation98_spill] sm:$0xff] %v7517_v39  ;;  %v7519_v51 = vadd.f32 %v3794_v60, %v3666_v9  ;;  %v7521_v31 = vpop.f32.mrb[127].mxu1  ;;  %v3542_v45 = vld [vmem:[%s6550_s26 + $0x88] sm:$0xff]  ;;  %v1076_v39 = vld [vmem:[%s6537_s6 + $0xfb0] sm:$0xff]  ;;  %v1085_v9 = vld [vmem:[%s6537_s6 + $0xff8] sm:$0xff] }
 0x354   : > { %8639 = vst [vmem:[#allocation99_spill] sm:$0xff] %v7521_v31  ;;  %v3667_v40 = vmul.f32 0.9, %v5600_v17  ;;  %v3798_v17 = vmul.f32 0.1, %v3542_v45 }
 0x355   : > { %v2803_v18 = vpop.f32.mrb[16].mxu0  ;;  %4201 = vmatprep.mubr.f32.mxu1 %v7519_v51  ;;  %v3668_v60 = vmul.f32 0.9, %v5601_v27 }
 0x356   : > { %v5602_v0 = vadd.f32 %v2803_v18, %v7045_v47  ;;  %v2805_v5 = vpop.f32.mrb[17].mxu0  ;;  %3120 = vmatmul.mubr.f32.gmra.mrb[122].mxu0 %v1068_v25  ;;  %4202 = vmatmul.mubr.f32.gmra.mrb[140].mxu1 %v7524_v58  ;;  %v3544_v18 = vld [vmem:[%s6550_s26 + $0x98] sm:$0xff] }
 0x357   : > { %v5603_v33 = vadd.f32 %v2805_v5, %v7049_v38  ;;  %3125 = vmatprep.mubr.f32.mxu0 %v1077_v21  ;;  %v7533_v25 = vadd.f32 %v3796_v22, %v3668_v60  ;;  %v7536_v38 = vadd.f32 %v3795_v12, %v3667_v40  ;;  %v3797_v21 = vmul.f32 0.1, %v3541_v14  ;;  %v1084_v5 = vld [vmem:[%s6537_s6 + $0xff0] sm:$0xff]  ;;  %v3546_v14 = vld [vmem:[%s6550_s26 + $0xa8] sm:$0xff] }
 0x358   : > { %v3669_v3 = vmul.f32 0.9, %v5602_v0  ;;  %v3543_v22 = vld [vmem:[%s6550_s26 + $0x90] sm:$0xff] }
 0x359   : > { %v2809_v47 = vpop.f32.mrb[18].mxu0  ;;  %4207 = vmatprep.mubr.f32.mxu1 %v7533_v25  ;;  %v3670_v31 = vmul.f32 0.9, %v5603_v33  ;;  %v3799_v60 = vmul.f32 0.1, %v3543_v22  ;;  %v3547_v22 = vld [vmem:[%s6550_s26 + $0xb0] sm:$0xff] }
 0x35a   : > { %v5604_v32 = vadd.f32 %v2809_v47, %v7053_v44  ;;  %v2811_v16 = vpop.f32.mrb[19].mxu0  ;;  %3126 = vmatmul.mubr.f32.gmra.mrb[124].mxu0 %v1076_v39  ;;  %4208 = vmatmul.mubr.f32.gmra.mrb[142].mxu1 %v7536_v38  ;;  %v3800_v39 = vmul.f32 0.1, %v3544_v18  ;;  %v7547_v12 = vadd.f32 %v3797_v21, %v3669_v3  ;;  %v3545_v47 = vld [vmem:[%s6550_s26 + $0xa0] sm:$0xff] }
 0x35b   : > { %v5605_v27 = vadd.f32 %v2811_v16, %v7057_v53  ;;  %3131 = vmatprep.mubr.f32.mxu0 %v1085_v9  ;;  %v7544_v45 = vadd.f32 %v3798_v17, %v3670_v31  ;;  %v3801_v18 = vmul.f32 0.1, %v3545_v47  ;;  %v3549_v47 = vld [vmem:[%s6550_s26 + $0xc0] sm:$0xff] }
 0x35c   : > { %v3671_v53 = vmul.f32 0.9, %v5604_v32 }
 0x35d   : > { %v2815_v44 = vpop.f32.mrb[20].mxu0  ;;  %4213 = vmatprep.mubr.f32.mxu1 %v7544_v45  ;;  %v3672_v9 = vmul.f32 0.9, %v5605_v27 }
 0x35e   : > { %v5606_v0 = vadd.f32 %v2815_v44, %v7061_v54  ;;  %v2817_v40 = vpop.f32.mrb[21].mxu0  ;;  %3132 = vmatmul.mubr.f32.gmra.mrb[126].mxu0 %v1084_v5  ;;  %4214 = vmatmul.mubr.f32.gmra.mrb[144].mxu1 %v7547_v12  ;;  %v3802_v54 = vmul.f32 0.1, %v3546_v14  ;;  %v7557_v32 = vadd.f32 %v3799_v60, %v3671_v53  ;;  %v3803_v14 = vmul.f32 0.1, %v3547_v22  ;;  %v3551_v22 = vld [vmem:[%s6550_s26 + $0xd0] sm:$0xff] }
 0x35f   : > { %v5607_v33 = vadd.f32 %v2817_v40, %v7065_v57  ;;  %v7554_v17 = vadd.f32 %v3800_v39, %v3672_v9  ;;  %v3548_v57 = vld [vmem:[%s6550_s26 + $0xb8] sm:$0xff] }
 0x360   : > { %v3673_v21 = vmul.f32 0.9, %v5606_v0 }
 0x361   : > { %v2821_v31 = vpop.f32.mrb[22].mxu0  ;;  %4219 = vmatprep.mubr.f32.mxu1 %v7554_v17  ;;  %v3674_v27 = vmul.f32 0.9, %v5607_v33 }
 0x362   : > { %v5608_v16 = vadd.f32 %v2821_v31, %v7069_v62  ;;  %v2823_v3 = vpop.f32.mrb[23].mxu0  ;;  %4220 = vmatmul.mubr.f32.gmra.mrb[146].mxu1 %v7557_v32  ;;  %v3804_v62 = vmul.f32 0.1, %v3548_v57  ;;  %v7567_v0 = vadd.f32 %v3801_v18, %v3673_v21  ;;  %v3805_v57 = vmul.f32 0.1, %v3549_v47  ;;  %v3553_v47 = vld [vmem:[%s6550_s26 + $0xe0] sm:$0xff] }
 0x363   : > { %v5609_v5 = vadd.f32 %v2823_v3, %v7073_v63  ;;  %v7564_v39 = vadd.f32 %v3802_v54, %v3674_v27  ;;  %v3550_v63 = vld [vmem:[%s6550_s26 + $0xc8] sm:$0xff] }
 0x364   : > { %v3675_v60 = vmul.f32 0.9, %v5608_v16 }
 0x365   : > { %v2827_v44 = vpop.f32.mrb[24].mxu0  ;;  %4225 = vmatprep.mubr.f32.mxu1 %v7564_v39  ;;  %v3676_v33 = vmul.f32 0.9, %v5609_v5 }
 0x366   : > { %v5610_v40 = vadd.f32 %v2827_v44, %v7077_v1  ;;  %v2829_v53 = vpop.f32.mrb[25].mxu0  ;;  %4226 = vmatmul.mubr.f32.gmra.mrb[148].mxu1 %v7567_v0  ;;  %v3806_v1 = vmul.f32 0.1, %v3550_v63  ;;  %v7577_v16 = vadd.f32 %v3803_v14, %v3675_v60  ;;  %v3807_v63 = vmul.f32 0.1, %v3551_v22  ;;  %v3555_v22 = vld [vmem:[%s6550_s26 + $0xf0] sm:$0xff] }
 0x367   : > { %v5611_v9 = vadd.f32 %v2829_v53, %v7081_v6  ;;  %v7574_v54 = vadd.f32 %v3804_v62, %v3676_v33  ;;  %v3552_v6 = vld [vmem:[%s6550_s26 + $0xd8] sm:$0xff] }
 0x368   : > { %v3677_v18 = vmul.f32 0.9, %v5610_v40 }
 0x369   : > { %v2833_v31 = vpop.f32.mrb[26].mxu0  ;;  %4231 = vmatprep.mubr.f32.mxu1 %v7574_v54  ;;  %v3678_v5 = vmul.f32 0.9, %v5611_v9 }
 0x36a   : > { %v5612_v3 = vadd.f32 %v2833_v31, %v7086_v15  ;;  %v2835_v21 = vpop.f32.mrb[27].mxu0  ;;  %4232 = vmatmul.mubr.f32.gmra.mrb[150].mxu1 %v7577_v16  ;;  %v3808_v15 = vmul.f32 0.1, %v3552_v6  ;;  %v7587_v40 = vadd.f32 %v3805_v57, %v3677_v18  ;;  %v3809_v6 = vmul.f32 0.1, %v3553_v47  ;;  %v3557_v47 = vld [vmem:[%s6550_s26 + $0x100] sm:$0xff] }
 0x36b   : > { %v5613_v27 = vadd.f32 %v2835_v21, %v7089_v28  ;;  %v7584_v62 = vadd.f32 %v3806_v1, %v3678_v5  ;;  %v3554_v28 = vld [vmem:[%s6550_s26 + $0xe8] sm:$0xff] }
 0x36c   : > { %v3679_v14 = vmul.f32 0.9, %v5612_v3 }
 0x36d   : > { %v2839_v44 = vpop.f32.mrb[28].mxu0  ;;  %4237 = vmatprep.mubr.f32.mxu1 %v7584_v62  ;;  %v3680_v9 = vmul.f32 0.9, %v5613_v27 }
 0x36e   : > { %v5614_v53 = vadd.f32 %v2839_v44, %v7093_v34  ;;  %v2841_v60 = vpop.f32.mrb[29].mxu0  ;;  %4238 = vmatmul.mubr.f32.gmra.mrb[152].mxu1 %v7587_v40  ;;  %v3810_v34 = vmul.f32 0.1, %v3554_v28  ;;  %v7597_v3 = vadd.f32 %v3807_v63, %v3679_v14  ;;  %v3811_v28 = vmul.f32 0.1, %v3555_v22  ;;  %v3559_v22 = vld [vmem:[%s6550_s26 + $0x110] sm:$0xff] }
 0x36f   : > { %v5615_v33 = vadd.f32 %v2841_v60, %v7097_v41  ;;  %v7594_v1 = vadd.f32 %v3808_v15, %v3680_v9  ;;  %v3556_v41 = vld [vmem:[%s6550_s26 + $0xf8] sm:$0xff] }
 0x370   : > { %v3681_v57 = vmul.f32 0.9, %v5614_v53 }
 0x371   : > { %v2845_v31 = vpop.f32.mrb[30].mxu0  ;;  %4243 = vmatprep.mubr.f32.mxu1 %v7594_v1  ;;  %v3682_v27 = vmul.f32 0.9, %v5615_v33 }
 0x372   : > { %v5616_v21 = vadd.f32 %v2845_v31, %v7102_v8  ;;  %v2847_v18 = vpop.f32.mrb[31].mxu0  ;;  %4244 = vmatmul.mubr.f32.gmra.mrb[154].mxu1 %v7597_v3  ;;  %v3812_v8 = vmul.f32 0.1, %v3556_v41  ;;  %v7607_v53 = vadd.f32 %v3809_v6, %v3681_v57  ;;  %v3813_v41 = vmul.f32 0.1, %v3557_v47  ;;  %v3561_v47 = vld [vmem:[%s6550_s26 + $0x120] sm:$0xff] }
 0x373   : > { %v5617_v5 = vadd.f32 %v2847_v18, %v7105_v55  ;;  %v7604_v15 = vadd.f32 %v3810_v34, %v3682_v27  ;;  %v3558_v55 = vld [vmem:[%s6550_s26 + $0x108] sm:$0xff] }
 0x374   : > { %v3683_v63 = vmul.f32 0.9, %v5616_v21 }
 0x375   : > { %v2851_v44 = vpop.f32.mrb[32].mxu0  ;;  %4249 = vmatprep.mubr.f32.mxu1 %v7604_v15  ;;  %v3684_v33 = vmul.f32 0.9, %v5617_v5 }
 0x376   : > { %v5618_v60 = vadd.f32 %v2851_v44, %v7109_v13  ;;  %v2853_v14 = vpop.f32.mrb[33].mxu0  ;;  %4250 = vmatmul.mubr.f32.gmra.mrb[156].mxu1 %v7607_v53  ;;  %v3814_v13 = vmul.f32 0.1, %v3558_v55  ;;  %v7617_v21 = vadd.f32 %v3811_v28, %v3683_v63  ;;  %v3815_v55 = vmul.f32 0.1, %v3559_v22  ;;  %v3563_v22 = vld [vmem:[%s6550_s26 + $0x130] sm:$0xff] }
 0x377   : > { %v5619_v9 = vadd.f32 %v2853_v14, %v7113_v52  ;;  %v7614_v34 = vadd.f32 %v3812_v8, %v3684_v33  ;;  %v3560_v52 = vld [vmem:[%s6550_s26 + $0x118] sm:$0xff] }
 0x378   : > { %v3685_v6 = vmul.f32 0.9, %v5618_v60 }
 0x379   : > { %v2857_v31 = vpop.f32.mrb[34].mxu0  ;;  %4255 = vmatprep.mubr.f32.mxu1 %v7614_v34  ;;  %v3686_v5 = vmul.f32 0.9, %v5619_v9 }
 0x37a   : > { %v5620_v18 = vadd.f32 %v2857_v31, %v7118_v46  ;;  %v2859_v57 = vpop.f32.mrb[35].mxu0  ;;  %4256 = vmatmul.mubr.f32.gmra.mrb[158].mxu1 %v7617_v21  ;;  %v3816_v46 = vmul.f32 0.1, %v3560_v52  ;;  %v7627_v60 = vadd.f32 %v3813_v41, %v3685_v6  ;;  %v3817_v52 = vmul.f32 0.1, %v3561_v47  ;;  %v3565_v47 = vld [vmem:[%s6550_s26 + $0x140] sm:$0xff] }
 0x37b   : > { %v5621_v27 = vadd.f32 %v2859_v57, %v7121_v23  ;;  %v7624_v8 = vadd.f32 %v3814_v13, %v3686_v5  ;;  %v3562_v23 = vld [vmem:[%s6550_s26 + $0x128] sm:$0xff] }
 0x37c   : > { %v3687_v28 = vmul.f32 0.9, %v5620_v18 }
 0x37d   : > { %v2863_v44 = vpop.f32.mrb[36].mxu0  ;;  %4261 = vmatprep.mubr.f32.mxu1 %v7624_v8  ;;  %v3688_v9 = vmul.f32 0.9, %v5621_v27 }
 0x37e   : > { %v5622_v14 = vadd.f32 %v2863_v44, %v7125_v35  ;;  %v2865_v63 = vpop.f32.mrb[37].mxu0  ;;  %4262 = vmatmul.mubr.f32.gmra.mrb[160].mxu1 %v7627_v60  ;;  %v3818_v35 = vmul.f32 0.1, %v3562_v23  ;;  %v7637_v18 = vadd.f32 %v3815_v55, %v3687_v28  ;;  %v3819_v23 = vmul.f32 0.1, %v3563_v22  ;;  %v3567_v22 = vld [vmem:[%s6550_s26 + $0x150] sm:$0xff] }
 0x37f   : > { %v5623_v33 = vadd.f32 %v2865_v63, %v7129_v42  ;;  %v7634_v13 = vadd.f32 %v3816_v46, %v3688_v9  ;;  %v3564_v42 = vld [vmem:[%s6550_s26 + $0x138] sm:$0xff] }
 0x380   : > { %v3689_v41 = vmul.f32 0.9, %v5622_v14 }
 0x381   : > { %v2869_v31 = vpop.f32.mrb[38].mxu0  ;;  %4267 = vmatprep.mubr.f32.mxu1 %v7634_v13  ;;  %v3690_v27 = vmul.f32 0.9, %v5623_v33 }
 0x382   : > { %v5624_v57 = vadd.f32 %v2869_v31, %v7134_v50  ;;  %v2871_v6 = vpop.f32.mrb[39].mxu0  ;;  %4268 = vmatmul.mubr.f32.gmra.mrb[162].mxu1 %v7637_v18  ;;  %v3820_v50 = vmul.f32 0.1, %v3564_v42  ;;  %v7647_v14 = vadd.f32 %v3817_v52, %v3689_v41  ;;  %v3821_v42 = vmul.f32 0.1, %v3565_v47  ;;  %v3569_v47 = vld [vmem:[%s6550_s26 + $0x160] sm:$0xff] }
 0x383   : > { %v5625_v5 = vadd.f32 %v2871_v6, %v7137_v29  ;;  %v7644_v46 = vadd.f32 %v3818_v35, %v3690_v27  ;;  %v3566_v29 = vld [vmem:[%s6550_s26 + $0x148] sm:$0xff] }
 0x384   : > { %v3691_v55 = vmul.f32 0.9, %v5624_v57 }
 0x385   : > { %v2875_v44 = vpop.f32.mrb[40].mxu0  ;;  %8640 = vst [vmem:[#allocation100_spill] sm:$0xff] %v7644_v46  ;;  %4273 = vmatprep.mubr.f32.mxu1 %v7644_v46  ;;  %v3692_v33 = vmul.f32 0.9, %v5625_v5 }
 0x386   : > { %v5626_v63 = vadd.f32 %v2875_v44, %v7141_v24  ;;  %v2877_v28 = vpop.f32.mrb[41].mxu0  ;;  %4274 = vmatmul.mubr.f32.gmra.mrb[164].mxu1 %v7647_v14  ;;  %v3822_v24 = vmul.f32 0.1, %v3566_v29  ;;  %v7657_v57 = vadd.f32 %v3819_v23, %v3691_v55  ;;  %v3823_v29 = vmul.f32 0.1, %v3567_v22  ;;  %v8648_v22 = vld [vmem:[#allocation19_spill] sm:$0xff] }
 0x387   : > { %v5627_v9 = vadd.f32 %v2877_v28, %v7145_v19  ;;  %v7654_v35 = vadd.f32 %v3820_v50, %v3692_v33  ;;  %v3568_v19 = vld [vmem:[%s6550_s26 + $0x158] sm:$0xff] }
 0x388   : > { %8642 = vst [vmem:[#allocation102_spill] sm:$0xff] %v7657_v57  ;;  %v3693_v52 = vmul.f32 0.9, %v5626_v63 }
 0x389   : > { %v2881_v31 = vpop.f32.mrb[42].mxu0  ;;  %8641 = vst [vmem:[#allocation101_spill] sm:$0xff] %v7654_v35  ;;  %4279 = vmatprep.mubr.f32.mxu1 %v7654_v35  ;;  %v3694_v5 = vmul.f32 0.9, %v5627_v9  ;;  %v3638_v35 = vld [vmem:[%s6550_s26 + $0x388] sm:$0xff] }
 0x38a   : > { %v5628_v6 = vadd.f32 %v2881_v31, %v7150_v26  ;;  %v2883_v41 = vpop.f32.mrb[43].mxu0  ;;  %4280 = vmatmul.mubr.f32.gmra.mrb[166].mxu1 %v7657_v57  ;;  %v3824_v26 = vmul.f32 0.1, %v3568_v19  ;;  %v7667_v63 = vadd.f32 %v3821_v42, %v3693_v52 }
 0x38b   : > { %v5629_v27 = vadd.f32 %v2883_v41, %v7153_v48  ;;  %v7664_v50 = vadd.f32 %v3822_v24, %v3694_v5  ;;  %v3570_v48 = vld [vmem:[%s6550_s26 + $0x168] sm:$0xff]  ;;  %v8646_v41 = vld [vmem:[#allocation18_spill] sm:$0xff]  ;;  %v3825_v5 = vmul.f32 0.1, %v3569_v47 }
 0x38c   : > { %8644 = vst [vmem:[#allocation104_spill] sm:$0xff] %v7667_v63  ;;  %v3695_v23 = vmul.f32 0.9, %v5628_v6 }
 0x38d   : > { %v2887_v44 = vpop.f32.mrb[44].mxu0  ;;  %8643 = vst [vmem:[#allocation103_spill] sm:$0xff] %v7664_v50  ;;  %4285 = vmatprep.mubr.f32.mxu1 %v7664_v50  ;;  %v3696_v9 = vmul.f32 0.9, %v5629_v27  ;;  %v3632_v50 = vld [vmem:[%s6550_s26 + $0x358] sm:$0xff] }
 0x38e   : > { %v5630_v28 = vadd.f32 %v2887_v44, %v7157_v56  ;;  %v2889_v55 = vpop.f32.mrb[45].mxu0  ;;  %4286 = vmatmul.mubr.f32.gmra.mrb[168].mxu1 %v7667_v63  ;;  %v3826_v56 = vmul.f32 0.1, %v3570_v48  ;;  %v7677_v6 = vadd.f32 %v3823_v29, %v3695_v23 }
 0x38f   : > { %v5631_v33 = vadd.f32 %v2889_v55, %v7161_v43  ;;  %v7674_v24 = vadd.f32 %v3824_v26, %v3696_v9  ;;  %v3572_v43 = vld [vmem:[%s6550_s26 + $0x178] sm:$0xff]  ;;  %v3571_v55 = vld [vmem:[%s6550_s26 + $0x170] sm:$0xff] }
 0x390   : > { %8647 = vst [vmem:[#allocation18_spill] sm:$0xff] %v7677_v6  ;;  %v3697_v19 = vmul.f32 0.9, %v5630_v28  ;;  %v3828_v9 = vmul.f32 0.1, %v3572_v43 }
 0x391   : > { %v2893_v31 = vpop.f32.mrb[46].mxu0  ;;  %8645 = vst [vmem:[#allocation105_spill] sm:$0xff] %v7674_v24  ;;  %4291 = vmatprep.mubr.f32.mxu1 %v7674_v24  ;;  %v3698_v27 = vmul.f32 0.9, %v5631_v33 }
 0x392   : > { %v5632_v52 = vadd.f32 %v2893_v31, %v8646_v41  ;;  %v2895_v42 = vpop.f32.mrb[47].mxu0  ;;  %4292 = vmatmul.mubr.f32.gmra.mrb[170].mxu1 %v7677_v6  ;;  %v8650_v31 = vld [vmem:[#allocation20_spill] sm:$0xff]  ;;  %v7687_v28 = vadd.f32 %v3825_v5, %v3697_v19  ;;  %v3827_v41 = vmul.f32 0.1, %v3571_v55  ;;  %v3573_v6 = vld [vmem:[%s6550_s26 + $0x180] sm:$0xff] }
 0x393   : > { %v5633_v44 = vadd.f32 %v2895_v42, %v8648_v22  ;;  %v7684_v48 = vadd.f32 %v3826_v56, %v3698_v27  ;;  %v3574_v42 = vld [vmem:[%s6550_s26 + $0x188] sm:$0xff]  ;;  %v8652_v22 = vld [vmem:[#allocation21_spill] sm:$0xff] }
 0x394   : > { %8651 = vst [vmem:[#allocation20_spill] sm:$0xff] %v7687_v28  ;;  %v3699_v47 = vmul.f32 0.9, %v5632_v52  ;;  %v3830_v27 = vmul.f32 0.1, %v3574_v42 }
 0x395   : > { %v2899_v26 = vpop.f32.mrb[48].mxu0  ;;  %8649 = vst [vmem:[#allocation19_spill] sm:$0xff] %v7684_v48  ;;  %4297 = vmatprep.mubr.f32.mxu1 %v7684_v48  ;;  %v3700_v33 = vmul.f32 0.9, %v5633_v44 }
 0x396   : > { %v5634_v23 = vadd.f32 %v2899_v26, %v8650_v31  ;;  %v2901_v29 = vpop.f32.mrb[49].mxu0  ;;  %4298 = vmatmul.mubr.f32.gmra.mrb[172].mxu1 %v7687_v28  ;;  %v8654_v26 = vld [vmem:[#allocation22_spill] sm:$0xff]  ;;  %v7697_v52 = vadd.f32 %v3827_v41, %v3699_v47  ;;  %v3829_v31 = vmul.f32 0.1, %v3573_v6  ;;  %v3575_v28 = vld [vmem:[%s6550_s26 + $0x190] sm:$0xff] }
 0x397   : > { %v5635_v24 = vadd.f32 %v2901_v29, %v8652_v22  ;;  %v7694_v43 = vadd.f32 %v3828_v9, %v3700_v33  ;;  %v3576_v29 = vld [vmem:[%s6550_s26 + $0x198] sm:$0xff]  ;;  %v8656_v22 = vld [vmem:[#allocation23_spill] sm:$0xff] }
 0x398   : > { %8655 = vst [vmem:[#allocation22_spill] sm:$0xff] %v7697_v52  ;;  %v3701_v55 = vmul.f32 0.9, %v5634_v23  ;;  %v3832_v33 = vmul.f32 0.1, %v3576_v29 }
 0x399   : > { %v2905_v56 = vpop.f32.mrb[50].mxu0  ;;  %8653 = vst [vmem:[#allocation21_spill] sm:$0xff] %v7694_v43  ;;  %4303 = vmatprep.mubr.f32.mxu1 %v7694_v43  ;;  %v3702_v44 = vmul.f32 0.9, %v5635_v24 }
 0x39a   : > { %v5636_v19 = vadd.f32 %v2905_v56, %v8654_v26  ;;  %v2907_v5 = vpop.f32.mrb[51].mxu0  ;;  %4304 = vmatmul.mubr.f32.gmra.mrb[174].mxu1 %v7697_v52  ;;  %v8658_v56 = vld [vmem:[#allocation24_spill] sm:$0xff]  ;;  %v7707_v23 = vadd.f32 %v3829_v31, %v3701_v55  ;;  %v3831_v26 = vmul.f32 0.1, %v3575_v28  ;;  %v3577_v52 = vld [vmem:[%s6550_s26 + $0x1a0] sm:$0xff] }
 0x39b   : > { %v5637_v48 = vadd.f32 %v2907_v5, %v8656_v22  ;;  %v7704_v42 = vadd.f32 %v3830_v27, %v3702_v44  ;;  %v3578_v5 = vld [vmem:[%s6550_s26 + $0x1a8] sm:$0xff]  ;;  %v8660_v22 = vld [vmem:[#allocation25_spill] sm:$0xff] }
 0x39c   : > { %8659 = vst [vmem:[#allocation24_spill] sm:$0xff] %v7707_v23  ;;  %v3703_v6 = vmul.f32 0.9, %v5636_v19  ;;  %v3834_v44 = vmul.f32 0.1, %v3578_v5 }
 0x39d   : > { %v2911_v9 = vpop.f32.mrb[52].mxu0  ;;  %8657 = vst [vmem:[#allocation23_spill] sm:$0xff] %v7704_v42  ;;  %4309 = vmatprep.mubr.f32.mxu1 %v7704_v42  ;;  %v3704_v24 = vmul.f32 0.9, %v5637_v48 }
 0x39e   : > { %v5638_v47 = vadd.f32 %v2911_v9, %v8658_v56  ;;  %v2913_v41 = vpop.f32.mrb[53].mxu0  ;;  %4310 = vmatmul.mubr.f32.gmra.mrb[176].mxu1 %v7707_v23  ;;  %v8662_v9 = vld [vmem:[#allocation26_spill] sm:$0xff]  ;;  %v7717_v19 = vadd.f32 %v3831_v26, %v3703_v6  ;;  %v3833_v56 = vmul.f32 0.1, %v3577_v52  ;;  %v3579_v23 = vld [vmem:[%s6550_s26 + $0x1b0] sm:$0xff] }
 0x39f   : > { %v5639_v43 = vadd.f32 %v2913_v41, %v8660_v22  ;;  %v7714_v29 = vadd.f32 %v3832_v33, %v3704_v24  ;;  %v3580_v41 = vld [vmem:[%s6550_s26 + $0x1b8] sm:$0xff]  ;;  %v8664_v22 = vld [vmem:[#allocation27_spill] sm:$0xff] }
 0x3a0   : > { %8663 = vst [vmem:[#allocation26_spill] sm:$0xff] %v7717_v19  ;;  %v3705_v28 = vmul.f32 0.9, %v5638_v47  ;;  %v3836_v24 = vmul.f32 0.1, %v3580_v41 }
 0x3a1   : > { %v2917_v27 = vpop.f32.mrb[54].mxu0  ;;  %8661 = vst [vmem:[#allocation25_spill] sm:$0xff] %v7714_v29  ;;  %4315 = vmatprep.mubr.f32.mxu1 %v7714_v29  ;;  %v3706_v48 = vmul.f32 0.9, %v5639_v43 }
 0x3a2   : > { %v5640_v55 = vadd.f32 %v2917_v27, %v8662_v9  ;;  %v2919_v31 = vpop.f32.mrb[55].mxu0  ;;  %4316 = vmatmul.mubr.f32.gmra.mrb[178].mxu1 %v7717_v19  ;;  %v8666_v27 = vld [vmem:[#allocation28_spill] sm:$0xff]  ;;  %v7727_v47 = vadd.f32 %v3833_v56, %v3705_v28  ;;  %v3835_v9 = vmul.f32 0.1, %v3579_v23  ;;  %v3581_v19 = vld [vmem:[%s6550_s26 + $0x1c0] sm:$0xff] }
 0x3a3   : > { %v5641_v42 = vadd.f32 %v2919_v31, %v8664_v22  ;;  %v7724_v5 = vadd.f32 %v3834_v44, %v3706_v48  ;;  %v3582_v31 = vld [vmem:[%s6550_s26 + $0x1c8] sm:$0xff]  ;;  %v8668_v22 = vld [vmem:[#allocation29_spill] sm:$0xff] }
 0x3a4   : > { %8667 = vst [vmem:[#allocation28_spill] sm:$0xff] %v7727_v47  ;;  %v3707_v52 = vmul.f32 0.9, %v5640_v55  ;;  %v3838_v48 = vmul.f32 0.1, %v3582_v31 }
 0x3a5   : > { %v2923_v33 = vpop.f32.mrb[56].mxu0  ;;  %8665 = vst [vmem:[#allocation27_spill] sm:$0xff] %v7724_v5  ;;  %4321 = vmatprep.mubr.f32.mxu1 %v7724_v5  ;;  %v3708_v43 = vmul.f32 0.9, %v5641_v42 }
 0x3a6   : > { %v5642_v6 = vadd.f32 %v2923_v33, %v8666_v27  ;;  %v2925_v26 = vpop.f32.mrb[57].mxu0  ;;  %4322 = vmatmul.mubr.f32.gmra.mrb[180].mxu1 %v7727_v47  ;;  %v8670_v33 = vld [vmem:[#allocation30_spill] sm:$0xff]  ;;  %v7737_v55 = vadd.f32 %v3835_v9, %v3707_v52  ;;  %v3837_v27 = vmul.f32 0.1, %v3581_v19  ;;  %v3583_v47 = vld [vmem:[%s6550_s26 + $0x1d0] sm:$0xff] }
 0x3a7   : > { %v5643_v29 = vadd.f32 %v2925_v26, %v8668_v22  ;;  %v7734_v41 = vadd.f32 %v3836_v24, %v3708_v43  ;;  %v3584_v26 = vld [vmem:[%s6550_s26 + $0x1d8] sm:$0xff]  ;;  %v8672_v22 = vld [vmem:[#allocation31_spill] sm:$0xff] }
 0x3a8   : > { %8671 = vst [vmem:[#allocation30_spill] sm:$0xff] %v7737_v55  ;;  %v3709_v23 = vmul.f32 0.9, %v5642_v6  ;;  %v3840_v43 = vmul.f32 0.1, %v3584_v26 }
 0x3a9   : > { %v2929_v44 = vpop.f32.mrb[58].mxu0  ;;  %8669 = vst [vmem:[#allocation29_spill] sm:$0xff] %v7734_v41  ;;  %4327 = vmatprep.mubr.f32.mxu1 %v7734_v41  ;;  %v3710_v42 = vmul.f32 0.9, %v5643_v29 }
 0x3aa   : > { %v5644_v28 = vadd.f32 %v2929_v44, %v8670_v33  ;;  %v2931_v56 = vpop.f32.mrb[59].mxu0  ;;  %4328 = vmatmul.mubr.f32.gmra.mrb[182].mxu1 %v7737_v55  ;;  %v8674_v44 = vld [vmem:[#allocation32_spill] sm:$0xff]  ;;  %v7747_v6 = vadd.f32 %v3837_v27, %v3709_v23  ;;  %v3839_v33 = vmul.f32 0.1, %v3583_v47  ;;  %v3585_v55 = vld [vmem:[%s6550_s26 + $0x1e0] sm:$0xff] }
 0x3ab   : > { %v5645_v5 = vadd.f32 %v2931_v56, %v8672_v22  ;;  %v7744_v31 = vadd.f32 %v3838_v48, %v3710_v42  ;;  %v3586_v56 = vld [vmem:[%s6550_s26 + $0x1e8] sm:$0xff]  ;;  %v8676_v22 = vld [vmem:[#allocation33_spill] sm:$0xff] }
 0x3ac   : > { %8675 = vst [vmem:[#allocation32_spill] sm:$0xff] %v7747_v6  ;;  %v3711_v19 = vmul.f32 0.9, %v5644_v28  ;;  %v3842_v42 = vmul.f32 0.1, %v3586_v56 }
 0x3ad   : > { %v2935_v24 = vpop.f32.mrb[60].mxu0  ;;  %8673 = vst [vmem:[#allocation31_spill] sm:$0xff] %v7744_v31  ;;  %4333 = vmatprep.mubr.f32.mxu1 %v7744_v31  ;;  %v3712_v29 = vmul.f32 0.9, %v5645_v5 }
 0x3ae   : > { %v5646_v52 = vadd.f32 %v2935_v24, %v8674_v44  ;;  %v2937_v9 = vpop.f32.mrb[61].mxu0  ;;  %4334 = vmatmul.mubr.f32.gmra.mrb[184].mxu1 %v7747_v6  ;;  %v8678_v24 = vld [vmem:[#allocation34_spill] sm:$0xff]  ;;  %v7757_v28 = vadd.f32 %v3839_v33, %v3711_v19  ;;  %v3841_v44 = vmul.f32 0.1, %v3585_v55  ;;  %v3587_v6 = vld [vmem:[%s6550_s26 + $0x1f0] sm:$0xff] }
 0x3af   : > { %v5647_v41 = vadd.f32 %v2937_v9, %v8676_v22  ;;  %v7754_v26 = vadd.f32 %v3840_v43, %v3712_v29  ;;  %v3588_v9 = vld [vmem:[%s6550_s26 + $0x1f8] sm:$0xff]  ;;  %v8680_v22 = vld [vmem:[#allocation35_spill] sm:$0xff] }
 0x3b0   : > { %8679 = vst [vmem:[#allocation34_spill] sm:$0xff] %v7757_v28  ;;  %v3713_v47 = vmul.f32 0.9, %v5646_v52  ;;  %v3844_v29 = vmul.f32 0.1, %v3588_v9 }
 0x3b1   : > { %v2941_v48 = vpop.f32.mrb[62].mxu0  ;;  %8677 = vst [vmem:[#allocation33_spill] sm:$0xff] %v7754_v26  ;;  %4339 = vmatprep.mubr.f32.mxu1 %v7754_v26  ;;  %v3714_v5 = vmul.f32 0.9, %v5647_v41 }
 0x3b2   : > { %v5648_v23 = vadd.f32 %v2941_v48, %v8678_v24  ;;  %v2943_v27 = vpop.f32.mrb[63].mxu0  ;;  %4340 = vmatmul.mubr.f32.gmra.mrb[186].mxu1 %v7757_v28  ;;  %v8682_v48 = vld [vmem:[#allocation36_spill] sm:$0xff]  ;;  %v7767_v52 = vadd.f32 %v3841_v44, %v3713_v47  ;;  %v3843_v24 = vmul.f32 0.1, %v3587_v6  ;;  %v3589_v28 = vld [vmem:[%s6550_s26 + $0x200] sm:$0xff] }
 0x3b3   : > { %v5649_v31 = vadd.f32 %v2943_v27, %v8680_v22  ;;  %v7764_v56 = vadd.f32 %v3842_v42, %v3714_v5  ;;  %v3590_v27 = vld [vmem:[%s6550_s26 + $0x208] sm:$0xff]  ;;  %v8684_v22 = vld [vmem:[#allocation37_spill] sm:$0xff] }
 0x3b4   : > { %8683 = vst [vmem:[#allocation36_spill] sm:$0xff] %v7767_v52  ;;  %v3715_v55 = vmul.f32 0.9, %v5648_v23  ;;  %v3846_v5 = vmul.f32 0.1, %v3590_v27 }
 0x3b5   : > { %v2947_v43 = vpop.f32.mrb[64].mxu0  ;;  %8681 = vst [vmem:[#allocation35_spill] sm:$0xff] %v7764_v56  ;;  %4345 = vmatprep.mubr.f32.mxu1 %v7764_v56  ;;  %v3716_v41 = vmul.f32 0.9, %v5649_v31 }
 0x3b6   : > { %v5650_v19 = vadd.f32 %v2947_v43, %v8682_v48  ;;  %v2949_v33 = vpop.f32.mrb[65].mxu0  ;;  %4346 = vmatmul.mubr.f32.gmra.mrb[188].mxu1 %v7767_v52  ;;  %v8686_v43 = vld [vmem:[#allocation38_spill] sm:$0xff]  ;;  %v7777_v23 = vadd.f32 %v3843_v24, %v3715_v55  ;;  %v3845_v48 = vmul.f32 0.1, %v3589_v28  ;;  %v3591_v52 = vld [vmem:[%s6550_s26 + $0x210] sm:$0xff] }
 0x3b7   : > { %v5651_v26 = vadd.f32 %v2949_v33, %v8684_v22  ;;  %v7774_v9 = vadd.f32 %v3844_v29, %v3716_v41  ;;  %v3592_v33 = vld [vmem:[%s6550_s26 + $0x218] sm:$0xff]  ;;  %v8688_v22 = vld [vmem:[#allocation39_spill] sm:$0xff] }
 0x3b8   : > { %8687 = vst [vmem:[#allocation38_spill] sm:$0xff] %v7777_v23  ;;  %v3717_v6 = vmul.f32 0.9, %v5650_v19  ;;  %v3848_v41 = vmul.f32 0.1, %v3592_v33 }
 0x3b9   : > { %v2953_v42 = vpop.f32.mrb[66].mxu0  ;;  %8685 = vst [vmem:[#allocation37_spill] sm:$0xff] %v7774_v9  ;;  %4351 = vmatprep.mubr.f32.mxu1 %v7774_v9  ;;  %v3718_v31 = vmul.f32 0.9, %v5651_v26 }
 0x3ba   : > { %v5652_v47 = vadd.f32 %v2953_v42, %v8686_v43  ;;  %v2955_v44 = vpop.f32.mrb[67].mxu0  ;;  %4352 = vmatmul.mubr.f32.gmra.mrb[190].mxu1 %v7777_v23  ;;  %v8690_v42 = vld [vmem:[#allocation40_spill] sm:$0xff]  ;;  %v7787_v19 = vadd.f32 %v3845_v48, %v3717_v6  ;;  %v3847_v43 = vmul.f32 0.1, %v3591_v52  ;;  %v3593_v23 = vld [vmem:[%s6550_s26 + $0x220] sm:$0xff] }
 0x3bb   : > { %v5653_v56 = vadd.f32 %v2955_v44, %v8688_v22  ;;  %v7784_v27 = vadd.f32 %v3846_v5, %v3718_v31  ;;  %v3594_v44 = vld [vmem:[%s6550_s26 + $0x228] sm:$0xff]  ;;  %v8692_v22 = vld [vmem:[#allocation41_spill] sm:$0xff] }
 0x3bc   : > { %8691 = vst [vmem:[#allocation40_spill] sm:$0xff] %v7787_v19  ;;  %v3719_v28 = vmul.f32 0.9, %v5652_v47  ;;  %v3850_v31 = vmul.f32 0.1, %v3594_v44 }
 0x3bd   : > { %v2959_v29 = vpop.f32.mrb[68].mxu0  ;;  %8689 = vst [vmem:[#allocation39_spill] sm:$0xff] %v7784_v27  ;;  %4357 = vmatprep.mubr.f32.mxu1 %v7784_v27  ;;  %v3720_v26 = vmul.f32 0.9, %v5653_v56 }
 0x3be   : > { %v5654_v55 = vadd.f32 %v2959_v29, %v8690_v42  ;;  %v2961_v24 = vpop.f32.mrb[69].mxu0  ;;  %4358 = vmatmul.mubr.f32.gmra.mrb[192].mxu1 %v7787_v19  ;;  %v8694_v29 = vld [vmem:[#allocation42_spill] sm:$0xff]  ;;  %v7797_v47 = vadd.f32 %v3847_v43, %v3719_v28  ;;  %v3849_v42 = vmul.f32 0.1, %v3593_v23  ;;  %v3595_v19 = vld [vmem:[%s6550_s26 + $0x230] sm:$0xff] }
 0x3bf   : > { %v5655_v9 = vadd.f32 %v2961_v24, %v8692_v22  ;;  %v7794_v33 = vadd.f32 %v3848_v41, %v3720_v26  ;;  %v3596_v24 = vld [vmem:[%s6550_s26 + $0x238] sm:$0xff]  ;;  %v8696_v22 = vld [vmem:[#allocation43_spill] sm:$0xff] }
 0x3c0   : > { %8695 = vst [vmem:[#allocation42_spill] sm:$0xff] %v7797_v47  ;;  %v3721_v52 = vmul.f32 0.9, %v5654_v55  ;;  %v3852_v26 = vmul.f32 0.1, %v3596_v24 }
 0x3c1   : > { %v2965_v5 = vpop.f32.mrb[70].mxu0  ;;  %8693 = vst [vmem:[#allocation41_spill] sm:$0xff] %v7794_v33  ;;  %4363 = vmatprep.mubr.f32.mxu1 %v7794_v33  ;;  %v3722_v56 = vmul.f32 0.9, %v5655_v9 }
 0x3c2   : > { %v5656_v6 = vadd.f32 %v2965_v5, %v8694_v29  ;;  %v2967_v48 = vpop.f32.mrb[71].mxu0  ;;  %4364 = vmatmul.mubr.f32.gmra.mrb[194].mxu1 %v7797_v47  ;;  %v8698_v5 = vld [vmem:[#allocation44_spill] sm:$0xff]  ;;  %v7807_v55 = vadd.f32 %v3849_v42, %v3721_v52  ;;  %v3851_v29 = vmul.f32 0.1, %v3595_v19  ;;  %v3597_v47 = vld [vmem:[%s6550_s26 + $0x240] sm:$0xff] }
 0x3c3   : > { %v5657_v27 = vadd.f32 %v2967_v48, %v8696_v22  ;;  %v7804_v44 = vadd.f32 %v3850_v31, %v3722_v56  ;;  %v3598_v48 = vld [vmem:[%s6550_s26 + $0x248] sm:$0xff]  ;;  %v8700_v22 = vld [vmem:[#allocation45_spill] sm:$0xff] }
 0x3c4   : > { %8699 = vst [vmem:[#allocation44_spill] sm:$0xff] %v7807_v55  ;;  %v3723_v23 = vmul.f32 0.9, %v5656_v6  ;;  %v3854_v56 = vmul.f32 0.1, %v3598_v48 }
 0x3c5   : > { %v2971_v41 = vpop.f32.mrb[72].mxu0  ;;  %8697 = vst [vmem:[#allocation43_spill] sm:$0xff] %v7804_v44  ;;  %4369 = vmatprep.mubr.f32.mxu1 %v7804_v44  ;;  %v3724_v9 = vmul.f32 0.9, %v5657_v27 }
 0x3c6   : > { %v5658_v28 = vadd.f32 %v2971_v41, %v8698_v5  ;;  %v2973_v43 = vpop.f32.mrb[73].mxu0  ;;  %4370 = vmatmul.mubr.f32.gmra.mrb[196].mxu1 %v7807_v55  ;;  %v8702_v41 = vld [vmem:[#allocation46_spill] sm:$0xff]  ;;  %v7817_v6 = vadd.f32 %v3851_v29, %v3723_v23  ;;  %v3853_v5 = vmul.f32 0.1, %v3597_v47  ;;  %v3599_v55 = vld [vmem:[%s6550_s26 + $0x250] sm:$0xff] }
 0x3c7   : > { %v5659_v33 = vadd.f32 %v2973_v43, %v8700_v22  ;;  %v7814_v24 = vadd.f32 %v3852_v26, %v3724_v9  ;;  %v3600_v43 = vld [vmem:[%s6550_s26 + $0x258] sm:$0xff]  ;;  %v8704_v22 = vld [vmem:[#allocation47_spill] sm:$0xff] }
 0x3c8   : > { %8703 = vst [vmem:[#allocation46_spill] sm:$0xff] %v7817_v6  ;;  %v3725_v19 = vmul.f32 0.9, %v5658_v28  ;;  %v3856_v9 = vmul.f32 0.1, %v3600_v43 }
 0x3c9   : > { %v2977_v31 = vpop.f32.mrb[74].mxu0  ;;  %8701 = vst [vmem:[#allocation45_spill] sm:$0xff] %v7814_v24  ;;  %4375 = vmatprep.mubr.f32.mxu1 %v7814_v24  ;;  %v3726_v27 = vmul.f32 0.9, %v5659_v33 }
 0x3ca   : > { %v5660_v52 = vadd.f32 %v2977_v31, %v8702_v41  ;;  %v2979_v42 = vpop.f32.mrb[75].mxu0  ;;  %4376 = vmatmul.mubr.f32.gmra.mrb[198].mxu1 %v7817_v6  ;;  %v8706_v31 = vld [vmem:[#allocation48_spill] sm:$0xff]  ;;  %v7827_v28 = vadd.f32 %v3853_v5, %v3725_v19  ;;  %v3855_v41 = vmul.f32 0.1, %v3599_v55  ;;  %v3601_v6 = vld [vmem:[%s6550_s26 + $0x260] sm:$0xff] }
 0x3cb   : > { %v5661_v44 = vadd.f32 %v2979_v42, %v8704_v22  ;;  %v7824_v48 = vadd.f32 %v3854_v56, %v3726_v27  ;;  %v3602_v42 = vld [vmem:[%s6550_s26 + $0x268] sm:$0xff]  ;;  %v8708_v22 = vld [vmem:[#allocation49_spill] sm:$0xff] }
 0x3cc   : > { %8707 = vst [vmem:[#allocation48_spill] sm:$0xff] %v7827_v28  ;;  %v3727_v47 = vmul.f32 0.9, %v5660_v52  ;;  %v3858_v27 = vmul.f32 0.1, %v3602_v42 }
 0x3cd   : > { %v2983_v26 = vpop.f32.mrb[76].mxu0  ;;  %8705 = vst [vmem:[#allocation47_spill] sm:$0xff] %v7824_v48  ;;  %4381 = vmatprep.mubr.f32.mxu1 %v7824_v48  ;;  %v3728_v33 = vmul.f32 0.9, %v5661_v44 }
 0x3ce   : > { %v5662_v23 = vadd.f32 %v2983_v26, %v8706_v31  ;;  %v2985_v29 = vpop.f32.mrb[77].mxu0  ;;  %4382 = vmatmul.mubr.f32.gmra.mrb[200].mxu1 %v7827_v28  ;;  %v8710_v26 = vld [vmem:[#allocation50_spill] sm:$0xff]  ;;  %v7837_v52 = vadd.f32 %v3855_v41, %v3727_v47  ;;  %v3857_v31 = vmul.f32 0.1, %v3601_v6  ;;  %v3603_v28 = vld [vmem:[%s6550_s26 + $0x270] sm:$0xff] }
 0x3cf   : > { %v5663_v24 = vadd.f32 %v2985_v29, %v8708_v22  ;;  %v7834_v43 = vadd.f32 %v3856_v9, %v3728_v33  ;;  %v3604_v29 = vld [vmem:[%s6550_s26 + $0x278] sm:$0xff]  ;;  %v8712_v22 = vld [vmem:[#allocation51_spill] sm:$0xff] }
 0x3d0   : > { %8711 = vst [vmem:[#allocation50_spill] sm:$0xff] %v7837_v52  ;;  %v3729_v55 = vmul.f32 0.9, %v5662_v23  ;;  %v3860_v33 = vmul.f32 0.1, %v3604_v29 }
 0x3d1   : > { %v2989_v56 = vpop.f32.mrb[78].mxu0  ;;  %8709 = vst [vmem:[#allocation49_spill] sm:$0xff] %v7834_v43  ;;  %4387 = vmatprep.mubr.f32.mxu1 %v7834_v43  ;;  %v3730_v44 = vmul.f32 0.9, %v5663_v24 }
 0x3d2   : > { %v5664_v19 = vadd.f32 %v2989_v56, %v8710_v26  ;;  %v2991_v5 = vpop.f32.mrb[79].mxu0  ;;  %4388 = vmatmul.mubr.f32.gmra.mrb[202].mxu1 %v7837_v52  ;;  %v8714_v56 = vld [vmem:[#allocation52_spill] sm:$0xff]  ;;  %v7847_v23 = vadd.f32 %v3857_v31, %v3729_v55  ;;  %v3859_v26 = vmul.f32 0.1, %v3603_v28  ;;  %v3605_v52 = vld [vmem:[%s6550_s26 + $0x280] sm:$0xff] }
 0x3d3   : > { %v5665_v48 = vadd.f32 %v2991_v5, %v8712_v22  ;;  %v7844_v42 = vadd.f32 %v3858_v27, %v3730_v44  ;;  %v3606_v5 = vld [vmem:[%s6550_s26 + $0x288] sm:$0xff]  ;;  %v8716_v22 = vld [vmem:[#allocation53_spill] sm:$0xff] }
 0x3d4   : > { %8715 = vst [vmem:[#allocation52_spill] sm:$0xff] %v7847_v23  ;;  %v3731_v6 = vmul.f32 0.9, %v5664_v19  ;;  %v3862_v44 = vmul.f32 0.1, %v3606_v5 }
 0x3d5   : > { %v2995_v9 = vpop.f32.mrb[80].mxu0  ;;  %8713 = vst [vmem:[#allocation51_spill] sm:$0xff] %v7844_v42  ;;  %4393 = vmatprep.mubr.f32.mxu1 %v7844_v42  ;;  %v3732_v24 = vmul.f32 0.9, %v5665_v48 }
 0x3d6   : > { %v5666_v47 = vadd.f32 %v2995_v9, %v8714_v56  ;;  %v2997_v41 = vpop.f32.mrb[81].mxu0  ;;  %4394 = vmatmul.mubr.f32.gmra.mrb[204].mxu1 %v7847_v23  ;;  %v8718_v9 = vld [vmem:[#allocation54_spill] sm:$0xff]  ;;  %v7857_v19 = vadd.f32 %v3859_v26, %v3731_v6  ;;  %v3861_v56 = vmul.f32 0.1, %v3605_v52  ;;  %v3607_v23 = vld [vmem:[%s6550_s26 + $0x290] sm:$0xff] }
 0x3d7   : > { %v5667_v43 = vadd.f32 %v2997_v41, %v8716_v22  ;;  %v7854_v29 = vadd.f32 %v3860_v33, %v3732_v24  ;;  %v3608_v41 = vld [vmem:[%s6550_s26 + $0x298] sm:$0xff]  ;;  %v8720_v22 = vld [vmem:[#allocation55_spill] sm:$0xff] }
 0x3d8   : > { %8719 = vst [vmem:[#allocation54_spill] sm:$0xff] %v7857_v19  ;;  %v3733_v28 = vmul.f32 0.9, %v5666_v47  ;;  %v3864_v24 = vmul.f32 0.1, %v3608_v41 }
 0x3d9   : > { %v3001_v27 = vpop.f32.mrb[82].mxu0  ;;  %8717 = vst [vmem:[#allocation53_spill] sm:$0xff] %v7854_v29  ;;  %4399 = vmatprep.mubr.f32.mxu1 %v7854_v29  ;;  %v3734_v48 = vmul.f32 0.9, %v5667_v43 }
 0x3da   : > { %v5668_v55 = vadd.f32 %v3001_v27, %v8718_v9  ;;  %v3003_v31 = vpop.f32.mrb[83].mxu0  ;;  %4400 = vmatmul.mubr.f32.gmra.mrb[206].mxu1 %v7857_v19  ;;  %v8722_v27 = vld [vmem:[#allocation56_spill] sm:$0xff]  ;;  %v7867_v47 = vadd.f32 %v3861_v56, %v3733_v28  ;;  %v3863_v9 = vmul.f32 0.1, %v3607_v23  ;;  %v3609_v19 = vld [vmem:[%s6550_s26 + $0x2a0] sm:$0xff] }
 0x3db   : > { %v5669_v42 = vadd.f32 %v3003_v31, %v8720_v22  ;;  %v7864_v5 = vadd.f32 %v3862_v44, %v3734_v48  ;;  %v3610_v31 = vld [vmem:[%s6550_s26 + $0x2a8] sm:$0xff]  ;;  %v8724_v22 = vld [vmem:[#allocation57_spill] sm:$0xff] }
 0x3dc   : > { %8723 = vst [vmem:[#allocation56_spill] sm:$0xff] %v7867_v47  ;;  %v3735_v52 = vmul.f32 0.9, %v5668_v55  ;;  %v3866_v48 = vmul.f32 0.1, %v3610_v31 }
 0x3dd   : > { %v3007_v33 = vpop.f32.mrb[84].mxu0  ;;  %8721 = vst [vmem:[#allocation55_spill] sm:$0xff] %v7864_v5  ;;  %4405 = vmatprep.mubr.f32.mxu1 %v7864_v5  ;;  %v3736_v43 = vmul.f32 0.9, %v5669_v42 }
 0x3de   : > { %v5670_v6 = vadd.f32 %v3007_v33, %v8722_v27  ;;  %v3009_v26 = vpop.f32.mrb[85].mxu0  ;;  %4406 = vmatmul.mubr.f32.gmra.mrb[208].mxu1 %v7867_v47  ;;  %v8726_v33 = vld [vmem:[#allocation58_spill] sm:$0xff]  ;;  %v7877_v55 = vadd.f32 %v3863_v9, %v3735_v52  ;;  %v3865_v27 = vmul.f32 0.1, %v3609_v19  ;;  %v3611_v47 = vld [vmem:[%s6550_s26 + $0x2b0] sm:$0xff] }
 0x3df   : > { %v5671_v29 = vadd.f32 %v3009_v26, %v8724_v22  ;;  %v7874_v41 = vadd.f32 %v3864_v24, %v3736_v43  ;;  %v3612_v26 = vld [vmem:[%s6550_s26 + $0x2b8] sm:$0xff]  ;;  %v8728_v22 = vld [vmem:[#allocation59_spill] sm:$0xff] }
 0x3e0   : > { %8727 = vst [vmem:[#allocation58_spill] sm:$0xff] %v7877_v55  ;;  %v3737_v23 = vmul.f32 0.9, %v5670_v6  ;;  %v3868_v43 = vmul.f32 0.1, %v3612_v26 }
 0x3e1   : > { %v3013_v44 = vpop.f32.mrb[86].mxu0  ;;  %8725 = vst [vmem:[#allocation57_spill] sm:$0xff] %v7874_v41  ;;  %4411 = vmatprep.mubr.f32.mxu1 %v7874_v41  ;;  %v3738_v42 = vmul.f32 0.9, %v5671_v29 }
 0x3e2   : > { %v5672_v28 = vadd.f32 %v3013_v44, %v8726_v33  ;;  %v3015_v56 = vpop.f32.mrb[87].mxu0  ;;  %4412 = vmatmul.mubr.f32.gmra.mrb[210].mxu1 %v7877_v55  ;;  %v8730_v44 = vld [vmem:[#allocation60_spill] sm:$0xff]  ;;  %v7887_v6 = vadd.f32 %v3865_v27, %v3737_v23  ;;  %v3867_v33 = vmul.f32 0.1, %v3611_v47  ;;  %v3613_v55 = vld [vmem:[%s6550_s26 + $0x2c0] sm:$0xff] }
 0x3e3   : > { %v5673_v5 = vadd.f32 %v3015_v56, %v8728_v22  ;;  %v7884_v31 = vadd.f32 %v3866_v48, %v3738_v42  ;;  %v3614_v56 = vld [vmem:[%s6550_s26 + $0x2c8] sm:$0xff]  ;;  %v8732_v22 = vld [vmem:[#allocation61_spill] sm:$0xff] }
 0x3e4   : > { %8731 = vst [vmem:[#allocation60_spill] sm:$0xff] %v7887_v6  ;;  %v3739_v19 = vmul.f32 0.9, %v5672_v28  ;;  %v3870_v42 = vmul.f32 0.1, %v3614_v56 }
 0x3e5   : > { %v3019_v24 = vpop.f32.mrb[88].mxu0  ;;  %8729 = vst [vmem:[#allocation59_spill] sm:$0xff] %v7884_v31  ;;  %4417 = vmatprep.mubr.f32.mxu1 %v7884_v31  ;;  %v3740_v29 = vmul.f32 0.9, %v5673_v5 }
 0x3e6   : > { %v5674_v52 = vadd.f32 %v3019_v24, %v8730_v44  ;;  %v3021_v9 = vpop.f32.mrb[89].mxu0  ;;  %4418 = vmatmul.mubr.f32.gmra.mrb[212].mxu1 %v7887_v6  ;;  %v8734_v24 = vld [vmem:[#allocation62_spill] sm:$0xff]  ;;  %v7897_v28 = vadd.f32 %v3867_v33, %v3739_v19  ;;  %v3869_v44 = vmul.f32 0.1, %v3613_v55  ;;  %v3615_v6 = vld [vmem:[%s6550_s26 + $0x2d0] sm:$0xff] }
 0x3e7   : > { %v5675_v41 = vadd.f32 %v3021_v9, %v8732_v22  ;;  %v7894_v26 = vadd.f32 %v3868_v43, %v3740_v29  ;;  %v3616_v9 = vld [vmem:[%s6550_s26 + $0x2d8] sm:$0xff]  ;;  %v8736_v22 = vld [vmem:[#allocation63_spill] sm:$0xff] }
 0x3e8   : > { %8735 = vst [vmem:[#allocation62_spill] sm:$0xff] %v7897_v28  ;;  %v3741_v47 = vmul.f32 0.9, %v5674_v52  ;;  %v3872_v29 = vmul.f32 0.1, %v3616_v9 }
 0x3e9   : > { %v3025_v48 = vpop.f32.mrb[90].mxu0  ;;  %8733 = vst [vmem:[#allocation61_spill] sm:$0xff] %v7894_v26  ;;  %4423 = vmatprep.mubr.f32.mxu1 %v7894_v26  ;;  %v3742_v5 = vmul.f32 0.9, %v5675_v41 }
 0x3ea   : > { %v5676_v23 = vadd.f32 %v3025_v48, %v8734_v24  ;;  %v3027_v27 = vpop.f32.mrb[91].mxu0  ;;  %4424 = vmatmul.mubr.f32.gmra.mrb[214].mxu1 %v7897_v28  ;;  %v8738_v48 = vld [vmem:[#allocation64_spill] sm:$0xff]  ;;  %v7907_v52 = vadd.f32 %v3869_v44, %v3741_v47  ;;  %v3871_v24 = vmul.f32 0.1, %v3615_v6  ;;  %v3617_v28 = vld [vmem:[%s6550_s26 + $0x2e0] sm:$0xff] }
 0x3eb   : > { %v5677_v31 = vadd.f32 %v3027_v27, %v8736_v22  ;;  %v7904_v56 = vadd.f32 %v3870_v42, %v3742_v5  ;;  %v3618_v27 = vld [vmem:[%s6550_s26 + $0x2e8] sm:$0xff]  ;;  %v8740_v22 = vld [vmem:[#allocation65_spill] sm:$0xff] }
 0x3ec   : > { %8739 = vst [vmem:[#allocation64_spill] sm:$0xff] %v7907_v52  ;;  %v3743_v55 = vmul.f32 0.9, %v5676_v23  ;;  %v3874_v5 = vmul.f32 0.1, %v3618_v27 }
 0x3ed   : > { %v3031_v43 = vpop.f32.mrb[92].mxu0  ;;  %8737 = vst [vmem:[#allocation63_spill] sm:$0xff] %v7904_v56  ;;  %4429 = vmatprep.mubr.f32.mxu1 %v7904_v56  ;;  %v3744_v41 = vmul.f32 0.9, %v5677_v31 }
 0x3ee   : > { %v5678_v19 = vadd.f32 %v3031_v43, %v8738_v48  ;;  %v3033_v33 = vpop.f32.mrb[93].mxu0  ;;  %4430 = vmatmul.mubr.f32.gmra.mrb[216].mxu1 %v7907_v52  ;;  %v8742_v43 = vld [vmem:[#allocation66_spill] sm:$0xff]  ;;  %v7917_v23 = vadd.f32 %v3871_v24, %v3743_v55  ;;  %v3873_v48 = vmul.f32 0.1, %v3617_v28  ;;  %v3619_v52 = vld [vmem:[%s6550_s26 + $0x2f0] sm:$0xff] }
 0x3ef   : > { %v5679_v26 = vadd.f32 %v3033_v33, %v8740_v22  ;;  %v7914_v9 = vadd.f32 %v3872_v29, %v3744_v41  ;;  %v3620_v33 = vld [vmem:[%s6550_s26 + $0x2f8] sm:$0xff]  ;;  %v8744_v22 = vld [vmem:[#allocation67_spill] sm:$0xff] }
 0x3f0   : > { %8743 = vst [vmem:[#allocation66_spill] sm:$0xff] %v7917_v23  ;;  %v3745_v6 = vmul.f32 0.9, %v5678_v19  ;;  %v3876_v41 = vmul.f32 0.1, %v3620_v33 }
 0x3f1   : > { %v3037_v42 = vpop.f32.mrb[94].mxu0  ;;  %8741 = vst [vmem:[#allocation65_spill] sm:$0xff] %v7914_v9  ;;  %4435 = vmatprep.mubr.f32.mxu1 %v7914_v9  ;;  %v3746_v31 = vmul.f32 0.9, %v5679_v26 }
 0x3f2   : > { %v5680_v47 = vadd.f32 %v3037_v42, %v8742_v43  ;;  %v3039_v44 = vpop.f32.mrb[95].mxu0  ;;  %4436 = vmatmul.mubr.f32.gmra.mrb[218].mxu1 %v7917_v23  ;;  %v8746_v42 = vld [vmem:[#allocation68_spill] sm:$0xff]  ;;  %v7927_v19 = vadd.f32 %v3873_v48, %v3745_v6  ;;  %v3875_v43 = vmul.f32 0.1, %v3619_v52  ;;  %v3621_v23 = vld [vmem:[%s6550_s26 + $0x300] sm:$0xff] }
 0x3f3   : > { %v5681_v56 = vadd.f32 %v3039_v44, %v8744_v22  ;;  %v7924_v27 = vadd.f32 %v3874_v5, %v3746_v31  ;;  %v3622_v44 = vld [vmem:[%s6550_s26 + $0x308] sm:$0xff]  ;;  %v8748_v22 = vld [vmem:[#allocation69_spill] sm:$0xff] }
 0x3f4   : > { %8747 = vst [vmem:[#allocation68_spill] sm:$0xff] %v7927_v19  ;;  %v3747_v28 = vmul.f32 0.9, %v5680_v47  ;;  %v3878_v31 = vmul.f32 0.1, %v3622_v44 }
 0x3f5   : > { %v3043_v29 = vpop.f32.mrb[96].mxu0  ;;  %8745 = vst [vmem:[#allocation67_spill] sm:$0xff] %v7924_v27  ;;  %4441 = vmatprep.mubr.f32.mxu1 %v7924_v27  ;;  %v3748_v26 = vmul.f32 0.9, %v5681_v56 }
 0x3f6   : > { %v5682_v55 = vadd.f32 %v3043_v29, %v8746_v42  ;;  %v3045_v24 = vpop.f32.mrb[97].mxu0  ;;  %4442 = vmatmul.mubr.f32.gmra.mrb[220].mxu1 %v7927_v19  ;;  %v8750_v29 = vld [vmem:[#allocation70_spill] sm:$0xff]  ;;  %v7937_v47 = vadd.f32 %v3875_v43, %v3747_v28  ;;  %v3877_v42 = vmul.f32 0.1, %v3621_v23  ;;  %v3623_v19 = vld [vmem:[%s6550_s26 + $0x310] sm:$0xff] }
 0x3f7   : > { %v5683_v9 = vadd.f32 %v3045_v24, %v8748_v22  ;;  %v7934_v33 = vadd.f32 %v3876_v41, %v3748_v26  ;;  %v3624_v24 = vld [vmem:[%s6550_s26 + $0x318] sm:$0xff]  ;;  %v8752_v22 = vld [vmem:[#allocation71_spill] sm:$0xff] }
 0x3f8   : > { %8751 = vst [vmem:[#allocation70_spill] sm:$0xff] %v7937_v47  ;;  %v3749_v52 = vmul.f32 0.9, %v5682_v55  ;;  %v3880_v26 = vmul.f32 0.1, %v3624_v24 }
 0x3f9   : > { %v3049_v5 = vpop.f32.mrb[98].mxu0  ;;  %8749 = vst [vmem:[#allocation69_spill] sm:$0xff] %v7934_v33  ;;  %4447 = vmatprep.mubr.f32.mxu1 %v7934_v33  ;;  %v3750_v56 = vmul.f32 0.9, %v5683_v9 }
 0x3fa   : > { %v5684_v6 = vadd.f32 %v3049_v5, %v8750_v29  ;;  %v3051_v48 = vpop.f32.mrb[99].mxu0  ;;  %4448 = vmatmul.mubr.f32.gmra.mrb[222].mxu1 %v7937_v47  ;;  %v8754_v5 = vld [vmem:[#allocation72_spill] sm:$0xff]  ;;  %v7947_v55 = vadd.f32 %v3877_v42, %v3749_v52  ;;  %v3879_v29 = vmul.f32 0.1, %v3623_v19  ;;  %v3625_v47 = vld [vmem:[%s6550_s26 + $0x320] sm:$0xff] }
 0x3fb   : > { %v5685_v27 = vadd.f32 %v3051_v48, %v8752_v22  ;;  %v7944_v44 = vadd.f32 %v3878_v31, %v3750_v56  ;;  %v3626_v48 = vld [vmem:[%s6550_s26 + $0x328] sm:$0xff]  ;;  %v8756_v22 = vld [vmem:[#allocation73_spill] sm:$0xff] }
 0x3fc   : > { %8755 = vst [vmem:[#allocation72_spill] sm:$0xff] %v7947_v55  ;;  %v3751_v23 = vmul.f32 0.9, %v5684_v6  ;;  %v3882_v56 = vmul.f32 0.1, %v3626_v48 }
 0x3fd   : > { %v3055_v41 = vpop.f32.mrb[100].mxu0  ;;  %8753 = vst [vmem:[#allocation71_spill] sm:$0xff] %v7944_v44  ;;  %4453 = vmatprep.mubr.f32.mxu1 %v7944_v44  ;;  %v3752_v9 = vmul.f32 0.9, %v5685_v27 }
 0x3fe   : > { %v5686_v28 = vadd.f32 %v3055_v41, %v8754_v5  ;;  %v3057_v43 = vpop.f32.mrb[101].mxu0  ;;  %4454 = vmatmul.mubr.f32.gmra.mrb[224].mxu1 %v7947_v55  ;;  %v8758_v41 = vld [vmem:[#allocation74_spill] sm:$0xff]  ;;  %v7957_v6 = vadd.f32 %v3879_v29, %v3751_v23  ;;  %v3881_v5 = vmul.f32 0.1, %v3625_v47  ;;  %v3627_v55 = vld [vmem:[%s6550_s26 + $0x330] sm:$0xff] }
 0x3ff   : > { %v5687_v33 = vadd.f32 %v3057_v43, %v8756_v22  ;;  %v7954_v24 = vadd.f32 %v3880_v26, %v3752_v9  ;;  %v3628_v43 = vld [vmem:[%s6550_s26 + $0x338] sm:$0xff]  ;;  %v8760_v22 = vld [vmem:[#allocation75_spill] sm:$0xff] }
 0x400   : > { %8759 = vst [vmem:[#allocation74_spill] sm:$0xff] %v7957_v6  ;;  %v3753_v19 = vmul.f32 0.9, %v5686_v28  ;;  %v3884_v9 = vmul.f32 0.1, %v3628_v43 }
 0x401   : > { %v3061_v31 = vpop.f32.mrb[102].mxu0  ;;  %8757 = vst [vmem:[#allocation73_spill] sm:$0xff] %v7954_v24  ;;  %4459 = vmatprep.mubr.f32.mxu1 %v7954_v24  ;;  %v3754_v27 = vmul.f32 0.9, %v5687_v33 }
 0x402   : > { %v5688_v52 = vadd.f32 %v3061_v31, %v8758_v41  ;;  %v3063_v42 = vpop.f32.mrb[103].mxu0  ;;  %4460 = vmatmul.mubr.f32.gmra.mrb[226].mxu1 %v7957_v6  ;;  %v8762_v31 = vld [vmem:[#allocation76_spill] sm:$0xff]  ;;  %v7967_v28 = vadd.f32 %v3881_v5, %v3753_v19  ;;  %v3883_v41 = vmul.f32 0.1, %v3627_v55  ;;  %v3629_v6 = vld [vmem:[%s6550_s26 + $0x340] sm:$0xff] }
 0x403   : > { %v5689_v44 = vadd.f32 %v3063_v42, %v8760_v22  ;;  %v7964_v48 = vadd.f32 %v3882_v56, %v3754_v27  ;;  %v3630_v42 = vld [vmem:[%s6550_s26 + $0x348] sm:$0xff]  ;;  %v8764_v22 = vld [vmem:[#allocation77_spill] sm:$0xff] }
 0x404   : > { %8763 = vst [vmem:[#allocation76_spill] sm:$0xff] %v7967_v28  ;;  %v3755_v47 = vmul.f32 0.9, %v5688_v52  ;;  %v3886_v27 = vmul.f32 0.1, %v3630_v42 }
 0x405   : > { %v3067_v26 = vpop.f32.mrb[104].mxu0  ;;  %8761 = vst [vmem:[#allocation75_spill] sm:$0xff] %v7964_v48  ;;  %4465 = vmatprep.mubr.f32.mxu1 %v7964_v48  ;;  %v3756_v33 = vmul.f32 0.9, %v5689_v44  ;;  %v3631_v48 = vld [vmem:[%s6550_s26 + $0x350] sm:$0xff] }
 0x406   : > { %v5690_v23 = vadd.f32 %v3067_v26, %v8762_v31  ;;  %v3069_v29 = vpop.f32.mrb[105].mxu0  ;;  %4466 = vmatmul.mubr.f32.gmra.mrb[228].mxu1 %v7967_v28  ;;  %v8766_v26 = vld [vmem:[#allocation78_spill] sm:$0xff]  ;;  %v7977_v52 = vadd.f32 %v3883_v41, %v3755_v47  ;;  %v3885_v31 = vmul.f32 0.1, %v3629_v6  ;;  %v4679_v42 = vmul.f32 0.5945349, %v7423_v30 }
 0x407   : > { %v5691_v24 = vadd.f32 %v3069_v29, %v8764_v22  ;;  %v7974_v43 = vadd.f32 %v3884_v9, %v3756_v33  ;;  %v8768_v29 = vld [vmem:[#allocation79_spill] sm:$0xff]  ;;  %v4678_v9 = vmul.f32 0.5945349, %v7428_v49  ;;  %v7989_v6 = vmul.f32 0.5945349, %v7444_v2  ;;  %v8770_v41 = vld [vmem:[#allocation80_spill] sm:$0xff] }
 0x408   : > { %8767 = vst [vmem:[#allocation78_spill] sm:$0xff] %v7977_v52  ;;  %v3757_v55 = vmul.f32 0.9, %v5690_v23  ;;  %v3888_v23 = vmul.f32 0.1, %v3632_v50  ;;  %v8772_v49 = vld [vmem:[#allocation81_spill] sm:$0xff] }
 0x409   : > { %v3073_v56 = vpop.f32.mrb[106].mxu0  ;;  %8765 = vst [vmem:[#allocation77_spill] sm:$0xff] %v7974_v43  ;;  %4471 = vmatprep.mubr.f32.mxu1 %v7974_v43  ;;  %v3758_v44 = vmul.f32 0.9, %v5691_v24  ;;  %v3634_v43 = vld [vmem:[%s6550_s26 + $0x368] sm:$0xff]  ;;  %v3633_v50 = vld [vmem:[%s6550_s26 + $0x360] sm:$0xff] }
 0x40a   : > { %v5692_v19 = vadd.f32 %v3073_v56, %v8766_v26  ;;  %v3075_v5 = vpop.f32.mrb[107].mxu0  ;;  %4472 = vmatmul.mubr.f32.gmra.mrb[230].mxu1 %v7977_v52  ;;  %v8001_v2 = vmul.f32 0.5945349, %v7460_v7 }
 0x40b   : > { %v5693_v22 = vadd.f32 %v3075_v5, %v8768_v29  ;;  %v7986_v47 = vadd.f32 %v3886_v27, %v3758_v44  ;;  %v7992_v5 = vadd.f32 %v3885_v31, %v3757_v55  ;;  %v3887_v29 = vmul.f32 0.1, %v3631_v48 }
 0x40c   : > { %v3759_v24 = vmul.f32 0.9, %v5692_v19  ;;  %v4681_v27 = vmul.f32 0.5945349, %v7439_v59  ;;  %v8004_v55 = vmul.f32 0.5945349, %v7455_v36 }
 0x40d   : > { %v3079_v33 = vpop.f32.mrb[108].mxu0  ;;  %8769 = vst [vmem:[#allocation79_spill] sm:$0xff] %v7986_v47  ;;  %8771 = vst [vmem:[#allocation80_spill] sm:$0xff] %v7992_v5  ;;  %4477 = vmatprep.mubr.f32.mxu1 %v7986_v47  ;;  %v3760_v30 = vmul.f32 0.9, %v5693_v22  ;;  %v3635_v22 = vld [vmem:[%s6550_s26 + $0x370] sm:$0xff] }
 0x40e   : > { %v5694_v56 = vadd.f32 %v3079_v33, %v8770_v41  ;;  %v3081_v26 = vpop.f32.mrb[109].mxu0  ;;  %4478 = vmatmul.mubr.f32.gmra.mrb[232].mxu1 %v7992_v5  ;;  %v8007_v48 = vmul.f32 0.5945349, %v7476_v20  ;;  %v3890_v44 = vmul.f32 0.1, %v3634_v43  ;;  %v8774_v33 = vld [vmem:[#allocation82_spill] sm:$0xff] }
 0x40f   : > { %v5695_v52 = vadd.f32 %v3081_v26, %v8772_v49  ;;  %v8009_v31 = vadd.f32 %v3888_v23, %v3760_v30  ;;  %v8013_v59 = vmul.f32 0.5945349, %v7471_v37  ;;  %v8016_v49 = vadd.f32 %v3887_v29, %v3759_v24  ;;  %v3636_v47 = vld [vmem:[%s6550_s26 + $0x378] sm:$0xff]  ;;  %v8775_v5 = vld [vmem:[#allocation83_spill] sm:$0xff] }
 0x410   : > { %v3761_v7 = vmul.f32 0.9, %v5694_v56  ;;  %v3889_v36 = vmul.f32 0.1, %v3633_v50  ;;  %v8022_v43 = vmul.f32 0.5945349, %v7492_v4 }
 0x411   : > { %v3085_v19 = vpop.f32.mrb[110].mxu0  ;;  %8773 = vst [vmem:[#allocation81_spill] sm:$0xff] %v8009_v31  ;;  %v4167_v28 = vpop.f32.mrb[128].mxu1  ;;  %4483 = vmatprep.mubr.f32.mxu1 %v8009_v31  ;;  %v3762_v23 = vmul.f32 0.9, %v5695_v52 }
 0x412   : > { %v5696_v41 = vadd.f32 %v3085_v19, %v8774_v33  ;;  %v3087_v26 = vpop.f32.mrb[111].mxu0  ;;  %v4550_v37 = vmul.f32 0.4054651, %v4167_v28  ;;  %v4169_v30 = vpop.f32.mrb[129].mxu1  ;;  %4484 = vmatmul.mubr.f32.gmra.mrb[234].mxu1 %v8016_v49  ;;  %v3891_v24 = vmul.f32 0.1, %v3635_v22  ;;  %v8029_v63 = vadd.f32 %v3889_v36, %v3761_v7 }
 0x413   : > { %v5697_v20 = vadd.f32 %v3087_v26, %v8775_v5  ;;  %v4551_v56 = vmul.f32 0.4054651, %v4169_v30  ;;  %v8025_v50 = vadd.f32 %v3890_v44, %v3762_v23  ;;  %v3892_v19 = vmul.f32 0.1, %v3636_v47  ;;  %v3637_v5 = vld [vmem:[%s6550_s26 + $0x380] sm:$0xff]  ;;  %v8776_v33 = vld [vmem:[#allocation84_spill] sm:$0xff] }
 0x414   : > { %v4806_v52 = vadd.f32 %v4678_v9, %v4550_v37  ;;  %v3763_v4 = vmul.f32 0.9, %v5696_v41  ;;  %v8777_v28 = vld [vmem:[#allocation85_spill] sm:$0xff]  ;;  %v8035_v44 = vmul.f32 0.5945349, %v7487_v10  ;;  %v3639_v36 = vld [vmem:[%s6550_s26 + $0x390] sm:$0xff] }
 0x415   : > { %v3091_v29 = vpop.f32.mrb[112].mxu0  ;;  %v4807_v46 = vadd.f32 %v4679_v42, %v4551_v56  ;;  %v4173_v22 = vpop.f32.mrb[130].mxu1  ;;  %4489 = vmatprep.mubr.f32.mxu1 %v8025_v50  ;;  %v3764_v30 = vmul.f32 0.9, %v5697_v20  ;;  %v3893_v42 = vmul.f32 0.1, %v3637_v5 }
 0x416   : > { %v5698_v26 = vadd.f32 %v3091_v29, %v8776_v33  ;;  %v3093_v31 = vpop.f32.mrb[113].mxu0  ;;  %4934 = vst [vmem:[%s8039_s21] sm:$0xff] %v4806_v52  ;;  %v4552_v9 = vmul.f32 0.4054651, %v4173_v22  ;;  %v4175_v47 = vpop.f32.mrb[131].mxu1  ;;  %4490 = vmatmul.mubr.f32.gmra.mrb[236].mxu1 %v8029_v63  ;;  %v3894_v10 = vmul.f32 0.1, %v3638_v35  ;;  %v8049_v56 = vadd.f32 %v3891_v24, %v3763_v4 }
 0x417   : > { %v5699_v57 = vadd.f32 %v3093_v31, %v8777_v28  ;;  %4935 = vst [vmem:[%s8039_s21 + $0x8] sm:$0xff] %v4807_v46  ;;  %v4553_v41 = vmul.f32 0.4054651, %v4175_v47  ;;  %v8044_v7 = vadd.f32 %v3892_v19, %v3764_v30  ;;  %v8778_v20 = vld [vmem:[#allocation86_spill] sm:$0xff]  ;;  %v3640_v52 = vld [vmem:[%s6550_s26 + $0x398] sm:$0xff]  ;;  %v8779_v28 = vld [vmem:[#allocation87_spill] sm:$0xff] }
 0x418   : > { %v4808_v29 = vadd.f32 %v7989_v6, %v4552_v9  ;;  %v3765_v33 = vmul.f32 0.9, %v5698_v26  ;;  %v8055_v35 = vmul.f32 0.5945349, %v7508_v11  ;;  %v3895_v24 = vmul.f32 0.1, %v3639_v36 }
 0x419   : > { %v3097_v31 = vpop.f32.mrb[114].mxu0  ;;  %v4809_v46 = vadd.f32 %v4681_v27, %v4553_v41  ;;  %v4179_v22 = vpop.f32.mrb[132].mxu1  ;;  %4495 = vmatprep.mubr.f32.mxu1 %v8044_v7  ;;  %v3766_v19 = vmul.f32 0.9, %v5699_v57  ;;  %v3896_v27 = vmul.f32 0.1, %v3640_v52 }
 0x41a   : > { %v5700_v23 = vadd.f32 %v3097_v31, %v8778_v20  ;;  %v3099_v37 = vpop.f32.mrb[115].mxu0  ;;  %4936 = vst [vmem:[%s8039_s21 + $0x10] sm:$0xff] %v4808_v29  ;;  %v4554_v30 = vmul.f32 0.4054651, %v4179_v22  ;;  %v4181_v6 = vpop.f32.mrb[133].mxu1  ;;  %4496 = vmatmul.mubr.f32.gmra.mrb[238].mxu1 %v8049_v56  ;;  %v3641_v47 = vld [vmem:[%s6550_s26 + $0x3a0] sm:$0xff]  ;;  %v8065_v20 = vadd.f32 %v3893_v42, %v3765_v33 }
 0x41b   : > { %v5701_v5 = vadd.f32 %v3099_v37, %v8779_v28  ;;  %4937 = vst [vmem:[%s8039_s21 + $0x18] sm:$0xff] %v4809_v46  ;;  %v4555_v4 = vmul.f32 0.4054651, %v4181_v6  ;;  %v8060_v9 = vadd.f32 %v3894_v10, %v3766_v19  ;;  %v8780_v31 = vld [vmem:[#allocation88_spill] sm:$0xff]  ;;  %v3642_v29 = vld [vmem:[%s6550_s26 + $0x3a8] sm:$0xff]  ;;  %v8781_v28 = vld [vmem:[#allocation89_spill] sm:$0xff] }
 0x41c   : > { %v4810_v11 = vadd.f32 %v8001_v2, %v4554_v30  ;;  %v3767_v37 = vmul.f32 0.9, %v5700_v23  ;;  %v8072_v52 = vmul.f32 0.5945349, %v7503_v61  ;;  %v3897_v42 = vmul.f32 0.1, %v3641_v47 }
 0x41d   : > { %v3103_v26 = vpop.f32.mrb[116].mxu0  ;;  %v4811_v46 = vadd.f32 %v8004_v55, %v4555_v4  ;;  %v4185_v22 = vpop.f32.mrb[134].mxu1  ;;  %4501 = vmatprep.mubr.f32.mxu1 %v8060_v9  ;;  %v3768_v10 = vmul.f32 0.9, %v5701_v5  ;;  %v3898_v55 = vmul.f32 0.1, %v3642_v29 }
 0x41e   : > { %v5702_v57 = vadd.f32 %v3103_v26, %v8780_v31  ;;  %v3105_v41 = vpop.f32.mrb[117].mxu0  ;;  %4938 = vst [vmem:[%s8039_s21 + $0x20] sm:$0xff] %v4810_v11  ;;  %v4556_v2 = vmul.f32 0.4054651, %v4185_v22  ;;  %v4187_v19 = vpop.f32.mrb[135].mxu1  ;;  %4502 = vmatmul.mubr.f32.gmra.mrb[240].mxu1 %v8065_v20  ;;  %v3643_v6 = vld [vmem:[%s6550_s26 + $0x3b0] sm:$0xff]  ;;  %v8082_v31 = vadd.f32 %v3895_v24, %v3767_v37 }
 0x41f   : > { %v5703_v36 = vadd.f32 %v3105_v41, %v8781_v28  ;;  %4939 = vst [vmem:[%s8039_s21 + $0x28] sm:$0xff] %v4811_v46  ;;  %v4557_v33 = vmul.f32 0.4054651, %v4187_v19  ;;  %v8077_v30 = vadd.f32 %v3896_v27, %v3768_v10  ;;  %v8782_v26 = vld [vmem:[#allocation90_spill] sm:$0xff]  ;;  %v3644_v11 = vld [vmem:[%s6550_s26 + $0x3b8] sm:$0xff]  ;;  %v8783_v28 = vld [vmem:[#allocation91_spill] sm:$0xff] }
 0x420   : > { %v4812_v61 = vadd.f32 %v8007_v48, %v4556_v2  ;;  %v3769_v41 = vmul.f32 0.9, %v5702_v57  ;;  %v4690_v29 = vmul.f32 0.5945349, %v7524_v58  ;;  %v3899_v24 = vmul.f32 0.1, %v3643_v6 }
 0x421   : > { %v3109_v23 = vpop.f32.mrb[118].mxu0  ;;  %v4813_v46 = vadd.f32 %v8013_v59, %v4557_v33  ;;  %v4191_v22 = vpop.f32.mrb[136].mxu1  ;;  %4507 = vmatprep.mubr.f32.mxu1 %v8077_v30  ;;  %v3770_v27 = vmul.f32 0.9, %v5703_v36  ;;  %v3900_v59 = vmul.f32 0.1, %v3644_v11 }
 0x422   : > { %v5704_v5 = vadd.f32 %v3109_v23, %v8782_v26  ;;  %v3111_v4 = vpop.f32.mrb[119].mxu0  ;;  %4940 = vst [vmem:[%s8039_s21 + $0x30] sm:$0xff] %v4812_v61  ;;  %v4558_v10 = vmul.f32 0.4054651, %v4191_v22  ;;  %v4193_v48 = vpop.f32.mrb[137].mxu1  ;;  %4508 = vmatmul.mubr.f32.gmra.mrb[242].mxu1 %v8082_v31  ;;  %v3645_v19 = vld [vmem:[%s6550_s26 + $0x3c0] sm:$0xff]  ;;  %v8097_v26 = vadd.f32 %v3897_v42, %v3769_v41 }
 0x423   : > { %v5705_v47 = vadd.f32 %v3111_v4, %v8783_v28  ;;  %4941 = vst [vmem:[%s8039_s21 + $0x38] sm:$0xff] %v4813_v46  ;;  %v4559_v37 = vmul.f32 0.4054651, %v4193_v48  ;;  %v8092_v2 = vadd.f32 %v3898_v55, %v3770_v27  ;;  %v8784_v23 = vld [vmem:[#allocation92_spill] sm:$0xff]  ;;  %v3646_v61 = vld [vmem:[%s6550_s26 + $0x3c8] sm:$0xff]  ;;  %v8785_v28 = vld [vmem:[#allocation93_spill] sm:$0xff] }
 0x424   : > { %v4814_v58 = vadd.f32 %v8022_v43, %v4558_v10  ;;  %v3771_v4 = vmul.f32 0.9, %v5704_v5  ;;  %v4691_v11 = vmul.f32 0.5945349, %v7519_v51  ;;  %v3901_v42 = vmul.f32 0.1, %v3645_v19 }
 0x425   : > { %v3115_v57 = vpop.f32.mrb[120].mxu0  ;;  %v4815_v46 = vadd.f32 %v8035_v44, %v4559_v37  ;;  %v4197_v22 = vpop.f32.mrb[138].mxu1  ;;  %4513 = vmatprep.mubr.f32.mxu1 %v8092_v2  ;;  %v3772_v55 = vmul.f32 0.9, %v5705_v47  ;;  %v3902_v44 = vmul.f32 0.1, %v3646_v61 }
 0x426   : > { %v5706_v33 = vadd.f32 %v3115_v57, %v8784_v23  ;;  %v3117_v36 = vpop.f32.mrb[121].mxu0  ;;  %4942 = vst [vmem:[%s8039_s21 + $0x40] sm:$0xff] %v4814_v58  ;;  %v4560_v27 = vmul.f32 0.4054651, %v4197_v22  ;;  %v4199_v43 = vpop.f32.mrb[139].mxu1  ;;  %4514 = vmatmul.mubr.f32.gmra.mrb[244].mxu1 %v8097_v26  ;;  %v3647_v48 = vld [vmem:[%s6550_s26 + $0x3d0] sm:$0xff]  ;;  %v8112_v23 = vadd.f32 %v3899_v24, %v3771_v4 }
 0x427   : > { %v5707_v6 = vadd.f32 %v3117_v36, %v8785_v28  ;;  %4943 = vst [vmem:[%s8039_s21 + $0x48] sm:$0xff] %v4815_v46  ;;  %v4561_v41 = vmul.f32 0.4054651, %v4199_v43  ;;  %v8107_v10 = vadd.f32 %v3900_v59, %v3772_v55  ;;  %v8787_v57 = vld [vmem:[#allocation94_spill] sm:$0xff]  ;;  %v3648_v58 = vld [vmem:[%s6550_s26 + $0x3d8] sm:$0xff]  ;;  %v8788_v28 = vld [vmem:[#allocation95_spill] sm:$0xff] }
 0x428   : > { %v4816_v51 = vadd.f32 %v8055_v35, %v4560_v27  ;;  %v3773_v36 = vmul.f32 0.9, %v5706_v33  ;;  %v4692_v59 = vmul.f32 0.5945349, %v7536_v38  ;;  %v3903_v24 = vmul.f32 0.1, %v3647_v48 }
 0x429   : > { %v3121_v5 = vpop.f32.mrb[122].mxu0  ;;  %8786 = vst [vmem:[#allocation82_spill] sm:$0xff] %v8107_v10  ;;  %v4817_v46 = vadd.f32 %v8072_v52, %v4561_v41  ;;  %v4203_v22 = vpop.f32.mrb[140].mxu1  ;;  %4519 = vmatprep.mubr.f32.mxu1 %v8107_v10  ;;  %v3774_v61 = vmul.f32 0.9, %v5707_v6  ;;  %v3649_v43 = vld [vmem:[%s6550_s26 + $0x3e0] sm:$0xff] }
 0x42a   : > { %v5708_v37 = vadd.f32 %v3121_v5, %v8787_v57  ;;  %v3123_v47 = vpop.f32.mrb[123].mxu0  ;;  %4944 = vst [vmem:[%s8039_s21 + $0x50] sm:$0xff] %v4816_v51  ;;  %v4562_v55 = vmul.f32 0.4054651, %v4203_v22  ;;  %v4205_v35 = vpop.f32.mrb[141].mxu1  ;;  %4520 = vmatmul.mubr.f32.gmra.mrb[246].mxu1 %v8112_v23  ;;  %v8789_v5 = vld [vmem:[#allocation96_spill] sm:$0xff]  ;;  %v8126_v6 = vadd.f32 %v3901_v42, %v3773_v36 }
 0x42b   : > { %v5709_v19 = vadd.f32 %v3123_v47, %v8788_v28  ;;  %4945 = vst [vmem:[%s8039_s21 + $0x58] sm:$0xff] %v4817_v46  ;;  %v4563_v4 = vmul.f32 0.4054651, %v4205_v35  ;;  %v8122_v27 = vadd.f32 %v3902_v44, %v3774_v61  ;;  %v3904_v52 = vmul.f32 0.1, %v3648_v58  ;;  %v3650_v51 = vld [vmem:[%s6550_s26 + $0x3e8] sm:$0xff] }
 0x42c   : > { %v4818_v38 = vadd.f32 %v4690_v29, %v4562_v55  ;;  %v3775_v47 = vmul.f32 0.9, %v5708_v37  ;;  %v8790_v28 = vld [vmem:[#allocation97_spill] sm:$0xff]  ;;  %v4693_v44 = vmul.f32 0.5945349, %v7533_v25  ;;  %v8791_v55 = vld [vmem:[#allocation98_spill] sm:$0xff] }
 0x42d   : > { %v3127_v33 = vpop.f32.mrb[124].mxu0  ;;  %v4819_v48 = vadd.f32 %v4691_v11, %v4563_v4  ;;  %v4209_v10 = vpop.f32.mrb[142].mxu1  ;;  %4525 = vmatprep.mubr.f32.mxu1 %v8122_v27  ;;  %v3776_v46 = vmul.f32 0.9, %v5709_v19  ;;  %v3905_v29 = vmul.f32 0.1, %v3649_v43 }
 0x42e   : > { %v5710_v41 = vadd.f32 %v3127_v33, %v8789_v5  ;;  %v3129_v57 = vpop.f32.mrb[125].mxu0  ;;  %4946 = vst [vmem:[%s8039_s21 + $0x60] sm:$0xff] %v4818_v38  ;;  %v4564_v58 = vmul.f32 0.4054651, %v4209_v10  ;;  %v4211_v61 = vpop.f32.mrb[143].mxu1  ;;  %4526 = vmatmul.mubr.f32.gmra.mrb[248].mxu1 %v8126_v6  ;;  %v8138_v19 = vadd.f32 %v3903_v24, %v3775_v47  ;;  %v3652_v4 = vld [vmem:[%s6550_s26 + $0x3f8] sm:$0xff] }
 0x42f   : > { %v5711_v22 = vadd.f32 %v3129_v57, %v8790_v28  ;;  %4947 = vst [vmem:[%s8039_s21 + $0x68] sm:$0xff] %v4819_v48  ;;  %v4565_v37 = vmul.f32 0.4054651, %v4211_v61  ;;  %v8135_v36 = vadd.f32 %v3904_v52, %v3776_v46  ;;  %v3906_v11 = vmul.f32 0.1, %v3650_v51  ;;  %v8792_v5 = vld [vmem:[#allocation99_spill] sm:$0xff] }
 0x430   : > { %v4820_v25 = vadd.f32 %v4692_v59, %v4564_v58  ;;  %v3777_v10 = vmul.f32 0.9, %v5710_v41  ;;  %v4694_v28 = vmul.f32 0.5945349, %v7547_v12  ;;  %v3651_v48 = vld [vmem:[%s6550_s26 + $0x3f0] sm:$0xff] }
 0x431   : > { %v3133_v42 = vpop.f32.mrb[126].mxu0  ;;  %v4821_v43 = vadd.f32 %v4693_v44, %v4565_v37  ;;  %v4215_v38 = vpop.f32.mrb[144].mxu1  ;;  %4531 = vmatprep.mubr.f32.mxu1 %v8135_v36  ;;  %v3778_v52 = vmul.f32 0.9, %v5711_v22  ;;  %v4695_v59 = vmul.f32 0.5945349, %v7544_v45 }
 0x432   : > { %v5712_v35 = vadd.f32 %v3133_v42, %v8791_v55  ;;  %v3135_v33 = vpop.f32.mrb[127].mxu0  ;;  %4948 = vst [vmem:[%s8039_s21 + $0x70] sm:$0xff] %v4820_v25  ;;  %v4566_v51 = vmul.f32 0.4054651, %v4215_v38  ;;  %v4217_v46 = vpop.f32.mrb[145].mxu1  ;;  %4532 = vmatmul.mubr.f32.gmra.mrb[250].mxu1 %v8138_v19  ;;  %v8151_v12 = vadd.f32 %v3905_v29, %v3777_v10 }
 0x433   : > { %v5713_v57 = vadd.f32 %v3135_v33, %v8792_v5  ;;  %4949 = vst [vmem:[%s8039_s21 + $0x78] sm:$0xff] %v4821_v43  ;;  %v4567_v24 = vmul.f32 0.4054651, %v4217_v46  ;;  %v8149_v41 = vadd.f32 %v3906_v11, %v3778_v52  ;;  %v3908_v47 = vmul.f32 0.1, %v3652_v4 }
 0x434   : > { %v4822_v44 = vadd.f32 %v4694_v28, %v4566_v51  ;;  %v3779_v58 = vmul.f32 0.9, %v5712_v35  ;;  %v3907_v22 = vmul.f32 0.1, %v3651_v48  ;;  %v4696_v55 = vmul.f32 0.5945349, %v7557_v32 }
 0x435   : > { %v4823_v61 = vadd.f32 %v4695_v59, %v4567_v24  ;;  %v4221_v42 = vpop.f32.mrb[146].mxu1  ;;  %4537 = vmatprep.mubr.f32.mxu1 %v8149_v41  ;;  %v3780_v37 = vmul.f32 0.9, %v5713_v57  ;;  %v4697_v29 = vmul.f32 0.5945349, %v7554_v17 }
 0x436   : > { %4950 = vst [vmem:[%s8039_s21 + $0x80] sm:$0xff] %v4822_v44  ;;  %v4568_v45 = vmul.f32 0.4054651, %v4221_v42  ;;  %v4223_v33 = vpop.f32.mrb[147].mxu1  ;;  %4538 = vmatmul.mubr.f32.gmra.mrb[252].mxu1 %v8151_v12  ;;  %v8161_v10 = vadd.f32 %v3907_v22, %v3779_v58  ;;  %v4698_v57 = vmul.f32 0.5945349, %v7567_v0 }
 0x437   : > { %4951 = vst [vmem:[%s8039_s21 + $0x88] sm:$0xff] %v4823_v61  ;;  %v4569_v11 = vmul.f32 0.4054651, %v4223_v33  ;;  %v8159_v35 = vadd.f32 %v3908_v47, %v3780_v37  ;;  %v4699_v38 = vmul.f32 0.5945349, %v7564_v39 }
 0x438   : > { %v4824_v25 = vadd.f32 %v4696_v55, %v4568_v45  ;;  %v4700_v46 = vmul.f32 0.5945349, %v7577_v16  ;;  %v4701_v24 = vmul.f32 0.5945349, %v7574_v54  ;;  %v4702_v22 = vmul.f32 0.5945349, %v7587_v40 }
 0x439   : > { %v4825_v4 = vadd.f32 %v4697_v29, %v4569_v11  ;;  %v4227_v5 = vpop.f32.mrb[148].mxu1  ;;  %4543 = vmatprep.mubr.f32.mxu1 %v8159_v35  ;;  %v4703_v16 = vmul.f32 0.5945349, %v7584_v62  ;;  %v4704_v33 = vmul.f32 0.5945349, %v7597_v3 }
 0x43a   : > { %4952 = vst [vmem:[%s8039_s21 + $0x90] sm:$0xff] %v4824_v25  ;;  %v4570_v32 = vmul.f32 0.4054651, %v4227_v5  ;;  %v4229_v43 = vpop.f32.mrb[149].mxu1  ;;  %4544 = vmatmul.mubr.f32.gmra.mrb[254].mxu1 %v8161_v10  ;;  %v4705_v40 = vmul.f32 0.5945349, %v7594_v1 }
 0x43b   : > { %4953 = vst [vmem:[%s8039_s21 + $0x98] sm:$0xff] %v4825_v4  ;;  %v4571_v17 = vmul.f32 0.4054651, %v4229_v43  ;;  %v4707_v3 = vmul.f32 0.5945349, %v7604_v15 }
 0x43c   : > { %v4826_v28 = vadd.f32 %v4698_v57, %v4570_v32  ;;  %v4706_v32 = vmul.f32 0.5945349, %v7607_v53  ;;  %v4709_v53 = vmul.f32 0.5945349, %v7614_v34 }
 0x43d   : > { %v4827_v52 = vadd.f32 %v4699_v38, %v4571_v17  ;;  %v4233_v48 = vpop.f32.mrb[150].mxu1 }
 0x43e   : > { %4954 = vst [vmem:[%s8039_s21 + $0xa0] sm:$0xff] %v4826_v28  ;;  %v4572_v51 = vmul.f32 0.4054651, %v4233_v48  ;;  %v4235_v59 = vpop.f32.mrb[151].mxu1 }
 0x43f   : > { %4955 = vst [vmem:[%s8039_s21 + $0xa8] sm:$0xff] %v4827_v52  ;;  %v4573_v0 = vmul.f32 0.4054651, %v4235_v59  ;;  %v4708_v52 = vmul.f32 0.5945349, %v7617_v21 }
 0x440   : > { %v4828_v47 = vadd.f32 %v4700_v46, %v4572_v51  ;;  %v4711_v21 = vmul.f32 0.5945349, %v7624_v8 }
 0x441   : > { %v4829_v44 = vadd.f32 %v4701_v24, %v4573_v0  ;;  %v4239_v58 = vpop.f32.mrb[152].mxu1  ;;  %v4710_v24 = vmul.f32 0.5945349, %v7627_v60  ;;  %v4713_v60 = vmul.f32 0.5945349, %v7634_v13 }
 0x442   : > { %4956 = vst [vmem:[%s8039_s21 + $0xb0] sm:$0xff] %v4828_v47  ;;  %v4574_v39 = vmul.f32 0.4054651, %v4239_v58  ;;  %v4241_v61 = vpop.f32.mrb[153].mxu1 }
 0x443   : > { %4957 = vst [vmem:[%s8039_s21 + $0xb8] sm:$0xff] %v4829_v44  ;;  %v4575_v42 = vmul.f32 0.4054651, %v4241_v61  ;;  %v4712_v61 = vmul.f32 0.5945349, %v7637_v18 }
 0x444   : > { %v4830_v37 = vadd.f32 %v4702_v22, %v4574_v39 }
 0x445   : > { %v4831_v45 = vadd.f32 %v4703_v16, %v4575_v42  ;;  %v4245_v55 = vpop.f32.mrb[154].mxu1 }
 0x446   : > { %4958 = vst [vmem:[%s8039_s21 + $0xc0] sm:$0xff] %v4830_v37  ;;  %v4576_v54 = vmul.f32 0.4054651, %v4245_v55  ;;  %v4247_v11 = vpop.f32.mrb[155].mxu1 }
 0x447   : > { %4959 = vst [vmem:[%s8039_s21 + $0xc8] sm:$0xff] %v4831_v45  ;;  %v4577_v29 = vmul.f32 0.4054651, %v4247_v11 }
 0x448   : > { %v4832_v25 = vadd.f32 %v4704_v33, %v4576_v54  ;;  %v4714_v54 = vmul.f32 0.5945349, %v7647_v14 }
 0x449   : > { %v4833_v4 = vadd.f32 %v4705_v40, %v4577_v29  ;;  %v4251_v5 = vpop.f32.mrb[156].mxu1  ;;  %v8793_v29 = vld [vmem:[#allocation100_spill] sm:$0xff] }
 0x44a   : > { %4960 = vst [vmem:[%s8039_s21 + $0xd0] sm:$0xff] %v4832_v25  ;;  %v4578_v62 = vmul.f32 0.4054651, %v4251_v5  ;;  %v4253_v57 = vpop.f32.mrb[157].mxu1  ;;  %v4715_v18 = vmul.f32 0.5945349, %v8793_v29 }
 0x44b   : > { %4961 = vst [vmem:[%s8039_s21 + $0xd8] sm:$0xff] %v4833_v4  ;;  %v4579_v43 = vmul.f32 0.4054651, %v4253_v57  ;;  %v8794_v5 = vld [vmem:[#allocation102_spill] sm:$0xff] }
 0x44c   : > { %v4834_v17 = vadd.f32 %v4706_v32, %v4578_v62  ;;  %v4716_v62 = vmul.f32 0.5945349, %v8794_v5  ;;  %v8803_v5 = vld [vmem:[#allocation21_spill] sm:$0xff] }
 0x44d   : > { %v4835_v38 = vadd.f32 %v4707_v3, %v4579_v43  ;;  %v4257_v28 = vpop.f32.mrb[158].mxu1  ;;  %v8795_v43 = vld [vmem:[#allocation101_spill] sm:$0xff] }
 0x44e   : > { %4962 = vst [vmem:[%s8039_s21 + $0xe0] sm:$0xff] %v4834_v17  ;;  %v4580_v1 = vmul.f32 0.4054651, %v4257_v28  ;;  %v4259_v48 = vpop.f32.mrb[159].mxu1  ;;  %v4717_v14 = vmul.f32 0.5945349, %v8795_v43 }
 0x44f   : > { %4963 = vst [vmem:[%s8039_s21 + $0xe8] sm:$0xff] %v4835_v38  ;;  %v4581_v51 = vmul.f32 0.4054651, %v4259_v48 }
 0x450   : > { %v4836_v46 = vadd.f32 %v4708_v52, %v4580_v1  ;;  %v8796_v1 = vld [vmem:[#allocation104_spill] sm:$0xff] }
 0x451   : > { %v4837_v59 = vadd.f32 %v4709_v53, %v4581_v51  ;;  %v4263_v0 = vpop.f32.mrb[160].mxu1  ;;  %v4718_v52 = vmul.f32 0.5945349, %v8796_v1  ;;  %v8797_v53 = vld [vmem:[#allocation103_spill] sm:$0xff] }
 0x452   : > { %4964 = vst [vmem:[%s8039_s21 + $0xf0] sm:$0xff] %v4836_v46  ;;  %v4582_v15 = vmul.f32 0.4054651, %v4263_v0  ;;  %v4265_v47 = vpop.f32.mrb[161].mxu1  ;;  %v4719_v46 = vmul.f32 0.5945349, %v8797_v53 }
 0x453   : > { %4965 = vst [vmem:[%s8039_s21 + $0xf8] sm:$0xff] %v4837_v59  ;;  %v4583_v44 = vmul.f32 0.4054651, %v4265_v47  ;;  %v8798_v47 = vld [vmem:[#allocation18_spill] sm:$0xff]  ;;  %v8805_v1 = vld [vmem:[#allocation23_spill] sm:$0xff] }
 0x454   : > { %v4838_v58 = vadd.f32 %v4710_v24, %v4582_v15 }
 0x455   : > { %v4839_v39 = vadd.f32 %v4711_v21, %v4583_v44  ;;  %v4269_v22 = vpop.f32.mrb[162].mxu1  ;;  %v4720_v44 = vmul.f32 0.5945349, %v8798_v47  ;;  %v8807_v47 = vld [vmem:[#allocation25_spill] sm:$0xff] }
 0x456   : > { %4966 = vst [vmem:[%s8039_s21 + $0x100] sm:$0xff] %v4838_v58  ;;  %v4584_v34 = vmul.f32 0.4054651, %v4269_v22  ;;  %v4271_v42 = vpop.f32.mrb[163].mxu1 }
 0x457   : > { %4967 = vst [vmem:[%s8039_s21 + $0x108] sm:$0xff] %v4839_v39  ;;  %v4585_v16 = vmul.f32 0.4054651, %v4271_v42  ;;  %v8799_v39 = vld [vmem:[#allocation105_spill] sm:$0xff] }
 0x458   : > { %v4840_v37 = vadd.f32 %v4712_v61, %v4584_v34  ;;  %v4721_v22 = vmul.f32 0.5945349, %v8799_v39 }
 0x459   : > { %v4841_v45 = vadd.f32 %v4713_v60, %v4585_v16  ;;  %v4275_v55 = vpop.f32.mrb[164].mxu1  ;;  %v8800_v60 = vld [vmem:[#allocation20_spill] sm:$0xff] }
 0x45a   : > { %4968 = vst [vmem:[%s8039_s21 + $0x110] sm:$0xff] %v4840_v37  ;;  %v4586_v8 = vmul.f32 0.4054651, %v4275_v55  ;;  %v4277_v33 = vpop.f32.mrb[165].mxu1  ;;  %v4722_v37 = vmul.f32 0.5945349, %v8800_v60 }
 0x45b   : > { %4969 = vst [vmem:[%s8039_s21 + $0x118] sm:$0xff] %v4841_v45  ;;  %v4587_v11 = vmul.f32 0.4054651, %v4277_v33  ;;  %v8809_v60 = vld [vmem:[#allocation27_spill] sm:$0xff] }
 0x45c   : > { %v4842_v40 = vadd.f32 %v4714_v54, %v4586_v8  ;;  %v8801_v8 = vld [vmem:[#allocation19_spill] sm:$0xff] }
 0x45d   : > { %v4843_v25 = vadd.f32 %v4715_v18, %v4587_v11  ;;  %v4281_v4 = vpop.f32.mrb[166].mxu1  ;;  %v4723_v54 = vmul.f32 0.5945349, %v8801_v8 }
 0x45e   : > { %4970 = vst [vmem:[%s8039_s21 + $0x120] sm:$0xff] %v4842_v40  ;;  %v4588_v13 = vmul.f32 0.4054651, %v4281_v4  ;;  %v4283_v32 = vpop.f32.mrb[167].mxu1  ;;  %v8802_v40 = vld [vmem:[#allocation22_spill] sm:$0xff] }
 0x45f   : > { %4971 = vst [vmem:[%s8039_s21 + $0x128] sm:$0xff] %v4843_v25  ;;  %v4589_v57 = vmul.f32 0.4054651, %v4283_v32  ;;  %v4724_v25 = vmul.f32 0.5945349, %v8802_v40  ;;  %v8811_v40 = vld [vmem:[#allocation29_spill] sm:$0xff] }
 0x460   : > { %v4844_v3 = vadd.f32 %v4716_v62, %v4588_v13  ;;  %v4725_v62 = vmul.f32 0.5945349, %v8803_v5 }
 0x461   : > { %v4845_v17 = vadd.f32 %v4717_v14, %v4589_v57  ;;  %v4287_v38 = vpop.f32.mrb[168].mxu1 }
 0x462   : > { %4972 = vst [vmem:[%s8039_s21 + $0x130] sm:$0xff] %v4844_v3  ;;  %v4590_v28 = vmul.f32 0.4054651, %v4287_v38  ;;  %v4289_v48 = vpop.f32.mrb[169].mxu1  ;;  %v8804_v3 = vld [vmem:[#allocation24_spill] sm:$0xff] }
 0x463   : > { %4973 = vst [vmem:[%s8039_s21 + $0x138] sm:$0xff] %v4845_v17  ;;  %v4591_v51 = vmul.f32 0.4054651, %v4289_v48  ;;  %v4726_v17 = vmul.f32 0.5945349, %v8804_v3  ;;  %v8813_v3 = vld [vmem:[#allocation31_spill] sm:$0xff] }
 0x464   : > { %v4846_v59 = vadd.f32 %v4718_v52, %v4590_v28  ;;  %v4727_v52 = vmul.f32 0.5945349, %v8805_v1 }
 0x465   : > { %v4847_v0 = vadd.f32 %v4719_v46, %v4591_v51  ;;  %v4293_v15 = vpop.f32.mrb[170].mxu1 }
 0x466   : > { %4974 = vst [vmem:[%s8039_s21 + $0x140] sm:$0xff] %v4846_v59  ;;  %v4592_v24 = vmul.f32 0.4054651, %v4293_v15  ;;  %v4295_v21 = vpop.f32.mrb[171].mxu1  ;;  %v8806_v59 = vld [vmem:[#allocation26_spill] sm:$0xff] }
 0x467   : > { %4975 = vst [vmem:[%s8039_s21 + $0x148] sm:$0xff] %v4847_v0  ;;  %v4593_v58 = vmul.f32 0.4054651, %v4295_v21  ;;  %v4728_v0 = vmul.f32 0.5945349, %v8806_v59  ;;  %v8815_v59 = vld [vmem:[#allocation33_spill] sm:$0xff] }
 0x468   : > { %v4848_v34 = vadd.f32 %v4720_v44, %v4592_v24  ;;  %v4729_v44 = vmul.f32 0.5945349, %v8807_v47 }
 0x469   : > { %v4849_v61 = vadd.f32 %v4721_v22, %v4593_v58  ;;  %v4299_v42 = vpop.f32.mrb[172].mxu1 }
 0x46a   : > { %4976 = vst [vmem:[%s8039_s21 + $0x150] sm:$0xff] %v4848_v34  ;;  %v4594_v16 = vmul.f32 0.4054651, %v4299_v42  ;;  %v4301_v45 = vpop.f32.mrb[173].mxu1  ;;  %v8808_v34 = vld [vmem:[#allocation28_spill] sm:$0xff] }
 0x46b   : > { %4977 = vst [vmem:[%s8039_s21 + $0x158] sm:$0xff] %v4849_v61  ;;  %v4595_v55 = vmul.f32 0.4054651, %v4301_v45  ;;  %v4730_v61 = vmul.f32 0.5945349, %v8808_v34  ;;  %v8817_v34 = vld [vmem:[#allocation35_spill] sm:$0xff] }
 0x46c   : > { %v4850_v33 = vadd.f32 %v4722_v37, %v4594_v16  ;;  %v4731_v37 = vmul.f32 0.5945349, %v8809_v60 }
 0x46d   : > { %v4851_v11 = vadd.f32 %v4723_v54, %v4595_v55  ;;  %v4305_v29 = vpop.f32.mrb[174].mxu1 }
 0x46e   : > { %4978 = vst [vmem:[%s8039_s21 + $0x160] sm:$0xff] %v4850_v33  ;;  %v4596_v18 = vmul.f32 0.4054651, %v4305_v29  ;;  %v4307_v4 = vpop.f32.mrb[175].mxu1  ;;  %v8810_v33 = vld [vmem:[#allocation30_spill] sm:$0xff] }
 0x46f   : > { %4979 = vst [vmem:[%s8039_s21 + $0x168] sm:$0xff] %v4851_v11  ;;  %v4597_v13 = vmul.f32 0.4054651, %v4307_v4  ;;  %v4732_v11 = vmul.f32 0.5945349, %v8810_v33  ;;  %v8819_v33 = vld [vmem:[#allocation37_spill] sm:$0xff] }
 0x470   : > { %v4852_v32 = vadd.f32 %v4724_v25, %v4596_v18  ;;  %v4733_v25 = vmul.f32 0.5945349, %v8811_v40 }
 0x471   : > { %v4853_v57 = vadd.f32 %v4725_v62, %v4597_v13  ;;  %v4311_v43 = vpop.f32.mrb[176].mxu1 }
 0x472   : > { %4980 = vst [vmem:[%s8039_s21 + $0x170] sm:$0xff] %v4852_v32  ;;  %v4598_v14 = vmul.f32 0.4054651, %v4311_v43  ;;  %v4313_v38 = vpop.f32.mrb[177].mxu1  ;;  %v8812_v32 = vld [vmem:[#allocation32_spill] sm:$0xff] }
 0x473   : > { %4981 = vst [vmem:[%s8039_s21 + $0x178] sm:$0xff] %v4853_v57  ;;  %v4599_v28 = vmul.f32 0.4054651, %v4313_v38  ;;  %v4734_v57 = vmul.f32 0.5945349, %v8812_v32  ;;  %v8821_v32 = vld [vmem:[#allocation39_spill] sm:$0xff] }
 0x474   : > { %v4854_v48 = vadd.f32 %v4726_v17, %v4598_v14  ;;  %v4735_v17 = vmul.f32 0.5945349, %v8813_v3 }
 0x475   : > { %v4855_v51 = vadd.f32 %v4727_v52, %v4599_v28  ;;  %v4317_v53 = vpop.f32.mrb[178].mxu1 }
 0x476   : > { %4982 = vst [vmem:[%s8039_s21 + $0x180] sm:$0xff] %v4854_v48  ;;  %v4600_v46 = vmul.f32 0.4054651, %v4317_v53  ;;  %v4319_v15 = vpop.f32.mrb[179].mxu1  ;;  %v8814_v48 = vld [vmem:[#allocation34_spill] sm:$0xff] }
 0x477   : > { %4983 = vst [vmem:[%s8039_s21 + $0x188] sm:$0xff] %v4855_v51  ;;  %v4601_v24 = vmul.f32 0.4054651, %v4319_v15  ;;  %v4736_v51 = vmul.f32 0.5945349, %v8814_v48  ;;  %v8823_v48 = vld [vmem:[#allocation41_spill] sm:$0xff] }
 0x478   : > { %v4856_v21 = vadd.f32 %v4728_v0, %v4600_v46  ;;  %v4737_v0 = vmul.f32 0.5945349, %v8815_v59 }
 0x479   : > { %v4857_v58 = vadd.f32 %v4729_v44, %v4601_v24  ;;  %v4323_v39 = vpop.f32.mrb[180].mxu1 }
 0x47a   : > { %4984 = vst [vmem:[%s8039_s21 + $0x190] sm:$0xff] %v4856_v21  ;;  %v4602_v22 = vmul.f32 0.4054651, %v4323_v39  ;;  %v4325_v42 = vpop.f32.mrb[181].mxu1  ;;  %v8816_v21 = vld [vmem:[#allocation36_spill] sm:$0xff] }
 0x47b   : > { %4985 = vst [vmem:[%s8039_s21 + $0x198] sm:$0xff] %v4857_v58  ;;  %v4603_v16 = vmul.f32 0.4054651, %v4325_v42  ;;  %v4738_v58 = vmul.f32 0.5945349, %v8816_v21  ;;  %v8825_v21 = vld [vmem:[#allocation43_spill] sm:$0xff] }
 0x47c   : > { %v4858_v45 = vadd.f32 %v4730_v61, %v4602_v22  ;;  %v4739_v61 = vmul.f32 0.5945349, %v8817_v34 }
 0x47d   : > { %v4859_v55 = vadd.f32 %v4731_v37, %v4603_v16  ;;  %v4329_v8 = vpop.f32.mrb[182].mxu1 }
 0x47e   : > { %4986 = vst [vmem:[%s8039_s21 + $0x1a0] sm:$0xff] %v4858_v45  ;;  %v4604_v54 = vmul.f32 0.4054651, %v4329_v8  ;;  %v4331_v29 = vpop.f32.mrb[183].mxu1  ;;  %v8818_v45 = vld [vmem:[#allocation38_spill] sm:$0xff] }
 0x47f   : > { %4987 = vst [vmem:[%s8039_s21 + $0x1a8] sm:$0xff] %v4859_v55  ;;  %v4605_v18 = vmul.f32 0.4054651, %v4331_v29  ;;  %v4740_v55 = vmul.f32 0.5945349, %v8818_v45  ;;  %v8827_v45 = vld [vmem:[#allocation45_spill] sm:$0xff] }
 0x480   : > { %v4860_v4 = vadd.f32 %v4732_v11, %v4604_v54  ;;  %v4741_v11 = vmul.f32 0.5945349, %v8819_v33 }
 0x481   : > { %v4861_v13 = vadd.f32 %v4733_v25, %v4605_v18  ;;  %v4335_v5 = vpop.f32.mrb[184].mxu1 }
 0x482   : > { %4988 = vst [vmem:[%s8039_s21 + $0x1b0] sm:$0xff] %v4860_v4  ;;  %v4606_v62 = vmul.f32 0.4054651, %v4335_v5  ;;  %v4337_v43 = vpop.f32.mrb[185].mxu1  ;;  %v8820_v4 = vld [vmem:[#allocation40_spill] sm:$0xff] }
 0x483   : > { %4989 = vst [vmem:[%s8039_s21 + $0x1b8] sm:$0xff] %v4861_v13  ;;  %v4607_v14 = vmul.f32 0.4054651, %v4337_v43  ;;  %v4742_v13 = vmul.f32 0.5945349, %v8820_v4  ;;  %v8829_v4 = vld [vmem:[#allocation47_spill] sm:$0xff] }
 0x484   : > { %v4862_v38 = vadd.f32 %v4734_v57, %v4606_v62  ;;  %v4743_v57 = vmul.f32 0.5945349, %v8821_v32 }
 0x485   : > { %v4863_v28 = vadd.f32 %v4735_v17, %v4607_v14  ;;  %v4341_v1 = vpop.f32.mrb[186].mxu1 }
 0x486   : > { %4990 = vst [vmem:[%s8039_s21 + $0x1c0] sm:$0xff] %v4862_v38  ;;  %v4608_v52 = vmul.f32 0.4054651, %v4341_v1  ;;  %v4343_v53 = vpop.f32.mrb[187].mxu1  ;;  %v8822_v38 = vld [vmem:[#allocation42_spill] sm:$0xff] }
 0x487   : > { %4991 = vst [vmem:[%s8039_s21 + $0x1c8] sm:$0xff] %v4863_v28  ;;  %v4609_v46 = vmul.f32 0.4054651, %v4343_v53  ;;  %v4744_v28 = vmul.f32 0.5945349, %v8822_v38  ;;  %v8831_v38 = vld [vmem:[#allocation49_spill] sm:$0xff] }
 0x488   : > { %v4864_v15 = vadd.f32 %v4736_v51, %v4608_v52  ;;  %v4745_v51 = vmul.f32 0.5945349, %v8823_v48 }
 0x489   : > { %v4865_v24 = vadd.f32 %v4737_v0, %v4609_v46  ;;  %v4347_v47 = vpop.f32.mrb[188].mxu1 }
 0x48a   : > { %4992 = vst [vmem:[%s8039_s21 + $0x1d0] sm:$0xff] %v4864_v15  ;;  %v4610_v44 = vmul.f32 0.4054651, %v4347_v47  ;;  %v4349_v39 = vpop.f32.mrb[189].mxu1  ;;  %v8824_v15 = vld [vmem:[#allocation44_spill] sm:$0xff] }
 0x48b   : > { %4993 = vst [vmem:[%s8039_s21 + $0x1d8] sm:$0xff] %v4865_v24  ;;  %v4611_v22 = vmul.f32 0.4054651, %v4349_v39  ;;  %v4746_v24 = vmul.f32 0.5945349, %v8824_v15  ;;  %v8833_v15 = vld [vmem:[#allocation51_spill] sm:$0xff] }
 0x48c   : > { %v4866_v42 = vadd.f32 %v4738_v58, %v4610_v44  ;;  %v4747_v58 = vmul.f32 0.5945349, %v8825_v21 }
 0x48d   : > { %v4867_v16 = vadd.f32 %v4739_v61, %v4611_v22  ;;  %v4353_v60 = vpop.f32.mrb[190].mxu1 }
 0x48e   : > { %4994 = vst [vmem:[%s8039_s21 + $0x1e0] sm:$0xff] %v4866_v42  ;;  %v4612_v37 = vmul.f32 0.4054651, %v4353_v60  ;;  %v4355_v8 = vpop.f32.mrb[191].mxu1  ;;  %v8826_v42 = vld [vmem:[#allocation46_spill] sm:$0xff] }
 0x48f   : > { %4995 = vst [vmem:[%s8039_s21 + $0x1e8] sm:$0xff] %v4867_v16  ;;  %v4613_v54 = vmul.f32 0.4054651, %v4355_v8  ;;  %v4748_v16 = vmul.f32 0.5945349, %v8826_v42  ;;  %v8835_v42 = vld [vmem:[#allocation53_spill] sm:$0xff] }
 0x490   : > { %v4868_v29 = vadd.f32 %v4740_v55, %v4612_v37  ;;  %v4749_v55 = vmul.f32 0.5945349, %v8827_v45 }
 0x491   : > { %v4869_v18 = vadd.f32 %v4741_v11, %v4613_v54  ;;  %v4359_v40 = vpop.f32.mrb[192].mxu1 }
 0x492   : > { %4996 = vst [vmem:[%s8039_s21 + $0x1f0] sm:$0xff] %v4868_v29  ;;  %v4614_v25 = vmul.f32 0.4054651, %v4359_v40  ;;  %v4361_v5 = vpop.f32.mrb[193].mxu1  ;;  %v8828_v29 = vld [vmem:[#allocation48_spill] sm:$0xff] }
 0x493   : > { %4997 = vst [vmem:[%s8039_s21 + $0x1f8] sm:$0xff] %v4869_v18  ;;  %v4615_v62 = vmul.f32 0.4054651, %v4361_v5  ;;  %v4750_v18 = vmul.f32 0.5945349, %v8828_v29  ;;  %v8837_v29 = vld [vmem:[#allocation55_spill] sm:$0xff] }
 0x494   : > { %v4870_v43 = vadd.f32 %v4742_v13, %v4614_v25  ;;  %v4751_v13 = vmul.f32 0.5945349, %v8829_v4 }
 0x495   : > { %v4871_v14 = vadd.f32 %v4743_v57, %v4615_v62  ;;  %v4365_v3 = vpop.f32.mrb[194].mxu1 }
 0x496   : > { %4998 = vst [vmem:[%s8039_s21 + $0x200] sm:$0xff] %v4870_v43  ;;  %v4616_v17 = vmul.f32 0.4054651, %v4365_v3  ;;  %v4367_v1 = vpop.f32.mrb[195].mxu1  ;;  %v8830_v43 = vld [vmem:[#allocation50_spill] sm:$0xff] }
 0x497   : > { %4999 = vst [vmem:[%s8039_s21 + $0x208] sm:$0xff] %v4871_v14  ;;  %v4617_v52 = vmul.f32 0.4054651, %v4367_v1  ;;  %v4752_v14 = vmul.f32 0.5945349, %v8830_v43  ;;  %v8839_v43 = vld [vmem:[#allocation57_spill] sm:$0xff] }
 0x498   : > { %v4872_v53 = vadd.f32 %v4744_v28, %v4616_v17  ;;  %v4753_v28 = vmul.f32 0.5945349, %v8831_v38 }
 0x499   : > { %v4873_v46 = vadd.f32 %v4745_v51, %v4617_v52  ;;  %v4371_v59 = vpop.f32.mrb[196].mxu1 }
 0x49a   : > { %5000 = vst [vmem:[%s8039_s21 + $0x210] sm:$0xff] %v4872_v53  ;;  %v4618_v0 = vmul.f32 0.4054651, %v4371_v59  ;;  %v4373_v47 = vpop.f32.mrb[197].mxu1  ;;  %v8832_v53 = vld [vmem:[#allocation52_spill] sm:$0xff] }
 0x49b   : > { %5001 = vst [vmem:[%s8039_s21 + $0x218] sm:$0xff] %v4873_v46  ;;  %v4619_v44 = vmul.f32 0.4054651, %v4373_v47  ;;  %v4754_v46 = vmul.f32 0.5945349, %v8832_v53  ;;  %v8841_v53 = vld [vmem:[#allocation59_spill] sm:$0xff] }
 0x49c   : > { %v4874_v39 = vadd.f32 %v4746_v24, %v4618_v0  ;;  %v4755_v24 = vmul.f32 0.5945349, %v8833_v15 }
 0x49d   : > { %v4875_v22 = vadd.f32 %v4747_v58, %v4619_v44  ;;  %v4377_v34 = vpop.f32.mrb[198].mxu1 }
 0x49e   : > { %5002 = vst [vmem:[%s8039_s21 + $0x220] sm:$0xff] %v4874_v39  ;;  %v4620_v61 = vmul.f32 0.4054651, %v4377_v34  ;;  %v4379_v60 = vpop.f32.mrb[199].mxu1  ;;  %v8834_v39 = vld [vmem:[#allocation54_spill] sm:$0xff] }
 0x49f   : > { %5003 = vst [vmem:[%s8039_s21 + $0x228] sm:$0xff] %v4875_v22  ;;  %v4621_v37 = vmul.f32 0.4054651, %v4379_v60  ;;  %v4756_v22 = vmul.f32 0.5945349, %v8834_v39  ;;  %v8843_v39 = vld [vmem:[#allocation61_spill] sm:$0xff] }
 0x4a0   : > { %v4876_v8 = vadd.f32 %v4748_v16, %v4620_v61  ;;  %v4757_v16 = vmul.f32 0.5945349, %v8835_v42 }
 0x4a1   : > { %v4877_v54 = vadd.f32 %v4749_v55, %v4621_v37  ;;  %v4383_v33 = vpop.f32.mrb[200].mxu1 }
 0x4a2   : > { %5004 = vst [vmem:[%s8039_s21 + $0x230] sm:$0xff] %v4876_v8  ;;  %v4622_v11 = vmul.f32 0.4054651, %v4383_v33  ;;  %v4385_v40 = vpop.f32.mrb[201].mxu1  ;;  %v8836_v8 = vld [vmem:[#allocation56_spill] sm:$0xff] }
 0x4a3   : > { %5005 = vst [vmem:[%s8039_s21 + $0x238] sm:$0xff] %v4877_v54  ;;  %v4623_v25 = vmul.f32 0.4054651, %v4385_v40  ;;  %v4758_v54 = vmul.f32 0.5945349, %v8836_v8  ;;  %v8845_v8 = vld [vmem:[#allocation63_spill] sm:$0xff] }
 0x4a4   : > { %v4878_v5 = vadd.f32 %v4750_v18, %v4622_v11  ;;  %v4759_v18 = vmul.f32 0.5945349, %v8837_v29 }
 0x4a5   : > { %v4879_v62 = vadd.f32 %v4751_v13, %v4623_v25  ;;  %v4389_v32 = vpop.f32.mrb[202].mxu1 }
 0x4a6   : > { %5006 = vst [vmem:[%s8039_s21 + $0x240] sm:$0xff] %v4878_v5  ;;  %v4624_v57 = vmul.f32 0.4054651, %v4389_v32  ;;  %v4391_v3 = vpop.f32.mrb[203].mxu1  ;;  %v8838_v5 = vld [vmem:[#allocation58_spill] sm:$0xff] }
 0x4a7   : > { %5007 = vst [vmem:[%s8039_s21 + $0x248] sm:$0xff] %v4879_v62  ;;  %v4625_v17 = vmul.f32 0.4054651, %v4391_v3  ;;  %v4760_v62 = vmul.f32 0.5945349, %v8838_v5  ;;  %v8847_v5 = vld [vmem:[#allocation65_spill] sm:$0xff] }
 0x4a8   : > { %v4880_v1 = vadd.f32 %v4752_v14, %v4624_v57  ;;  %v4761_v14 = vmul.f32 0.5945349, %v8839_v43 }
 0x4a9   : > { %v4881_v52 = vadd.f32 %v4753_v28, %v4625_v17  ;;  %v4395_v48 = vpop.f32.mrb[204].mxu1 }
 0x4aa   : > { %5008 = vst [vmem:[%s8039_s21 + $0x250] sm:$0xff] %v4880_v1  ;;  %v4626_v51 = vmul.f32 0.4054651, %v4395_v48  ;;  %v4397_v59 = vpop.f32.mrb[205].mxu1  ;;  %v8840_v1 = vld [vmem:[#allocation60_spill] sm:$0xff] }
 0x4ab   : > { %5009 = vst [vmem:[%s8039_s21 + $0x258] sm:$0xff] %v4881_v52  ;;  %v4627_v0 = vmul.f32 0.4054651, %v4397_v59  ;;  %v4762_v52 = vmul.f32 0.5945349, %v8840_v1  ;;  %v8849_v1 = vld [vmem:[#allocation67_spill] sm:$0xff] }
 0x4ac   : > { %v4882_v47 = vadd.f32 %v4754_v46, %v4626_v51  ;;  %v4763_v46 = vmul.f32 0.5945349, %v8841_v53 }
 0x4ad   : > { %v4883_v44 = vadd.f32 %v4755_v24, %v4627_v0  ;;  %v4401_v21 = vpop.f32.mrb[206].mxu1 }
 0x4ae   : > { %5010 = vst [vmem:[%s8039_s21 + $0x260] sm:$0xff] %v4882_v47  ;;  %v4628_v58 = vmul.f32 0.4054651, %v4401_v21  ;;  %v4403_v34 = vpop.f32.mrb[207].mxu1  ;;  %v8842_v47 = vld [vmem:[#allocation62_spill] sm:$0xff] }
 0x4af   : > { %5011 = vst [vmem:[%s8039_s21 + $0x268] sm:$0xff] %v4883_v44  ;;  %v4629_v61 = vmul.f32 0.4054651, %v4403_v34  ;;  %v4764_v44 = vmul.f32 0.5945349, %v8842_v47  ;;  %v8851_v47 = vld [vmem:[#allocation69_spill] sm:$0xff] }
 0x4b0   : > { %v4884_v60 = vadd.f32 %v4756_v22, %v4628_v58  ;;  %v4765_v22 = vmul.f32 0.5945349, %v8843_v39 }
 0x4b1   : > { %v4885_v37 = vadd.f32 %v4757_v16, %v4629_v61  ;;  %v4407_v45 = vpop.f32.mrb[208].mxu1 }
 0x4b2   : > { %5012 = vst [vmem:[%s8039_s21 + $0x270] sm:$0xff] %v4884_v60  ;;  %v4630_v55 = vmul.f32 0.4054651, %v4407_v45  ;;  %v4409_v33 = vpop.f32.mrb[209].mxu1  ;;  %v8844_v60 = vld [vmem:[#allocation64_spill] sm:$0xff] }
 0x4b3   : > { %5013 = vst [vmem:[%s8039_s21 + $0x278] sm:$0xff] %v4885_v37  ;;  %v4631_v11 = vmul.f32 0.4054651, %v4409_v33  ;;  %v4766_v37 = vmul.f32 0.5945349, %v8844_v60  ;;  %v8853_v60 = vld [vmem:[#allocation71_spill] sm:$0xff] }
 0x4b4   : > { %v4886_v40 = vadd.f32 %v4758_v54, %v4630_v55  ;;  %v4767_v54 = vmul.f32 0.5945349, %v8845_v8 }
 0x4b5   : > { %v4887_v25 = vadd.f32 %v4759_v18, %v4631_v11  ;;  %v4413_v4 = vpop.f32.mrb[210].mxu1 }
 0x4b6   : > { %5014 = vst [vmem:[%s8039_s21 + $0x280] sm:$0xff] %v4886_v40  ;;  %v4632_v13 = vmul.f32 0.4054651, %v4413_v4  ;;  %v4415_v32 = vpop.f32.mrb[211].mxu1  ;;  %v8846_v40 = vld [vmem:[#allocation66_spill] sm:$0xff] }
 0x4b7   : > { %5015 = vst [vmem:[%s8039_s21 + $0x288] sm:$0xff] %v4887_v25  ;;  %v4633_v57 = vmul.f32 0.4054651, %v4415_v32  ;;  %v4768_v25 = vmul.f32 0.5945349, %v8846_v40  ;;  %v8855_v40 = vld [vmem:[#allocation73_spill] sm:$0xff] }
 0x4b8   : > { %v4888_v3 = vadd.f32 %v4760_v62, %v4632_v13  ;;  %v4769_v62 = vmul.f32 0.5945349, %v8847_v5 }
 0x4b9   : > { %v4889_v17 = vadd.f32 %v4761_v14, %v4633_v57  ;;  %v4419_v38 = vpop.f32.mrb[212].mxu1 }
 0x4ba   : > { %5016 = vst [vmem:[%s8039_s21 + $0x290] sm:$0xff] %v4888_v3  ;;  %v4634_v28 = vmul.f32 0.4054651, %v4419_v38  ;;  %v4421_v48 = vpop.f32.mrb[213].mxu1  ;;  %v8848_v3 = vld [vmem:[#allocation68_spill] sm:$0xff] }
 0x4bb   : > { %5017 = vst [vmem:[%s8039_s21 + $0x298] sm:$0xff] %v4889_v17  ;;  %v4635_v51 = vmul.f32 0.4054651, %v4421_v48  ;;  %v4770_v17 = vmul.f32 0.5945349, %v8848_v3  ;;  %v8857_v3 = vld [vmem:[#allocation75_spill] sm:$0xff] }
 0x4bc   : > { %v4890_v59 = vadd.f32 %v4762_v52, %v4634_v28  ;;  %v4771_v52 = vmul.f32 0.5945349, %v8849_v1 }
 0x4bd   : > { %v4891_v0 = vadd.f32 %v4763_v46, %v4635_v51  ;;  %v4425_v15 = vpop.f32.mrb[214].mxu1 }
 0x4be   : > { %5018 = vst [vmem:[%s8039_s21 + $0x2a0] sm:$0xff] %v4890_v59  ;;  %v4636_v24 = vmul.f32 0.4054651, %v4425_v15  ;;  %v4427_v21 = vpop.f32.mrb[215].mxu1  ;;  %v8850_v59 = vld [vmem:[#allocation70_spill] sm:$0xff] }
 0x4bf   : > { %5019 = vst [vmem:[%s8039_s21 + $0x2a8] sm:$0xff] %v4891_v0  ;;  %v4637_v58 = vmul.f32 0.4054651, %v4427_v21  ;;  %v4772_v0 = vmul.f32 0.5945349, %v8850_v59  ;;  %v8859_v59 = vld [vmem:[#allocation77_spill] sm:$0xff] }
 0x4c0   : > { %v4892_v34 = vadd.f32 %v4764_v44, %v4636_v24  ;;  %v4773_v44 = vmul.f32 0.5945349, %v8851_v47 }
 0x4c1   : > { %v4893_v61 = vadd.f32 %v4765_v22, %v4637_v58  ;;  %v4431_v42 = vpop.f32.mrb[216].mxu1 }
 0x4c2   : > { %5020 = vst [vmem:[%s8039_s21 + $0x2b0] sm:$0xff] %v4892_v34  ;;  %v4638_v16 = vmul.f32 0.4054651, %v4431_v42  ;;  %v4433_v45 = vpop.f32.mrb[217].mxu1  ;;  %v8852_v34 = vld [vmem:[#allocation72_spill] sm:$0xff] }
 0x4c3   : > { %5021 = vst [vmem:[%s8039_s21 + $0x2b8] sm:$0xff] %v4893_v61  ;;  %v4639_v55 = vmul.f32 0.4054651, %v4433_v45  ;;  %v4774_v61 = vmul.f32 0.5945349, %v8852_v34  ;;  %v8861_v34 = vld [vmem:[#allocation79_spill] sm:$0xff] }
 0x4c4   : > { %v4894_v33 = vadd.f32 %v4766_v37, %v4638_v16  ;;  %v4775_v37 = vmul.f32 0.5945349, %v8853_v60 }
 0x4c5   : > { %v4895_v11 = vadd.f32 %v4767_v54, %v4639_v55  ;;  %v4437_v29 = vpop.f32.mrb[218].mxu1 }
 0x4c6   : > { %5022 = vst [vmem:[%s8039_s21 + $0x2c0] sm:$0xff] %v4894_v33  ;;  %v4640_v18 = vmul.f32 0.4054651, %v4437_v29  ;;  %v4439_v4 = vpop.f32.mrb[219].mxu1  ;;  %v8854_v33 = vld [vmem:[#allocation74_spill] sm:$0xff] }
 0x4c7   : > { %5023 = vst [vmem:[%s8039_s21 + $0x2c8] sm:$0xff] %v4895_v11  ;;  %v4641_v13 = vmul.f32 0.4054651, %v4439_v4  ;;  %v4776_v11 = vmul.f32 0.5945349, %v8854_v33 }
 0x4c8   : > { %v4896_v32 = vadd.f32 %v4768_v25, %v4640_v18  ;;  %v4777_v25 = vmul.f32 0.5945349, %v8855_v40 }
 0x4c9   : > { %v4897_v57 = vadd.f32 %v4769_v62, %v4641_v13  ;;  %v4443_v43 = vpop.f32.mrb[220].mxu1 }
 0x4ca   : > { %5024 = vst [vmem:[%s8039_s21 + $0x2d0] sm:$0xff] %v4896_v32  ;;  %v4642_v14 = vmul.f32 0.4054651, %v4443_v43  ;;  %v4445_v38 = vpop.f32.mrb[221].mxu1  ;;  %v8856_v32 = vld [vmem:[#allocation76_spill] sm:$0xff] }
 0x4cb   : > { %5025 = vst [vmem:[%s8039_s21 + $0x2d8] sm:$0xff] %v4897_v57  ;;  %v4643_v28 = vmul.f32 0.4054651, %v4445_v38  ;;  %v4778_v57 = vmul.f32 0.5945349, %v8856_v32 }
 0x4cc   : > { %v4898_v48 = vadd.f32 %v4770_v17, %v4642_v14  ;;  %v4779_v17 = vmul.f32 0.5945349, %v8857_v3 }
 0x4cd   : > { %v4899_v51 = vadd.f32 %v4771_v52, %v4643_v28  ;;  %v4449_v53 = vpop.f32.mrb[222].mxu1 }
 0x4ce   : > { %5026 = vst [vmem:[%s8039_s21 + $0x2e0] sm:$0xff] %v4898_v48  ;;  %v4644_v46 = vmul.f32 0.4054651, %v4449_v53  ;;  %v4451_v15 = vpop.f32.mrb[223].mxu1  ;;  %v8858_v48 = vld [vmem:[#allocation78_spill] sm:$0xff] }
 0x4cf   : > { %5027 = vst [vmem:[%s8039_s21 + $0x2e8] sm:$0xff] %v4899_v51  ;;  %v4645_v24 = vmul.f32 0.4054651, %v4451_v15  ;;  %v4780_v51 = vmul.f32 0.5945349, %v8858_v48 }
 0x4d0   : > { %v4900_v21 = vadd.f32 %v4772_v0, %v4644_v46  ;;  %v4781_v0 = vmul.f32 0.5945349, %v8859_v59  ;;  %v4792_v59 = vmul.f32 0.5945349, %v8082_v31  ;;  %v4795_v31 = vmul.f32 0.5945349, %v8092_v2 }
 0x4d1   : > { %v4901_v58 = vadd.f32 %v4773_v44, %v4645_v24  ;;  %v4455_v39 = vpop.f32.mrb[224].mxu1 }
 0x4d2   : > { %5028 = vst [vmem:[%s8039_s21 + $0x2f0] sm:$0xff] %v4900_v21  ;;  %v4646_v22 = vmul.f32 0.4054651, %v4455_v39  ;;  %v4457_v42 = vpop.f32.mrb[225].mxu1  ;;  %v8860_v21 = vld [vmem:[#allocation80_spill] sm:$0xff] }
 0x4d3   : > { %5029 = vst [vmem:[%s8039_s21 + $0x2f8] sm:$0xff] %v4901_v58  ;;  %v4647_v16 = vmul.f32 0.4054651, %v4457_v42  ;;  %v4782_v58 = vmul.f32 0.5945349, %v8860_v21 }
 0x4d4   : > { %v4902_v45 = vadd.f32 %v4774_v61, %v4646_v22  ;;  %v4783_v61 = vmul.f32 0.5945349, %v8861_v34  ;;  %v4794_v21 = vmul.f32 0.5945349, %v8097_v26 }
 0x4d5   : > { %v4903_v55 = vadd.f32 %v4775_v37, %v4647_v16  ;;  %v4461_v8 = vpop.f32.mrb[226].mxu1 }
 0x4d6   : > { %5030 = vst [vmem:[%s8039_s21 + $0x300] sm:$0xff] %v4902_v45  ;;  %v4648_v54 = vmul.f32 0.4054651, %v4461_v8  ;;  %v4463_v29 = vpop.f32.mrb[227].mxu1  ;;  %v4784_v45 = vmul.f32 0.5945349, %v8016_v49 }
 0x4d7   : > { %5031 = vst [vmem:[%s8039_s21 + $0x308] sm:$0xff] %v4903_v55  ;;  %v4649_v18 = vmul.f32 0.4054651, %v4463_v29  ;;  %v4787_v49 = vmul.f32 0.5945349, %v8025_v50 }
 0x4d8   : > { %v4904_v4 = vadd.f32 %v4776_v11, %v4648_v54  ;;  %v8862_v54 = vld [vmem:[#allocation81_spill] sm:$0xff] }
 0x4d9   : > { %v4905_v13 = vadd.f32 %v4777_v25, %v4649_v18  ;;  %v4467_v5 = vpop.f32.mrb[228].mxu1  ;;  %v4785_v33 = vmul.f32 0.5945349, %v8862_v54  ;;  %v4786_v25 = vmul.f32 0.5945349, %v8029_v63 }
 0x4da   : > { %5032 = vst [vmem:[%s8039_s21 + $0x310] sm:$0xff] %v4904_v4  ;;  %v4650_v62 = vmul.f32 0.4054651, %v4467_v5  ;;  %v4469_v43 = vpop.f32.mrb[229].mxu1  ;;  %v4789_v63 = vmul.f32 0.5945349, %v8044_v7 }
 0x4db   : > { %5033 = vst [vmem:[%s8039_s21 + $0x318] sm:$0xff] %v4905_v13  ;;  %v4651_v14 = vmul.f32 0.4054651, %v4469_v43  ;;  %v4788_v43 = vmul.f32 0.5945349, %v8049_v56 }
 0x4dc   : > { %v4906_v38 = vadd.f32 %v4778_v57, %v4650_v62  ;;  %v4791_v56 = vmul.f32 0.5945349, %v8060_v9  ;;  %v4798_v54 = vmul.f32 0.5945349, %v8126_v6  ;;  %v4801_v6 = vmul.f32 0.5945349, %v8135_v36 }
 0x4dd   : > { %v4907_v28 = vadd.f32 %v4779_v17, %v4651_v14  ;;  %v4473_v1 = vpop.f32.mrb[230].mxu1 }
 0x4de   : > { %5034 = vst [vmem:[%s8039_s21 + $0x320] sm:$0xff] %v4906_v38  ;;  %v4652_v52 = vmul.f32 0.4054651, %v4473_v1  ;;  %v4475_v53 = vpop.f32.mrb[231].mxu1  ;;  %v4790_v1 = vmul.f32 0.5945349, %v8065_v20 }
 0x4df   : > { %5035 = vst [vmem:[%s8039_s21 + $0x328] sm:$0xff] %v4907_v28  ;;  %v4653_v46 = vmul.f32 0.4054651, %v4475_v53  ;;  %v4793_v20 = vmul.f32 0.5945349, %v8077_v30 }
 0x4e0   : > { %v4908_v15 = vadd.f32 %v4780_v51, %v4652_v52 }
 0x4e1   : > { %v4909_v24 = vadd.f32 %v4781_v0, %v4653_v46  ;;  %v4479_v47 = vpop.f32.mrb[232].mxu1 }
 0x4e2   : > { %5036 = vst [vmem:[%s8039_s21 + $0x330] sm:$0xff] %v4908_v15  ;;  %v4654_v44 = vmul.f32 0.4054651, %v4479_v47  ;;  %v4481_v39 = vpop.f32.mrb[233].mxu1 }
 0x4e3   : > { %5037 = vst [vmem:[%s8039_s21 + $0x338] sm:$0xff] %v4909_v24  ;;  %v4655_v22 = vmul.f32 0.4054651, %v4481_v39 }
 0x4e4   : > { %v4910_v42 = vadd.f32 %v4782_v58, %v4654_v44 }
 0x4e5   : > { %v4911_v16 = vadd.f32 %v4783_v61, %v4655_v22  ;;  %v4485_v60 = vpop.f32.mrb[234].mxu1 }
 0x4e6   : > { %5038 = vst [vmem:[%s8039_s21 + $0x340] sm:$0xff] %v4910_v42  ;;  %v4656_v37 = vmul.f32 0.4054651, %v4485_v60  ;;  %v4487_v55 = vpop.f32.mrb[235].mxu1  ;;  %v4796_v42 = vmul.f32 0.5945349, %v8112_v23 }
 0x4e7   : > { %5039 = vst [vmem:[%s8039_s21 + $0x348] sm:$0xff] %v4911_v16  ;;  %v4657_v8 = vmul.f32 0.4054651, %v4487_v55  ;;  %v4799_v23 = vmul.f32 0.5945349, %v8122_v27 }
 0x4e8   : > { %v4912_v11 = vadd.f32 %v4784_v45, %v4656_v37  ;;  %v8863_v37 = vld [vmem:[#allocation82_spill] sm:$0xff] }
 0x4e9   : > { %v4913_v29 = vadd.f32 %v4785_v33, %v4657_v8  ;;  %v4491_v18 = vpop.f32.mrb[236].mxu1  ;;  %v4797_v26 = vmul.f32 0.5945349, %v8863_v37 }
 0x4ea   : > { %5040 = vst [vmem:[%s8039_s21 + $0x350] sm:$0xff] %v4912_v11  ;;  %v4658_v40 = vmul.f32 0.4054651, %v4491_v18  ;;  %v4493_v4 = vpop.f32.mrb[237].mxu1 }
 0x4eb   : > { %5041 = vst [vmem:[%s8039_s21 + $0x358] sm:$0xff] %v4913_v29  ;;  %v4659_v13 = vmul.f32 0.4054651, %v4493_v4  ;;  %v4800_v4 = vmul.f32 0.5945349, %v8138_v19 }
 0x4ec   : > { %v4914_v5 = vadd.f32 %v4786_v25, %v4658_v40  ;;  %v4803_v19 = vmul.f32 0.5945349, %v8149_v41 }
 0x4ed   : > { %v4915_v62 = vadd.f32 %v4787_v49, %v4659_v13  ;;  %v4497_v32 = vpop.f32.mrb[238].mxu1 }
 0x4ee   : > { %5042 = vst [vmem:[%s8039_s21 + $0x360] sm:$0xff] %v4914_v5  ;;  %v4660_v57 = vmul.f32 0.4054651, %v4497_v32  ;;  %v4499_v14 = vpop.f32.mrb[239].mxu1 }
 0x4ef   : > { %5043 = vst [vmem:[%s8039_s21 + $0x368] sm:$0xff] %v4915_v62  ;;  %v4661_v3 = vmul.f32 0.4054651, %v4499_v14 }
 0x4f0   : > { %v4916_v17 = vadd.f32 %v4788_v43, %v4660_v57  ;;  %v4802_v57 = vmul.f32 0.5945349, %v8151_v12 }
 0x4f1   : > { %v4917_v38 = vadd.f32 %v4789_v63, %v4661_v3  ;;  %v4503_v28 = vpop.f32.mrb[240].mxu1 }
 0x4f2   : > { %5044 = vst [vmem:[%s8039_s21 + $0x370] sm:$0xff] %v4916_v17  ;;  %v4662_v50 = vmul.f32 0.4054651, %v4503_v28  ;;  %v4505_v52 = vpop.f32.mrb[241].mxu1 }
 0x4f3   : > { %5045 = vst [vmem:[%s8039_s21 + $0x378] sm:$0xff] %v4917_v38  ;;  %v4663_v48 = vmul.f32 0.4054651, %v4505_v52  ;;  %v4804_v38 = vmul.f32 0.5945349, %v8161_v10 }
 0x4f4   : > { %v4918_v51 = vadd.f32 %v4790_v1, %v4662_v50  ;;  %v4805_v50 = vmul.f32 0.5945349, %v8159_v35 }
 0x4f5   : > { %v4919_v53 = vadd.f32 %v4791_v56, %v4663_v48  ;;  %v4509_v46 = vpop.f32.mrb[242].mxu1 }
 0x4f6   : > { %5046 = vst [vmem:[%s8039_s21 + $0x380] sm:$0xff] %v4918_v51  ;;  %v4664_v7 = vmul.f32 0.4054651, %v4509_v46  ;;  %v4511_v0 = vpop.f32.mrb[243].mxu1 }
 0x4f7   : > { %5047 = vst [vmem:[%s8039_s21 + $0x388] sm:$0xff] %v4919_v53  ;;  %v4665_v15 = vmul.f32 0.4054651, %v4511_v0 }
 0x4f8   : > { %v4920_v24 = vadd.f32 %v4792_v59, %v4664_v7 }
 0x4f9   : > { %v4921_v47 = vadd.f32 %v4793_v20, %v4665_v15  ;;  %v4515_v44 = vpop.f32.mrb[244].mxu1 }
 0x4fa   : > { %5048 = vst [vmem:[%s8039_s21 + $0x390] sm:$0xff] %v4920_v24  ;;  %v4666_v9 = vmul.f32 0.4054651, %v4515_v44  ;;  %v4517_v58 = vpop.f32.mrb[245].mxu1 }
 0x4fb   : > { %5049 = vst [vmem:[%s8039_s21 + $0x398] sm:$0xff] %v4921_v47  ;;  %v4667_v39 = vmul.f32 0.4054651, %v4517_v58 }
 0x4fc   : > { %v4922_v22 = vadd.f32 %v4794_v21, %v4666_v9 }
 0x4fd   : > { %v4923_v34 = vadd.f32 %v4795_v31, %v4667_v39  ;;  %v4521_v61 = vpop.f32.mrb[246].mxu1 }
 0x4fe   : > { %5050 = vst [vmem:[%s8039_s21 + $0x3a0] sm:$0xff] %v4922_v22  ;;  %v4668_v30 = vmul.f32 0.4054651, %v4521_v61  ;;  %v4523_v16 = vpop.f32.mrb[247].mxu1 }
 0x4ff   : > { %5051 = vst [vmem:[%s8039_s21 + $0x3a8] sm:$0xff] %v4923_v34  ;;  %v4669_v60 = vmul.f32 0.4054651, %v4523_v16 }
 0x500   : > { %v4924_v45 = vadd.f32 %v4796_v42, %v4668_v30 }
 0x501   : > { %v4925_v55 = vadd.f32 %v4797_v26, %v4669_v60  ;;  %v4527_v8 = vpop.f32.mrb[248].mxu1 }
 0x502   : > { %5052 = vst [vmem:[%s8039_s21 + $0x3b0] sm:$0xff] %v4924_v45  ;;  %v4670_v2 = vmul.f32 0.4054651, %v4527_v8  ;;  %v4529_v33 = vpop.f32.mrb[249].mxu1 }
 0x503   : > { %5053 = vst [vmem:[%s8039_s21 + $0x3b8] sm:$0xff] %v4925_v55  ;;  %v4671_v11 = vmul.f32 0.4054651, %v4529_v33 }
 0x504   : > { %v4926_v29 = vadd.f32 %v4798_v54, %v4670_v2 }
 0x505   : > { %v4927_v18 = vadd.f32 %v4799_v23, %v4671_v11  ;;  %v4533_v40 = vpop.f32.mrb[250].mxu1 }
 0x506   : > { %5054 = vst [vmem:[%s8039_s21 + $0x3c0] sm:$0xff] %v4926_v29  ;;  %v4672_v25 = vmul.f32 0.4054651, %v4533_v40  ;;  %v4535_v13 = vpop.f32.mrb[251].mxu1 }
 0x507   : > { %5055 = vst [vmem:[%s8039_s21 + $0x3c8] sm:$0xff] %v4927_v18  ;;  %v4673_v49 = vmul.f32 0.4054651, %v4535_v13 }
 0x508   : > { %v4928_v5 = vadd.f32 %v4800_v4, %v4672_v25 }
 0x509   : > { %v4929_v62 = vadd.f32 %v4801_v6, %v4673_v49  ;;  %v4539_v32 = vpop.f32.mrb[252].mxu1 }
 0x50a   : > { %5056 = vst [vmem:[%s8039_s21 + $0x3d0] sm:$0xff] %v4928_v5  ;;  %v4674_v27 = vmul.f32 0.4054651, %v4539_v32  ;;  %v4541_v43 = vpop.f32.mrb[253].mxu1 }
 0x50b   : > { %5057 = vst [vmem:[%s8039_s21 + $0x3d8] sm:$0xff] %v4929_v62  ;;  %v4675_v14 = vmul.f32 0.4054651, %v4541_v43 }
 0x50c   : > { %v4930_v3 = vadd.f32 %v4802_v57, %v4674_v27 }
 0x50d   : > { %v4931_v63 = vadd.f32 %v4803_v19, %v4675_v14  ;;  %v4545_v17 = vpop.f32.mrb[254].mxu1 }
 0x50e   : > { %5058 = vst [vmem:[%s8039_s21 + $0x3e0] sm:$0xff] %v4930_v3  ;;  %v4676_v36 = vmul.f32 0.4054651, %v4545_v17  ;;  %v4547_v28 = vpop.f32.mrb[255].mxu1 }
 0x50f   : > { %5059 = vst [vmem:[%s8039_s21 + $0x3e8] sm:$0xff] %v4931_v63  ;;  %v4677_v12 = vmul.f32 0.4054651, %v4547_v28 }
 0x510   : > { %v4932_v1 = vadd.f32 %v4804_v38, %v4676_v36 }
 0x511   : > { %v4933_v41 = vadd.f32 %v4805_v50, %v4677_v12 }
 0x512   : > { %5060 = vst [vmem:[%s8039_s21 + $0x3f0] sm:$0xff] %v4932_v1 }
 0x513   : > { %5061 = vst [vmem:[%s8039_s21 + $0x3f8] sm:$0xff] %v4933_v41 }
 0x514   : > { %6194 = shalt.err (!%p6191_p12)
}
 0x515   : > { %s6195_s1 = scalar_lea.hbm %s8386_s12, 16384  ;;  %s6199_s11 = scalar_lea.hbm %s8443_s4, 32768 }
 0x516   : > { %p6196_p8 = scmp.ne.s32.totalorder %s8386_s12, %s6195_s1  ;;  %p6200_p5 = scmp.lt.u32.totalorder %s8386_s12, %s8443_s4 }
 0x517   : > { %p6201_p9 = scmp.lt.u32.totalorder %s6199_s11, %s6195_s1  ;;  %p6203_p4 = scmp.lt.u32.totalorder %s6195_s1, %s8386_s12 }
 0x518   : > { %p6197_p0 = pnand %p6196_p8, %p8864_p6 }
 0x519   : > { %p6202_p2 = por %p6201_p9, %p6200_p5 }
 0x51a   : > { %p6198_p7 = pneg %p6197_p0 }
 0x51b   : > { %p6204_p10 = por %p6203_p4, %p6202_p2 }
 0x51d   : > { %p6205_p3 = pnand %p6204_p10, %p6198_p7 }
 0x51f   : > { %6208 = shalt.err (!%p6205_p3)
}
 0x520   : > { %s6286_s27 = smov 256   ;;  %s6287_s6 = smov 16  }
 0x521   : > { %5982 = dma.vmem_to_hbm [thread:$0]  (%p8864_p6), %s8388_s30, 16384, %s8386_s12, %s5063_s18, %s6286_s27, %s6286_s27, %s6287_s6  }
 0x522 PF: > { %s8865_s25 = sld [smem:[#allocation15_spill]]  ;;  %s5092_s26 = sand.u32 1, %s6255_s15  }
 0x523   : > { %p8866_p13 = scmp.ne.s32.totalorder %s8534_s24, 0  ;;  %s5093_s21 = scalar_lea.sflag [#allocation4], %s5092_s26 }
 0x528   : > { %p8867_p1 = scmp.ge.s32.totalorder %s8865_s25, 2 }
 0x52a   : > { %p5999_p11 = pnand %p8867_p1, %p8866_p13 }
 0x52c   : > { %6250 = dma.done.wait (!%p5999_p11), %s5093_s21, 16384  }
 0x52d   : > { %6252 = vsyncadd (!%p5999_p11), %s5093_s21, 4294950912  ;;  %s21_s20 = sadd.s32 1, %s8865_s25   ;;  %s8868_s23 = sld [smem:[#allocation17_spill]] }
 0x52e   : > { %p18_p12 = scmp.ge.s32.totalorder %s21_s20, 4   ;;  %s8869_s5 = sld [smem:[#allocation16_spill]] }
 0x52f   : > { %s8870_s15 = smov %s6259_s16  ;;  %s8871_s16 = smov %s6263_s17 }
 0x530   : > { %s8873_s18 = smov %s6271_s19  ;;  %20 = sbr.rel (!%p18_p12) target bundleno = 10 (0xa), region = 109 }
 0x533   : > { %s8872_s17 = smov %s8868_s23 }
 0x534   : > { %s8874_s19 = smov %s8869_s5 }
 0x537   :  { %5098 = vsyncpa [#allocation3], 1 }
 0x538   :  { %5100 = vsyncpa [#allocation3 + $0x1], 1 }
 0x539   :  { %5101 = vsyncpa [#allocation6], 1 }
 0x53a   :  { %5102 = vsyncpa [#allocation4], 1 }
 0x53b   :  { %5104 = vsyncpa [#allocation4 + $0x1], 1 }

</bundles_post_ra>
